<compile_context>
chip_gen: v6e
topology: v6e:2x2x1
jax: 0.10.0
libtpu: 0.0.40
codegen_flags: <defaults>
</compile_context>

<pallas_src>
import functools

import jax
import jax.numpy as jnp
from jax.experimental import pallas as pl
from jax.experimental.pallas import tpu as pltpu

BN_EPS = 1e-5


def _lstmcnn_kernel(
    x_ref,      # (T*BP, INP)      bf16  time-major rows, row = t*BP + b (lane-padded)
    mask_ref,   # (T*BP, 1)        f32   1.0 for real batch rows, 0.0 for padding
    wih_ref,    # (INP, 4H)        bf16  LSTM input weights (transposed, row-padded)
    whh_ref,    # (H, 4H)          bf16  LSTM recurrent weights (transposed)
    bl_ref,     # (1, 4H)          f32   b_ih + b_hh
    w1_ref,     # (H, 2*GP*C1)     bf16  banded conv1 (even-window half | odd-window half)
    g1_ref,     # (1, C1)          f32   BN1 gamma
    be1_ref,    # (1, C1)          f32   BN1 beta
    w2_ref,     # (GP*C1, W2*C2)   bf16  block-banded conv2
    g2_ref,     # (1, C2)          f32   BN2 gamma
    be2_ref,    # (1, C2)          f32   BN2 beta
    wc_ref,     # (C2, CPAD)       bf16  classifier weight, lane-padded
    bc_ref,     # (1, CPAD)        f32   classifier bias, lane-padded
    out_ref,    # (BP, CPAD)       f32
    *, seq_len, batch_pad, real_batch, n_conv1_windows,
):
    T, BP, B = seq_len, batch_pad, real_batch
    H = whh_ref.shape[0]
    C1 = g1_ref.shape[1]
    C2 = g2_ref.shape[1]
    half = w1_ref.shape[1] // 2         # GP*C1 lanes per (even / odd) half
    GP = half // C1
    W2 = w2_ref.shape[1] // C2
    W1 = n_conv1_windows
    WP = W1 // 2

    mask = mask_ref[...]                # (T*BP, 1)

    def sigmoid(z):
        # exp on the EUP + approximate reciprocal on the EUP (free VLIW slot).
        return pl.reciprocal(1.0 + jnp.exp(-z), approx=True)

    # ---------------- LSTM(9 -> 32), 1 layer, h0 = c0 = 0 -------------------
    # Input projection for every timestep batched into one bf16 MXU dot.
    gx = jnp.dot(x_ref[...], wih_ref[...],
                 preferred_element_type=jnp.float32) + bl_ref[...]
    whh = whh_ref[...]
    h = jnp.zeros((BP, H), jnp.float32)
    c = jnp.zeros((BP, H), jnp.float32)
    hs = []
    for t in range(T):                  # strictly sequential recurrence, unrolled
        gates = gx[t * BP:(t + 1) * BP, :] + jnp.dot(
            h.astype(jnp.bfloat16), whh, preferred_element_type=jnp.float32)
        i_g = sigmoid(gates[:, 0 * H:1 * H])
        f_g = sigmoid(gates[:, 1 * H:2 * H])
        g_g = jnp.tanh(gates[:, 2 * H:3 * H])
        o_g = sigmoid(gates[:, 3 * H:4 * H])
        c = f_g * c + i_g * g_g
        h = o_g * jnp.tanh(c)
        hs.append(h)
    # (T*BP, H); padded batch rows zeroed so BN statistics stay exact through
    # the bias-free convolutions.
    rows = (jnp.concatenate(hs, axis=0) * mask).astype(jnp.bfloat16)

    # -------- Conv2d(1 -> 64, (1,5), stride (1,2)) as ONE banded matmul ------
    # Output lanes: [even windows 0,2,..  | pad | odd windows 1,3,.. | pad].
    c1 = jnp.dot(rows, w1_ref[...], preferred_element_type=jnp.float32)

    def fold_c1(v):                     # (1, 2*GP*C1) -> (1, C1), log-step folds
        r = v[:, :half] + v[:, half:]
        w = half
        while w > C1:
            w //= 2
            r = r[:, :w] + r[:, w:]
        return r

    def bcast_c1(v):                    # (1, C1) -> (1, 2*GP*C1), zeros in pad groups
        z = jnp.zeros_like(v)
        h_ = jnp.concatenate([v] * WP + [z] * (GP - WP), axis=-1)
        return jnp.concatenate([h_, h_], axis=-1)

    # -------- BatchNorm2d(64), training stats (two-pass, padded rows masked) -
    inv_n1 = 1.0 / float(W1 * T * B)
    mean1 = fold_c1(jnp.sum(c1, axis=0, keepdims=True)) * inv_n1
    centered1 = (c1 - bcast_c1(mean1)) * mask
    var1 = fold_c1(jnp.sum(centered1 * centered1, axis=0, keepdims=True)) * inv_n1
    scale1 = g1_ref[...] * jax.lax.rsqrt(var1 + BN_EPS)
    act1 = jnp.maximum(centered1 * bcast_c1(scale1) + bcast_c1(be1_ref[...]), 0.0)

    # -------- MaxPool2d((1,2),(1,2)): max of the even / odd lane halves ------
    p1 = (jnp.maximum(act1[:, :half], act1[:, half:]) * mask).astype(jnp.bfloat16)

    # -------- Conv2d(64 -> 128, (1,3)) as ONE block-banded matmul ------------
    c2 = jnp.dot(p1, w2_ref[...], preferred_element_type=jnp.float32)

    def fold_c2(v):                     # (*, W2*C2) -> (*, C2), vreg-aligned slices
        r = v[:, 0:C2]
        for w in range(1, W2):
            r = r + v[:, w * C2:(w + 1) * C2]
        return r

    def bcast_c2(v):                    # (1, C2) -> (1, W2*C2)
        return jnp.concatenate([v] * W2, axis=-1)

    # -------- BatchNorm2d(128), training stats -------------------------------
    inv_n2 = 1.0 / float(W2 * T * B)
    mean2 = fold_c2(jnp.sum(c2, axis=0, keepdims=True)) * inv_n2
    centered2 = (c2 - bcast_c2(mean2)) * mask
    var2 = fold_c2(jnp.sum(centered2 * centered2, axis=0, keepdims=True)) * inv_n2
    scale2 = g2_ref[...] * jax.lax.rsqrt(var2 + BN_EPS)
    act2 = jnp.maximum(centered2 * bcast_c2(scale2) + bcast_c2(be2_ref[...]), 0.0)

    # -------- ReLU + AdaptiveAvgPool2d((1,1)) + classifier --------------------
    wsum = fold_c2(act2)                                # (T*BP, C2) width fold
    pooled = wsum[0:BP, :]
    for t in range(1, T):                               # timestep fold (8-row slices)
        pooled = pooled + wsum[t * BP:(t + 1) * BP, :]
    pooled = pooled * (1.0 / float(T * W2))             # (BP, C2)

    out_ref[...] = (
        jnp.dot(pooled.astype(jnp.bfloat16), wc_ref[...],
                preferred_element_type=jnp.float32)
        + bc_ref[...]
    )


def lstmcnn_forward(x, params):
    """x: (B, T, 9) -> logits (B, num_classes). Whole model in one pallas_call."""
    B, T, IN = x.shape
    H = params["w_hh"].shape[1]            # 32
    C1 = params["conv1_w"].shape[0]        # 64
    C2 = params["conv2_w"].shape[0]        # 128
    K1 = params["conv1_w"].shape[3]        # 5
    K2 = params["conv2_w"].shape[3]        # 3
    S1 = 2
    num_classes = params["fc_w"].shape[0]
    W1 = (H - K1) // S1 + 1                # 14
    WP = W1 // 2                           # 7
    W2 = WP - K2 + 1                       # 5
    CPAD = 128                             # lane-dense classifier output
    BP = ((B + 7) // 8) * 8                # pad batch to a sublane multiple
    INP = ((IN + 15) // 16) * 16           # pad the 9-wide LSTM input to 16
    GP = 1                                 # pooled-window groups, power of two
    while GP < WP:
        GP *= 2
    assert GP & (GP - 1) == 0 and GP >= WP

    xf = x.astype(jnp.float32)
    x_pad = jnp.zeros((BP, T, INP), jnp.float32).at[:B, :, :IN].set(xf)
    # time-major rows (matches x.transpose(0,1) in the PyTorch forward)
    x_rows = jnp.transpose(x_pad, (1, 0, 2)).reshape(T * BP, INP).astype(jnp.bfloat16)

    bmask = (jnp.arange(BP) < B).astype(jnp.float32)
    row_mask = jnp.tile(bmask, (T,)).reshape(T * BP, 1)

    wih = jnp.zeros((INP, 4 * H), jnp.float32).at[:IN, :].set(
        params["w_ih"].T).astype(jnp.bfloat16)
    whh = params["w_hh"].T.astype(jnp.bfloat16)
    bl = (params["b_ih"] + params["b_hh"]).reshape(1, 4 * H).astype(jnp.float32)

    # Banded conv1 weight: even windows in lanes [0, GP*C1), odd windows in
    # lanes [GP*C1, 2*GP*C1); MaxPool((1,2)) becomes max(first half, second half).
    w1 = params["conv1_w"][:, 0, 0, :].T.astype(jnp.float32)       # (K1, C1)
    w1_band = jnp.zeros((H, 2 * GP * C1), jnp.float32)
    for p in range(WP):
        r_e = S1 * (2 * p)
        r_o = S1 * (2 * p + 1)
        w1_band = w1_band.at[r_e:r_e + K1, p * C1:(p + 1) * C1].set(w1)
        w1_band = w1_band.at[r_o:r_o + K1,
                             GP * C1 + p * C1:GP * C1 + (p + 1) * C1].set(w1)
    w1_band = w1_band.astype(jnp.bfloat16)

    g1 = params["bn1_g"].reshape(1, C1).astype(jnp.float32)
    be1 = params["bn1_b"].reshape(1, C1).astype(jnp.float32)

    # Block-banded conv2 weight: pooled window group (w+kw) -> output window w.
    w2 = jnp.transpose(params["conv2_w"][:, :, 0, :], (2, 1, 0)).astype(
        jnp.float32)                                               # (K2, C1, C2)
    w2_band = jnp.zeros((GP * C1, W2 * C2), jnp.float32)
    for w in range(W2):
        for kw in range(K2):
            g = w + kw
            w2_band = w2_band.at[g * C1:(g + 1) * C1,
                                 w * C2:(w + 1) * C2].set(w2[kw])
    w2_band = w2_band.astype(jnp.bfloat16)

    g2 = params["bn2_g"].reshape(1, C2).astype(jnp.float32)
    be2 = params["bn2_b"].reshape(1, C2).astype(jnp.float32)
    # conv1_b / conv2_b are intentionally NOT passed: a conv bias immediately
    # followed by train-mode BatchNorm cancels exactly.

    wc = jnp.zeros((C2, CPAD), jnp.float32).at[:, :num_classes].set(
        params["fc_w"].T).astype(jnp.bfloat16)
    bc = jnp.zeros((1, CPAD), jnp.float32).at[:, :num_classes].set(
        params["fc_b"].reshape(1, num_classes))

    args = (x_rows, row_mask, wih, whh, bl, w1_band, g1, be1,
            w2_band, g2, be2, wc, bc)

    flops = int(2 * T * BP * INP * 4 * H            # LSTM input projection
                + 2 * T * BP * H * 4 * H            # LSTM recurrence
                + 2 * T * BP * H * 2 * GP * C1      # banded conv1
                + 2 * T * BP * GP * C1 * W2 * C2    # banded conv2
                + 2 * BP * C2 * CPAD)               # classifier
    transcendentals = int(8 * T * BP * H + 2 * (C1 + C2))
    bytes_accessed = int(sum(a.size * a.dtype.itemsize for a in args)
                         + BP * CPAD * 4)

    kernel = functools.partial(_lstmcnn_kernel, seq_len=T, batch_pad=BP,
                               real_batch=B, n_conv1_windows=W1)

    # Single grid point: batch=4 fits one TensorCore; a batch-parallel grid axis
    # (v7x second core) only pays off at much larger batch sizes.
    out = pl.pallas_call(
        kernel,
        out_shape=jax.ShapeDtypeStruct((BP, CPAD), jnp.float32),
        in_specs=[pl.BlockSpec(memory_space=pltpu.MemorySpace.VMEM)] * len(args),
        out_specs=pl.BlockSpec(memory_space=pltpu.MemorySpace.VMEM),
        compiler_params=pltpu.CompilerParams(
            vmem_limit_bytes=32 * 1024 * 1024),
        cost_estimate=pl.CostEstimate(flops=flops,
                                      transcendentals=transcendentals,
                                      bytes_accessed=bytes_accessed),
    )(*args)
    return out[:B, :num_classes]


def init_params(key, num_classes=6):
    """Parameters in PyTorch layout (LSTM gate order i, f, g, o)."""
    IN, H, C1, C2 = 9, 32, 64, 128
    ks = iter(jax.random.split(key, 14))

    def u(k, shape, bound):
        return jax.random.uniform(k, shape, jnp.float32, -bound, bound)

    p = {}
    b = 1.0 / (H ** 0.5)
    p["w_ih"] = u(next(ks), (4 * H, IN), b)
    p["w_hh"] = u(next(ks), (4 * H, H), b)
    p["b_ih"] = u(next(ks), (4 * H,), b)
    p["b_hh"] = u(next(ks), (4 * H,), b)
    b = 1.0 / (5.0 ** 0.5)
    p["conv1_w"] = u(next(ks), (C1, 1, 1, 5), b)
    p["conv1_b"] = u(next(ks), (C1,), b)       # used only by the reference
    p["bn1_g"] = 1.0 + 0.1 * jax.random.normal(next(ks), (C1,), jnp.float32)
    p["bn1_b"] = 0.1 * jax.random.normal(next(ks), (C1,), jnp.float32)
    b = 1.0 / ((C1 * 3) ** 0.5)
    p["conv2_w"] = u(next(ks), (C2, C1, 1, 3), b)
    p["conv2_b"] = u(next(ks), (C2,), b)       # used only by the reference
    p["bn2_g"] = 1.0 + 0.1 * jax.random.normal(next(ks), (C2,), jnp.float32)
    p["bn2_b"] = 0.1 * jax.random.normal(next(ks), (C2,), jnp.float32)
    b = 1.0 / (C2 ** 0.5)
    p["fc_w"] = u(next(ks), (num_classes, C2), b)
    p["fc_b"] = u(next(ks), (num_classes,), b)
    return p


def lstmcnn_reference(x, params):
    """Pure-JAX f32 reference mirroring the PyTorch forward pass exactly."""
    B, T, _ = x.shape
    H = 32
    wih, whh = params["w_ih"], params["w_hh"]
    bih, bhh = params["b_ih"], params["b_hh"]
    h = jnp.zeros((B, H), jnp.float32)
    c = jnp.zeros((B, H), jnp.float32)
    hs = []
    for t in range(T):
        gates = x[:, t, :] @ wih.T + bih + h @ whh.T + bhh
        i_g, f_g, g_g, o_g = jnp.split(gates, 4, axis=1)
        i_g, f_g, o_g = jax.nn.sigmoid(i_g), jax.nn.sigmoid(f_g), jax.nn.sigmoid(o_g)
        g_g = jnp.tanh(g_g)
        c = f_g * c + i_g * g_g
        h = o_g * jnp.tanh(c)
        hs.append(h)
    seq = jnp.stack(hs, axis=1)                          # (B, T, 32)

    w1 = params["conv1_w"][:, 0, 0, :]                   # (64, 5)
    c1 = jnp.stack([seq[:, :, 2 * w:2 * w + 5] @ w1.T + params["conv1_b"]
                    for w in range(14)], axis=2)         # (B, T, 14, 64)
    mean = jnp.mean(c1, axis=(0, 1, 2))
    var = jnp.var(c1, axis=(0, 1, 2))
    c1 = (c1 - mean) * jax.lax.rsqrt(var + BN_EPS) * params["bn1_g"] + params["bn1_b"]
    c1 = jnp.maximum(c1, 0.0)
    p1 = jnp.maximum(c1[:, :, 0::2, :], c1[:, :, 1::2, :])   # (B, T, 7, 64)

    w2 = params["conv2_w"][:, :, 0, :]                   # (128, 64, 3)
    c2 = jnp.stack(
        [sum(p1[:, :, w + kw, :] @ w2[:, :, kw].T for kw in range(3))
         + params["conv2_b"] for w in range(5)], axis=2)  # (B, T, 5, 128)
    mean = jnp.mean(c2, axis=(0, 1, 2))
    var = jnp.var(c2, axis=(0, 1, 2))
    c2 = (c2 - mean) * jax.lax.rsqrt(var + BN_EPS) * params["bn2_g"] + params["bn2_b"]
    c2 = jnp.maximum(c2, 0.0)
    pooled = jnp.mean(c2, axis=(1, 2))                   # (B, 128)
    return pooled @ params["fc_w"].T + params["fc_b"]


if __name__ == "__main__":
    key = jax.random.PRNGKey(0)
    pkey, xkey = jax.random.split(key)
    params = init_params(pkey, num_classes=6)

    # small deterministic input: batch=4, seq_len=8, 9 features (LSTM input size)
    B, T, F = 4, 8, 9
    x = jax.random.normal(xkey, (B, T, F), dtype=jnp.float32)

    fwd = jax.jit(lstmcnn_forward)
    out = jax.block_until_ready(fwd(x, params))

    ref = lstmcnn_reference(x, params)
    assert out.shape == (B, 6), out.shape
    err = float(jnp.max(jnp.abs(out - ref)))
    # bf16 MXU operands throughout (LSTM / conv / classifier, per the perf
    # review) plus the EUP approximate-reciprocal sigmoid shift the logits by a
    # few percent relative to the all-f32 reference, hence the tolerance.
    assert jnp.allclose(out, ref, atol=1e-1, rtol=1e-1), err
    print("KERNEL_OK")
</pallas_src>

<mosaic_0001>
module attributes {stable_mosaic.version = 11 : i64} {
  func.func @_lstmcnn_kernel(%arg0: memref<64x16xbf16, #tpu.memory_space<vmem>>, %arg1: memref<64x1xf32, #tpu.memory_space<vmem>>, %arg2: memref<16x128xbf16, #tpu.memory_space<vmem>>, %arg3: memref<32x128xbf16, #tpu.memory_space<vmem>>, %arg4: memref<1x128xf32, #tpu.memory_space<vmem>>, %arg5: memref<32x1024xbf16, #tpu.memory_space<vmem>>, %arg6: memref<1x64xf32, #tpu.memory_space<vmem>>, %arg7: memref<1x64xf32, #tpu.memory_space<vmem>>, %arg8: memref<512x640xbf16, #tpu.memory_space<vmem>>, %arg9: memref<1x128xf32, #tpu.memory_space<vmem>>, %arg10: memref<1x128xf32, #tpu.memory_space<vmem>>, %arg11: memref<128x128xbf16, #tpu.memory_space<vmem>>, %arg12: memref<1x128xf32, #tpu.memory_space<vmem>>, %arg13: memref<8x128xf32, #tpu.memory_space<vmem>>) attributes {dimension_semantics = [], scalar_prefetch = 0 : i64, scratch_operands = 0 : i64, tpu.core_type = #tpu.core_type<tc>} {
    %c0 = arith.constant 0 : index
    %c0_0 = arith.constant 0 : index
    %0 = vector.load %arg1[%c0, %c0_0] : memref<64x1xf32, #tpu.memory_space<vmem>>, vector<64x1xf32>
    %c0_1 = arith.constant 0 : index
    %c0_2 = arith.constant 0 : index
    %1 = vector.load %arg0[%c0_1, %c0_2] : memref<64x16xbf16, #tpu.memory_space<vmem>>, vector<64x16xbf16>
    %c0_3 = arith.constant 0 : index
    %c0_4 = arith.constant 0 : index
    %2 = vector.load %arg2[%c0_3, %c0_4] : memref<16x128xbf16, #tpu.memory_space<vmem>>, vector<16x128xbf16>
    %cst = arith.constant dense<0.000000e+00> : vector<64x128xf32>
    %3 = tpu.matmul %1, %2, %cst {dimension_numbers = #tpu.dot_dimension_numbers<[1], [0], [0], [1], [0, 0, 1, 1], [], []>} : vector<64x16xbf16>, vector<16x128xbf16>, vector<64x128xf32> -> vector<64x128xf32>
    %c0_5 = arith.constant 0 : index
    %c0_6 = arith.constant 0 : index
    %4 = vector.load %arg4[%c0_5, %c0_6] : memref<1x128xf32, #tpu.memory_space<vmem>>, vector<1x128xf32>
    %5 = vector.broadcast %4 : vector<1x128xf32> to vector<64x128xf32>
    %6 = arith.addf %3, %5 : vector<64x128xf32>
    %c0_7 = arith.constant 0 : index
    %c0_8 = arith.constant 0 : index
    %7 = vector.load %arg3[%c0_7, %c0_8] : memref<32x128xbf16, #tpu.memory_space<vmem>>, vector<32x128xbf16>
    %cst_9 = arith.constant 0.000000e+00 : f32
    %8 = vector.broadcast %cst_9 : f32 to vector<8x32xf32>
    %cst_10 = arith.constant 0.000000e+00 : f32
    %9 = vector.broadcast %cst_10 : f32 to vector<8x32xf32>
    %10 = vector.extract_strided_slice %6 {offsets = [0, 0], sizes = [8, 128], strides = [1, 1]} : vector<64x128xf32> to vector<8x128xf32>
    %11 = arith.truncf %8 : vector<8x32xf32> to vector<8x32xbf16>
    %cst_11 = arith.constant dense<0.000000e+00> : vector<8x128xf32>
    %12 = tpu.matmul %11, %7, %cst_11 {dimension_numbers = #tpu.dot_dimension_numbers<[1], [0], [0], [1], [0, 0, 1, 1], [], []>} : vector<8x32xbf16>, vector<32x128xbf16>, vector<8x128xf32> -> vector<8x128xf32>
    %13 = arith.addf %10, %12 : vector<8x128xf32>
    %14 = vector.extract_strided_slice %13 {offsets = [0, 0], sizes = [8, 32], strides = [1, 1]} : vector<8x128xf32> to vector<8x32xf32>
    %cst_12 = arith.constant 0.000000e+00 : f32
    %15 = vector.broadcast %cst_12 : f32 to vector<8x32xf32>
    %16 = arith.subf %15, %14 : vector<8x32xf32>
    %17 = math.exp %16 : vector<8x32xf32>
    %cst_13 = arith.constant 1.000000e+00 : f32
    %18 = vector.broadcast %cst_13 : f32 to vector<8x32xf32>
    %19 = arith.addf %18, %17 : vector<8x32xf32>
    %20 = tpu.reciprocal %19 {approx = true} : vector<8x32xf32> -> vector<8x32xf32>
    %21 = vector.extract_strided_slice %13 {offsets = [0, 32], sizes = [8, 32], strides = [1, 1]} : vector<8x128xf32> to vector<8x32xf32>
    %cst_14 = arith.constant 0.000000e+00 : f32
    %22 = vector.broadcast %cst_14 : f32 to vector<8x32xf32>
    %23 = arith.subf %22, %21 : vector<8x32xf32>
    %24 = math.exp %23 : vector<8x32xf32>
    %cst_15 = arith.constant 1.000000e+00 : f32
    %25 = vector.broadcast %cst_15 : f32 to vector<8x32xf32>
    %26 = arith.addf %25, %24 : vector<8x32xf32>
    %27 = tpu.reciprocal %26 {approx = true} : vector<8x32xf32> -> vector<8x32xf32>
    %28 = vector.extract_strided_slice %13 {offsets = [0, 64], sizes = [8, 32], strides = [1, 1]} : vector<8x128xf32> to vector<8x32xf32>
    %29 = math.tanh %28 : vector<8x32xf32>
    %30 = vector.extract_strided_slice %13 {offsets = [0, 96], sizes = [8, 32], strides = [1, 1]} : vector<8x128xf32> to vector<8x32xf32>
    %cst_16 = arith.constant 0.000000e+00 : f32
    %31 = vector.broadcast %cst_16 : f32 to vector<8x32xf32>
    %32 = arith.subf %31, %30 : vector<8x32xf32>
    %33 = math.exp %32 : vector<8x32xf32>
    %cst_17 = arith.constant 1.000000e+00 : f32
    %34 = vector.broadcast %cst_17 : f32 to vector<8x32xf32>
    %35 = arith.addf %34, %33 : vector<8x32xf32>
    %36 = tpu.reciprocal %35 {approx = true} : vector<8x32xf32> -> vector<8x32xf32>
    %37 = arith.mulf %27, %9 : vector<8x32xf32>
    %38 = arith.mulf %20, %29 : vector<8x32xf32>
    %39 = arith.addf %37, %38 : vector<8x32xf32>
    %40 = math.tanh %39 : vector<8x32xf32>
    %41 = arith.mulf %36, %40 : vector<8x32xf32>
    %42 = vector.extract_strided_slice %6 {offsets = [8, 0], sizes = [8, 128], strides = [1, 1]} : vector<64x128xf32> to vector<8x128xf32>
    %43 = arith.truncf %41 : vector<8x32xf32> to vector<8x32xbf16>
    %cst_18 = arith.constant dense<0.000000e+00> : vector<8x128xf32>
    %44 = tpu.matmul %43, %7, %cst_18 {dimension_numbers = #tpu.dot_dimension_numbers<[1], [0], [0], [1], [0, 0, 1, 1], [], []>} : vector<8x32xbf16>, vector<32x128xbf16>, vector<8x128xf32> -> vector<8x128xf32>
    %45 = arith.addf %42, %44 : vector<8x128xf32>
    %46 = vector.extract_strided_slice %45 {offsets = [0, 0], sizes = [8, 32], strides = [1, 1]} : vector<8x128xf32> to vector<8x32xf32>
    %cst_19 = arith.constant 0.000000e+00 : f32
    %47 = vector.broadcast %cst_19 : f32 to vector<8x32xf32>
    %48 = arith.subf %47, %46 : vector<8x32xf32>
    %49 = math.exp %48 : vector<8x32xf32>
    %cst_20 = arith.constant 1.000000e+00 : f32
    %50 = vector.broadcast %cst_20 : f32 to vector<8x32xf32>
    %51 = arith.addf %50, %49 : vector<8x32xf32>
    %52 = tpu.reciprocal %51 {approx = true} : vector<8x32xf32> -> vector<8x32xf32>
    %53 = vector.extract_strided_slice %45 {offsets = [0, 32], sizes = [8, 32], strides = [1, 1]} : vector<8x128xf32> to vector<8x32xf32>
    %cst_21 = arith.constant 0.000000e+00 : f32
    %54 = vector.broadcast %cst_21 : f32 to vector<8x32xf32>
    %55 = arith.subf %54, %53 : vector<8x32xf32>
    %56 = math.exp %55 : vector<8x32xf32>
    %cst_22 = arith.constant 1.000000e+00 : f32
    %57 = vector.broadcast %cst_22 : f32 to vector<8x32xf32>
    %58 = arith.addf %57, %56 : vector<8x32xf32>
    %59 = tpu.reciprocal %58 {approx = true} : vector<8x32xf32> -> vector<8x32xf32>
    %60 = vector.extract_strided_slice %45 {offsets = [0, 64], sizes = [8, 32], strides = [1, 1]} : vector<8x128xf32> to vector<8x32xf32>
    %61 = math.tanh %60 : vector<8x32xf32>
    %62 = vector.extract_strided_slice %45 {offsets = [0, 96], sizes = [8, 32], strides = [1, 1]} : vector<8x128xf32> to vector<8x32xf32>
    %cst_23 = arith.constant 0.000000e+00 : f32
    %63 = vector.broadcast %cst_23 : f32 to vector<8x32xf32>
    %64 = arith.subf %63, %62 : vector<8x32xf32>
    %65 = math.exp %64 : vector<8x32xf32>
    %cst_24 = arith.constant 1.000000e+00 : f32
    %66 = vector.broadcast %cst_24 : f32 to vector<8x32xf32>
    %67 = arith.addf %66, %65 : vector<8x32xf32>
    %68 = tpu.reciprocal %67 {approx = true} : vector<8x32xf32> -> vector<8x32xf32>
    %69 = arith.mulf %59, %39 : vector<8x32xf32>
    %70 = arith.mulf %52, %61 : vector<8x32xf32>
    %71 = arith.addf %69, %70 : vector<8x32xf32>
    %72 = math.tanh %71 : vector<8x32xf32>
    %73 = arith.mulf %68, %72 : vector<8x32xf32>
    %74 = vector.extract_strided_slice %6 {offsets = [16, 0], sizes = [8, 128], strides = [1, 1]} : vector<64x128xf32> to vector<8x128xf32>
    %75 = arith.truncf %73 : vector<8x32xf32> to vector<8x32xbf16>
    %cst_25 = arith.constant dense<0.000000e+00> : vector<8x128xf32>
    %76 = tpu.matmul %75, %7, %cst_25 {dimension_numbers = #tpu.dot_dimension_numbers<[1], [0], [0], [1], [0, 0, 1, 1], [], []>} : vector<8x32xbf16>, vector<32x128xbf16>, vector<8x128xf32> -> vector<8x128xf32>
    %77 = arith.addf %74, %76 : vector<8x128xf32>
    %78 = vector.extract_strided_slice %77 {offsets = [0, 0], sizes = [8, 32], strides = [1, 1]} : vector<8x128xf32> to vector<8x32xf32>
    %cst_26 = arith.constant 0.000000e+00 : f32
    %79 = vector.broadcast %cst_26 : f32 to vector<8x32xf32>
    %80 = arith.subf %79, %78 : vector<8x32xf32>
    %81 = math.exp %80 : vector<8x32xf32>
    %cst_27 = arith.constant 1.000000e+00 : f32
    %82 = vector.broadcast %cst_27 : f32 to vector<8x32xf32>
    %83 = arith.addf %82, %81 : vector<8x32xf32>
    %84 = tpu.reciprocal %83 {approx = true} : vector<8x32xf32> -> vector<8x32xf32>
    %85 = vector.extract_strided_slice %77 {offsets = [0, 32], sizes = [8, 32], strides = [1, 1]} : vector<8x128xf32> to vector<8x32xf32>
    %cst_28 = arith.constant 0.000000e+00 : f32
    %86 = vector.broadcast %cst_28 : f32 to vector<8x32xf32>
    %87 = arith.subf %86, %85 : vector<8x32xf32>
    %88 = math.exp %87 : vector<8x32xf32>
    %cst_29 = arith.constant 1.000000e+00 : f32
    %89 = vector.broadcast %cst_29 : f32 to vector<8x32xf32>
    %90 = arith.addf %89, %88 : vector<8x32xf32>
    %91 = tpu.reciprocal %90 {approx = true} : vector<8x32xf32> -> vector<8x32xf32>
    %92 = vector.extract_strided_slice %77 {offsets = [0, 64], sizes = [8, 32], strides = [1, 1]} : vector<8x128xf32> to vector<8x32xf32>
    %93 = math.tanh %92 : vector<8x32xf32>
    %94 = vector.extract_strided_slice %77 {offsets = [0, 96], sizes = [8, 32], strides = [1, 1]} : vector<8x128xf32> to vector<8x32xf32>
    %cst_30 = arith.constant 0.000000e+00 : f32
    %95 = vector.broadcast %cst_30 : f32 to vector<8x32xf32>
    %96 = arith.subf %95, %94 : vector<8x32xf32>
    %97 = math.exp %96 : vector<8x32xf32>
    %cst_31 = arith.constant 1.000000e+00 : f32
    %98 = vector.broadcast %cst_31 : f32 to vector<8x32xf32>
    %99 = arith.addf %98, %97 : vector<8x32xf32>
    %100 = tpu.reciprocal %99 {approx = true} : vector<8x32xf32> -> vector<8x32xf32>
    %101 = arith.mulf %91, %71 : vector<8x32xf32>
    %102 = arith.mulf %84, %93 : vector<8x32xf32>
    %103 = arith.addf %101, %102 : vector<8x32xf32>
    %104 = math.tanh %103 : vector<8x32xf32>
    %105 = arith.mulf %100, %104 : vector<8x32xf32>
    %106 = vector.extract_strided_slice %6 {offsets = [24, 0], sizes = [8, 128], strides = [1, 1]} : vector<64x128xf32> to vector<8x128xf32>
    %107 = arith.truncf %105 : vector<8x32xf32> to vector<8x32xbf16>
    %cst_32 = arith.constant dense<0.000000e+00> : vector<8x128xf32>
    %108 = tpu.matmul %107, %7, %cst_32 {dimension_numbers = #tpu.dot_dimension_numbers<[1], [0], [0], [1], [0, 0, 1, 1], [], []>} : vector<8x32xbf16>, vector<32x128xbf16>, vector<8x128xf32> -> vector<8x128xf32>
    %109 = arith.addf %106, %108 : vector<8x128xf32>
    %110 = vector.extract_strided_slice %109 {offsets = [0, 0], sizes = [8, 32], strides = [1, 1]} : vector<8x128xf32> to vector<8x32xf32>
    %cst_33 = arith.constant 0.000000e+00 : f32
    %111 = vector.broadcast %cst_33 : f32 to vector<8x32xf32>
    %112 = arith.subf %111, %110 : vector<8x32xf32>
    %113 = math.exp %112 : vector<8x32xf32>
    %cst_34 = arith.constant 1.000000e+00 : f32
    %114 = vector.broadcast %cst_34 : f32 to vector<8x32xf32>
    %115 = arith.addf %114, %113 : vector<8x32xf32>
    %116 = tpu.reciprocal %115 {approx = true} : vector<8x32xf32> -> vector<8x32xf32>
    %117 = vector.extract_strided_slice %109 {offsets = [0, 32], sizes = [8, 32], strides = [1, 1]} : vector<8x128xf32> to vector<8x32xf32>
    %cst_35 = arith.constant 0.000000e+00 : f32
    %118 = vector.broadcast %cst_35 : f32 to vector<8x32xf32>
    %119 = arith.subf %118, %117 : vector<8x32xf32>
    %120 = math.exp %119 : vector<8x32xf32>
    %cst_36 = arith.constant 1.000000e+00 : f32
    %121 = vector.broadcast %cst_36 : f32 to vector<8x32xf32>
    %122 = arith.addf %121, %120 : vector<8x32xf32>
    %123 = tpu.reciprocal %122 {approx = true} : vector<8x32xf32> -> vector<8x32xf32>
    %124 = vector.extract_strided_slice %109 {offsets = [0, 64], sizes = [8, 32], strides = [1, 1]} : vector<8x128xf32> to vector<8x32xf32>
    %125 = math.tanh %124 : vector<8x32xf32>
    %126 = vector.extract_strided_slice %109 {offsets = [0, 96], sizes = [8, 32], strides = [1, 1]} : vector<8x128xf32> to vector<8x32xf32>
    %cst_37 = arith.constant 0.000000e+00 : f32
    %127 = vector.broadcast %cst_37 : f32 to vector<8x32xf32>
    %128 = arith.subf %127, %126 : vector<8x32xf32>
    %129 = math.exp %128 : vector<8x32xf32>
    %cst_38 = arith.constant 1.000000e+00 : f32
    %130 = vector.broadcast %cst_38 : f32 to vector<8x32xf32>
    %131 = arith.addf %130, %129 : vector<8x32xf32>
    %132 = tpu.reciprocal %131 {approx = true} : vector<8x32xf32> -> vector<8x32xf32>
    %133 = arith.mulf %123, %103 : vector<8x32xf32>
    %134 = arith.mulf %116, %125 : vector<8x32xf32>
    %135 = arith.addf %133, %134 : vector<8x32xf32>
    %136 = math.tanh %135 : vector<8x32xf32>
    %137 = arith.mulf %132, %136 : vector<8x32xf32>
    %138 = vector.extract_strided_slice %6 {offsets = [32, 0], sizes = [8, 128], strides = [1, 1]} : vector<64x128xf32> to vector<8x128xf32>
    %139 = arith.truncf %137 : vector<8x32xf32> to vector<8x32xbf16>
    %cst_39 = arith.constant dense<0.000000e+00> : vector<8x128xf32>
    %140 = tpu.matmul %139, %7, %cst_39 {dimension_numbers = #tpu.dot_dimension_numbers<[1], [0], [0], [1], [0, 0, 1, 1], [], []>} : vector<8x32xbf16>, vector<32x128xbf16>, vector<8x128xf32> -> vector<8x128xf32>
    %141 = arith.addf %138, %140 : vector<8x128xf32>
    %142 = vector.extract_strided_slice %141 {offsets = [0, 0], sizes = [8, 32], strides = [1, 1]} : vector<8x128xf32> to vector<8x32xf32>
    %cst_40 = arith.constant 0.000000e+00 : f32
    %143 = vector.broadcast %cst_40 : f32 to vector<8x32xf32>
    %144 = arith.subf %143, %142 : vector<8x32xf32>
    %145 = math.exp %144 : vector<8x32xf32>
    %cst_41 = arith.constant 1.000000e+00 : f32
    %146 = vector.broadcast %cst_41 : f32 to vector<8x32xf32>
    %147 = arith.addf %146, %145 : vector<8x32xf32>
    %148 = tpu.reciprocal %147 {approx = true} : vector<8x32xf32> -> vector<8x32xf32>
    %149 = vector.extract_strided_slice %141 {offsets = [0, 32], sizes = [8, 32], strides = [1, 1]} : vector<8x128xf32> to vector<8x32xf32>
    %cst_42 = arith.constant 0.000000e+00 : f32
    %150 = vector.broadcast %cst_42 : f32 to vector<8x32xf32>
    %151 = arith.subf %150, %149 : vector<8x32xf32>
    %152 = math.exp %151 : vector<8x32xf32>
    %cst_43 = arith.constant 1.000000e+00 : f32
    %153 = vector.broadcast %cst_43 : f32 to vector<8x32xf32>
    %154 = arith.addf %153, %152 : vector<8x32xf32>
    %155 = tpu.reciprocal %154 {approx = true} : vector<8x32xf32> -> vector<8x32xf32>
    %156 = vector.extract_strided_slice %141 {offsets = [0, 64], sizes = [8, 32], strides = [1, 1]} : vector<8x128xf32> to vector<8x32xf32>
    %157 = math.tanh %156 : vector<8x32xf32>
    %158 = vector.extract_strided_slice %141 {offsets = [0, 96], sizes = [8, 32], strides = [1, 1]} : vector<8x128xf32> to vector<8x32xf32>
    %cst_44 = arith.constant 0.000000e+00 : f32
    %159 = vector.broadcast %cst_44 : f32 to vector<8x32xf32>
    %160 = arith.subf %159, %158 : vector<8x32xf32>
    %161 = math.exp %160 : vector<8x32xf32>
    %cst_45 = arith.constant 1.000000e+00 : f32
    %162 = vector.broadcast %cst_45 : f32 to vector<8x32xf32>
    %163 = arith.addf %162, %161 : vector<8x32xf32>
    %164 = tpu.reciprocal %163 {approx = true} : vector<8x32xf32> -> vector<8x32xf32>
    %165 = arith.mulf %155, %135 : vector<8x32xf32>
    %166 = arith.mulf %148, %157 : vector<8x32xf32>
    %167 = arith.addf %165, %166 : vector<8x32xf32>
    %168 = math.tanh %167 : vector<8x32xf32>
    %169 = arith.mulf %164, %168 : vector<8x32xf32>
    %170 = vector.extract_strided_slice %6 {offsets = [40, 0], sizes = [8, 128], strides = [1, 1]} : vector<64x128xf32> to vector<8x128xf32>
    %171 = arith.truncf %169 : vector<8x32xf32> to vector<8x32xbf16>
    %cst_46 = arith.constant dense<0.000000e+00> : vector<8x128xf32>
    %172 = tpu.matmul %171, %7, %cst_46 {dimension_numbers = #tpu.dot_dimension_numbers<[1], [0], [0], [1], [0, 0, 1, 1], [], []>} : vector<8x32xbf16>, vector<32x128xbf16>, vector<8x128xf32> -> vector<8x128xf32>
    %173 = arith.addf %170, %172 : vector<8x128xf32>
    %174 = vector.extract_strided_slice %173 {offsets = [0, 0], sizes = [8, 32], strides = [1, 1]} : vector<8x128xf32> to vector<8x32xf32>
    %cst_47 = arith.constant 0.000000e+00 : f32
    %175 = vector.broadcast %cst_47 : f32 to vector<8x32xf32>
    %176 = arith.subf %175, %174 : vector<8x32xf32>
    %177 = math.exp %176 : vector<8x32xf32>
    %cst_48 = arith.constant 1.000000e+00 : f32
    %178 = vector.broadcast %cst_48 : f32 to vector<8x32xf32>
    %179 = arith.addf %178, %177 : vector<8x32xf32>
    %180 = tpu.reciprocal %179 {approx = true} : vector<8x32xf32> -> vector<8x32xf32>
    %181 = vector.extract_strided_slice %173 {offsets = [0, 32], sizes = [8, 32], strides = [1, 1]} : vector<8x128xf32> to vector<8x32xf32>
    %cst_49 = arith.constant 0.000000e+00 : f32
    %182 = vector.broadcast %cst_49 : f32 to vector<8x32xf32>
    %183 = arith.subf %182, %181 : vector<8x32xf32>
    %184 = math.exp %183 : vector<8x32xf32>
    %cst_50 = arith.constant 1.000000e+00 : f32
    %185 = vector.broadcast %cst_50 : f32 to vector<8x32xf32>
    %186 = arith.addf %185, %184 : vector<8x32xf32>
    %187 = tpu.reciprocal %186 {approx = true} : vector<8x32xf32> -> vector<8x32xf32>
    %188 = vector.extract_strided_slice %173 {offsets = [0, 64], sizes = [8, 32], strides = [1, 1]} : vector<8x128xf32> to vector<8x32xf32>
    %189 = math.tanh %188 : vector<8x32xf32>
    %190 = vector.extract_strided_slice %173 {offsets = [0, 96], sizes = [8, 32], strides = [1, 1]} : vector<8x128xf32> to vector<8x32xf32>
    %cst_51 = arith.constant 0.000000e+00 : f32
    %191 = vector.broadcast %cst_51 : f32 to vector<8x32xf32>
    %192 = arith.subf %191, %190 : vector<8x32xf32>
    %193 = math.exp %192 : vector<8x32xf32>
    %cst_52 = arith.constant 1.000000e+00 : f32
    %194 = vector.broadcast %cst_52 : f32 to vector<8x32xf32>
    %195 = arith.addf %194, %193 : vector<8x32xf32>
    %196 = tpu.reciprocal %195 {approx = true} : vector<8x32xf32> -> vector<8x32xf32>
    %197 = arith.mulf %187, %167 : vector<8x32xf32>
    %198 = arith.mulf %180, %189 : vector<8x32xf32>
    %199 = arith.addf %197, %198 : vector<8x32xf32>
    %200 = math.tanh %199 : vector<8x32xf32>
    %201 = arith.mulf %196, %200 : vector<8x32xf32>
    %202 = vector.extract_strided_slice %6 {offsets = [48, 0], sizes = [8, 128], strides = [1, 1]} : vector<64x128xf32> to vector<8x128xf32>
    %203 = arith.truncf %201 : vector<8x32xf32> to vector<8x32xbf16>
    %cst_53 = arith.constant dense<0.000000e+00> : vector<8x128xf32>
    %204 = tpu.matmul %203, %7, %cst_53 {dimension_numbers = #tpu.dot_dimension_numbers<[1], [0], [0], [1], [0, 0, 1, 1], [], []>} : vector<8x32xbf16>, vector<32x128xbf16>, vector<8x128xf32> -> vector<8x128xf32>
    %205 = arith.addf %202, %204 : vector<8x128xf32>
    %206 = vector.extract_strided_slice %205 {offsets = [0, 0], sizes = [8, 32], strides = [1, 1]} : vector<8x128xf32> to vector<8x32xf32>
    %cst_54 = arith.constant 0.000000e+00 : f32
    %207 = vector.broadcast %cst_54 : f32 to vector<8x32xf32>
    %208 = arith.subf %207, %206 : vector<8x32xf32>
    %209 = math.exp %208 : vector<8x32xf32>
    %cst_55 = arith.constant 1.000000e+00 : f32
    %210 = vector.broadcast %cst_55 : f32 to vector<8x32xf32>
    %211 = arith.addf %210, %209 : vector<8x32xf32>
    %212 = tpu.reciprocal %211 {approx = true} : vector<8x32xf32> -> vector<8x32xf32>
    %213 = vector.extract_strided_slice %205 {offsets = [0, 32], sizes = [8, 32], strides = [1, 1]} : vector<8x128xf32> to vector<8x32xf32>
    %cst_56 = arith.constant 0.000000e+00 : f32
    %214 = vector.broadcast %cst_56 : f32 to vector<8x32xf32>
    %215 = arith.subf %214, %213 : vector<8x32xf32>
    %216 = math.exp %215 : vector<8x32xf32>
    %cst_57 = arith.constant 1.000000e+00 : f32
    %217 = vector.broadcast %cst_57 : f32 to vector<8x32xf32>
    %218 = arith.addf %217, %216 : vector<8x32xf32>
    %219 = tpu.reciprocal %218 {approx = true} : vector<8x32xf32> -> vector<8x32xf32>
    %220 = vector.extract_strided_slice %205 {offsets = [0, 64], sizes = [8, 32], strides = [1, 1]} : vector<8x128xf32> to vector<8x32xf32>
    %221 = math.tanh %220 : vector<8x32xf32>
    %222 = vector.extract_strided_slice %205 {offsets = [0, 96], sizes = [8, 32], strides = [1, 1]} : vector<8x128xf32> to vector<8x32xf32>
    %cst_58 = arith.constant 0.000000e+00 : f32
    %223 = vector.broadcast %cst_58 : f32 to vector<8x32xf32>
    %224 = arith.subf %223, %222 : vector<8x32xf32>
    %225 = math.exp %224 : vector<8x32xf32>
    %cst_59 = arith.constant 1.000000e+00 : f32
    %226 = vector.broadcast %cst_59 : f32 to vector<8x32xf32>
    %227 = arith.addf %226, %225 : vector<8x32xf32>
    %228 = tpu.reciprocal %227 {approx = true} : vector<8x32xf32> -> vector<8x32xf32>
    %229 = arith.mulf %219, %199 : vector<8x32xf32>
    %230 = arith.mulf %212, %221 : vector<8x32xf32>
    %231 = arith.addf %229, %230 : vector<8x32xf32>
    %232 = math.tanh %231 : vector<8x32xf32>
    %233 = arith.mulf %228, %232 : vector<8x32xf32>
    %234 = vector.extract_strided_slice %6 {offsets = [56, 0], sizes = [8, 128], strides = [1, 1]} : vector<64x128xf32> to vector<8x128xf32>
    %235 = arith.truncf %233 : vector<8x32xf32> to vector<8x32xbf16>
    %cst_60 = arith.constant dense<0.000000e+00> : vector<8x128xf32>
    %236 = tpu.matmul %235, %7, %cst_60 {dimension_numbers = #tpu.dot_dimension_numbers<[1], [0], [0], [1], [0, 0, 1, 1], [], []>} : vector<8x32xbf16>, vector<32x128xbf16>, vector<8x128xf32> -> vector<8x128xf32>
    %237 = arith.addf %234, %236 : vector<8x128xf32>
    %238 = vector.extract_strided_slice %237 {offsets = [0, 0], sizes = [8, 32], strides = [1, 1]} : vector<8x128xf32> to vector<8x32xf32>
    %cst_61 = arith.constant 0.000000e+00 : f32
    %239 = vector.broadcast %cst_61 : f32 to vector<8x32xf32>
    %240 = arith.subf %239, %238 : vector<8x32xf32>
    %241 = math.exp %240 : vector<8x32xf32>
    %cst_62 = arith.constant 1.000000e+00 : f32
    %242 = vector.broadcast %cst_62 : f32 to vector<8x32xf32>
    %243 = arith.addf %242, %241 : vector<8x32xf32>
    %244 = tpu.reciprocal %243 {approx = true} : vector<8x32xf32> -> vector<8x32xf32>
    %245 = vector.extract_strided_slice %237 {offsets = [0, 32], sizes = [8, 32], strides = [1, 1]} : vector<8x128xf32> to vector<8x32xf32>
    %cst_63 = arith.constant 0.000000e+00 : f32
    %246 = vector.broadcast %cst_63 : f32 to vector<8x32xf32>
    %247 = arith.subf %246, %245 : vector<8x32xf32>
    %248 = math.exp %247 : vector<8x32xf32>
    %cst_64 = arith.constant 1.000000e+00 : f32
    %249 = vector.broadcast %cst_64 : f32 to vector<8x32xf32>
    %250 = arith.addf %249, %248 : vector<8x32xf32>
    %251 = tpu.reciprocal %250 {approx = true} : vector<8x32xf32> -> vector<8x32xf32>
    %252 = vector.extract_strided_slice %237 {offsets = [0, 64], sizes = [8, 32], strides = [1, 1]} : vector<8x128xf32> to vector<8x32xf32>
    %253 = math.tanh %252 : vector<8x32xf32>
    %254 = vector.extract_strided_slice %237 {offsets = [0, 96], sizes = [8, 32], strides = [1, 1]} : vector<8x128xf32> to vector<8x32xf32>
    %cst_65 = arith.constant 0.000000e+00 : f32
    %255 = vector.broadcast %cst_65 : f32 to vector<8x32xf32>
    %256 = arith.subf %255, %254 : vector<8x32xf32>
    %257 = math.exp %256 : vector<8x32xf32>
    %cst_66 = arith.constant 1.000000e+00 : f32
    %258 = vector.broadcast %cst_66 : f32 to vector<8x32xf32>
    %259 = arith.addf %258, %257 : vector<8x32xf32>
    %260 = tpu.reciprocal %259 {approx = true} : vector<8x32xf32> -> vector<8x32xf32>
    %261 = arith.mulf %251, %231 : vector<8x32xf32>
    %262 = arith.mulf %244, %253 : vector<8x32xf32>
    %263 = arith.addf %261, %262 : vector<8x32xf32>
    %264 = math.tanh %263 : vector<8x32xf32>
    %265 = arith.mulf %260, %264 : vector<8x32xf32>
    %266 = tpu.concatenate %41, %73, %105, %137, %169, %201, %233, %265 in 0 : vector<8x32xf32>, vector<8x32xf32>, vector<8x32xf32>, vector<8x32xf32>, vector<8x32xf32>, vector<8x32xf32>, vector<8x32xf32>, vector<8x32xf32> -> vector<64x32xf32>
    %267 = vector.broadcast %0 : vector<64x1xf32> to vector<64x32xf32>
    %268 = arith.mulf %266, %267 : vector<64x32xf32>
    %269 = arith.truncf %268 : vector<64x32xf32> to vector<64x32xbf16>
    %c0_67 = arith.constant 0 : index
    %c0_68 = arith.constant 0 : index
    %270 = vector.load %arg5[%c0_67, %c0_68] : memref<32x1024xbf16, #tpu.memory_space<vmem>>, vector<32x1024xbf16>
    %cst_69 = arith.constant dense<0.000000e+00> : vector<64x1024xf32>
    %271 = tpu.matmul %269, %270, %cst_69 {dimension_numbers = #tpu.dot_dimension_numbers<[1], [0], [0], [1], [0, 0, 1, 1], [], []>} : vector<64x32xbf16>, vector<32x1024xbf16>, vector<64x1024xf32> -> vector<64x1024xf32>
    %cst_70 = arith.constant dense<0.000000e+00> : vector<1024xf32>
    %272 = vector.multi_reduction <add>, %271, %cst_70 [0] : vector<64x1024xf32> to vector<1024xf32>
    %273 = vector.shape_cast %272 : vector<1024xf32> to vector<1x1024xf32>
    %274 = vector.extract_strided_slice %273 {offsets = [0, 0], sizes = [1, 512], strides = [1, 1]} : vector<1x1024xf32> to vector<1x512xf32>
    %275 = vector.extract_strided_slice %273 {offsets = [0, 512], sizes = [1, 512], strides = [1, 1]} : vector<1x1024xf32> to vector<1x512xf32>
    %276 = arith.addf %274, %275 : vector<1x512xf32>
    %277 = vector.extract_strided_slice %276 {offsets = [0, 0], sizes = [1, 256], strides = [1, 1]} : vector<1x512xf32> to vector<1x256xf32>
    %278 = vector.extract_strided_slice %276 {offsets = [0, 256], sizes = [1, 256], strides = [1, 1]} : vector<1x512xf32> to vector<1x256xf32>
    %279 = arith.addf %277, %278 : vector<1x256xf32>
    %280 = vector.extract_strided_slice %279 {offsets = [0, 0], sizes = [1, 128], strides = [1, 1]} : vector<1x256xf32> to vector<1x128xf32>
    %281 = vector.extract_strided_slice %279 {offsets = [0, 128], sizes = [1, 128], strides = [1, 1]} : vector<1x256xf32> to vector<1x128xf32>
    %282 = arith.addf %280, %281 : vector<1x128xf32>
    %283 = vector.extract_strided_slice %282 {offsets = [0, 0], sizes = [1, 64], strides = [1, 1]} : vector<1x128xf32> to vector<1x64xf32>
    %284 = vector.extract_strided_slice %282 {offsets = [0, 64], sizes = [1, 64], strides = [1, 1]} : vector<1x128xf32> to vector<1x64xf32>
    %285 = arith.addf %283, %284 : vector<1x64xf32>
    %cst_71 = arith.constant 0.00223214296 : f32
    %286 = vector.broadcast %cst_71 : f32 to vector<1x64xf32>
    %287 = arith.mulf %285, %286 : vector<1x64xf32>
    %cst_72 = arith.constant 0.000000e+00 : f32
    %288 = vector.broadcast %cst_72 : f32 to vector<1x64xf32>
    %289 = tpu.concatenate %287, %287, %287, %287, %287, %287, %287, %288 in 1 : vector<1x64xf32>, vector<1x64xf32>, vector<1x64xf32>, vector<1x64xf32>, vector<1x64xf32>, vector<1x64xf32>, vector<1x64xf32>, vector<1x64xf32> -> vector<1x512xf32>
    %290 = tpu.concatenate %289, %289 in 1 : vector<1x512xf32>, vector<1x512xf32> -> vector<1x1024xf32>
    %291 = vector.broadcast %290 : vector<1x1024xf32> to vector<64x1024xf32>
    %292 = arith.subf %271, %291 : vector<64x1024xf32>
    %293 = vector.broadcast %0 : vector<64x1xf32> to vector<64x1024xf32>
    %294 = arith.mulf %292, %293 : vector<64x1024xf32>
    %295 = arith.mulf %294, %294 : vector<64x1024xf32>
    %cst_73 = arith.constant dense<0.000000e+00> : vector<1024xf32>
    %296 = vector.multi_reduction <add>, %295, %cst_73 [0] : vector<64x1024xf32> to vector<1024xf32>
    %297 = vector.shape_cast %296 : vector<1024xf32> to vector<1x1024xf32>
    %298 = vector.extract_strided_slice %297 {offsets = [0, 0], sizes = [1, 512], strides = [1, 1]} : vector<1x1024xf32> to vector<1x512xf32>
    %299 = vector.extract_strided_slice %297 {offsets = [0, 512], sizes = [1, 512], strides = [1, 1]} : vector<1x1024xf32> to vector<1x512xf32>
    %300 = arith.addf %298, %299 : vector<1x512xf32>
    %301 = vector.extract_strided_slice %300 {offsets = [0, 0], sizes = [1, 256], strides = [1, 1]} : vector<1x512xf32> to vector<1x256xf32>
    %302 = vector.extract_strided_slice %300 {offsets = [0, 256], sizes = [1, 256], strides = [1, 1]} : vector<1x512xf32> to vector<1x256xf32>
    %303 = arith.addf %301, %302 : vector<1x256xf32>
    %304 = vector.extract_strided_slice %303 {offsets = [0, 0], sizes = [1, 128], strides = [1, 1]} : vector<1x256xf32> to vector<1x128xf32>
    %305 = vector.extract_strided_slice %303 {offsets = [0, 128], sizes = [1, 128], strides = [1, 1]} : vector<1x256xf32> to vector<1x128xf32>
    %306 = arith.addf %304, %305 : vector<1x128xf32>
    %307 = vector.extract_strided_slice %306 {offsets = [0, 0], sizes = [1, 64], strides = [1, 1]} : vector<1x128xf32> to vector<1x64xf32>
    %308 = vector.extract_strided_slice %306 {offsets = [0, 64], sizes = [1, 64], strides = [1, 1]} : vector<1x128xf32> to vector<1x64xf32>
    %309 = arith.addf %307, %308 : vector<1x64xf32>
    %cst_74 = arith.constant 0.00223214296 : f32
    %310 = vector.broadcast %cst_74 : f32 to vector<1x64xf32>
    %311 = arith.mulf %309, %310 : vector<1x64xf32>
    %c0_75 = arith.constant 0 : index
    %c0_76 = arith.constant 0 : index
    %312 = vector.load %arg6[%c0_75, %c0_76] : memref<1x64xf32, #tpu.memory_space<vmem>>, vector<1x64xf32>
    %cst_77 = arith.constant 9.99999974E-6 : f32
    %313 = vector.broadcast %cst_77 : f32 to vector<1x64xf32>
    %314 = arith.addf %311, %313 : vector<1x64xf32>
    %315 = math.rsqrt %314 : vector<1x64xf32>
    %316 = arith.mulf %312, %315 : vector<1x64xf32>
    %cst_78 = arith.constant 0.000000e+00 : f32
    %317 = vector.broadcast %cst_78 : f32 to vector<1x64xf32>
    %318 = tpu.concatenate %316, %316, %316, %316, %316, %316, %316, %317 in 1 : vector<1x64xf32>, vector<1x64xf32>, vector<1x64xf32>, vector<1x64xf32>, vector<1x64xf32>, vector<1x64xf32>, vector<1x64xf32>, vector<1x64xf32> -> vector<1x512xf32>
    %319 = tpu.concatenate %318, %318 in 1 : vector<1x512xf32>, vector<1x512xf32> -> vector<1x1024xf32>
    %320 = vector.broadcast %319 : vector<1x1024xf32> to vector<64x1024xf32>
    %321 = arith.mulf %294, %320 : vector<64x1024xf32>
    %c0_79 = arith.constant 0 : index
    %c0_80 = arith.constant 0 : index
    %322 = vector.load %arg7[%c0_79, %c0_80] : memref<1x64xf32, #tpu.memory_space<vmem>>, vector<1x64xf32>
    %cst_81 = arith.constant 0.000000e+00 : f32
    %323 = vector.broadcast %cst_81 : f32 to vector<1x64xf32>
    %324 = tpu.concatenate %322, %322, %322, %322, %322, %322, %322, %323 in 1 : vector<1x64xf32>, vector<1x64xf32>, vector<1x64xf32>, vector<1x64xf32>, vector<1x64xf32>, vector<1x64xf32>, vector<1x64xf32>, vector<1x64xf32> -> vector<1x512xf32>
    %325 = tpu.concatenate %324, %324 in 1 : vector<1x512xf32>, vector<1x512xf32> -> vector<1x1024xf32>
    %326 = vector.broadcast %325 : vector<1x1024xf32> to vector<64x1024xf32>
    %327 = arith.addf %321, %326 : vector<64x1024xf32>
    %cst_82 = arith.constant 0.000000e+00 : f32
    %328 = vector.broadcast %cst_82 : f32 to vector<64x1024xf32>
    %329 = arith.maximumf %327, %328 : vector<64x1024xf32>
    %330 = vector.extract_strided_slice %329 {offsets = [0, 0], sizes = [64, 512], strides = [1, 1]} : vector<64x1024xf32> to vector<64x512xf32>
    %331 = vector.extract_strided_slice %329 {offsets = [0, 512], sizes = [64, 512], strides = [1, 1]} : vector<64x1024xf32> to vector<64x512xf32>
    %332 = arith.maximumf %330, %331 : vector<64x512xf32>
    %333 = vector.broadcast %0 : vector<64x1xf32> to vector<64x512xf32>
    %334 = arith.mulf %332, %333 : vector<64x512xf32>
    %335 = arith.truncf %334 : vector<64x512xf32> to vector<64x512xbf16>
    %c0_83 = arith.constant 0 : index
    %c0_84 = arith.constant 0 : index
    %336 = vector.load %arg8[%c0_83, %c0_84] : memref<512x640xbf16, #tpu.memory_space<vmem>>, vector<512x640xbf16>
    %cst_85 = arith.constant dense<0.000000e+00> : vector<64x640xf32>
    %337 = tpu.matmul %335, %336, %cst_85 {dimension_numbers = #tpu.dot_dimension_numbers<[1], [0], [0], [1], [0, 0, 1, 1], [], []>} : vector<64x512xbf16>, vector<512x640xbf16>, vector<64x640xf32> -> vector<64x640xf32>
    %cst_86 = arith.constant dense<0.000000e+00> : vector<640xf32>
    %338 = vector.multi_reduction <add>, %337, %cst_86 [0] : vector<64x640xf32> to vector<640xf32>
    %339 = vector.shape_cast %338 : vector<640xf32> to vector<1x640xf32>
    %340 = vector.extract_strided_slice %339 {offsets = [0, 0], sizes = [1, 128], strides = [1, 1]} : vector<1x640xf32> to vector<1x128xf32>
    %341 = vector.extract_strided_slice %339 {offsets = [0, 128], sizes = [1, 128], strides = [1, 1]} : vector<1x640xf32> to vector<1x128xf32>
    %342 = arith.addf %340, %341 : vector<1x128xf32>
    %343 = vector.extract_strided_slice %339 {offsets = [0, 256], sizes = [1, 128], strides = [1, 1]} : vector<1x640xf32> to vector<1x128xf32>
    %344 = arith.addf %342, %343 : vector<1x128xf32>
    %345 = vector.extract_strided_slice %339 {offsets = [0, 384], sizes = [1, 128], strides = [1, 1]} : vector<1x640xf32> to vector<1x128xf32>
    %346 = arith.addf %344, %345 : vector<1x128xf32>
    %347 = vector.extract_strided_slice %339 {offsets = [0, 512], sizes = [1, 128], strides = [1, 1]} : vector<1x640xf32> to vector<1x128xf32>
    %348 = arith.addf %346, %347 : vector<1x128xf32>
    %cst_87 = arith.constant 6.250000e-03 : f32
    %349 = vector.broadcast %cst_87 : f32 to vector<1x128xf32>
    %350 = arith.mulf %348, %349 : vector<1x128xf32>
    %351 = tpu.concatenate %350, %350, %350, %350, %350 in 1 : vector<1x128xf32>, vector<1x128xf32>, vector<1x128xf32>, vector<1x128xf32>, vector<1x128xf32> -> vector<1x640xf32>
    %352 = vector.broadcast %351 : vector<1x640xf32> to vector<64x640xf32>
    %353 = arith.subf %337, %352 : vector<64x640xf32>
    %354 = vector.broadcast %0 : vector<64x1xf32> to vector<64x640xf32>
    %355 = arith.mulf %353, %354 : vector<64x640xf32>
    %356 = arith.mulf %355, %355 : vector<64x640xf32>
    %cst_88 = arith.constant dense<0.000000e+00> : vector<640xf32>
    %357 = vector.multi_reduction <add>, %356, %cst_88 [0] : vector<64x640xf32> to vector<640xf32>
    %358 = vector.shape_cast %357 : vector<640xf32> to vector<1x640xf32>
    %359 = vector.extract_strided_slice %358 {offsets = [0, 0], sizes = [1, 128], strides = [1, 1]} : vector<1x640xf32> to vector<1x128xf32>
    %360 = vector.extract_strided_slice %358 {offsets = [0, 128], sizes = [1, 128], strides = [1, 1]} : vector<1x640xf32> to vector<1x128xf32>
    %361 = arith.addf %359, %360 : vector<1x128xf32>
    %362 = vector.extract_strided_slice %358 {offsets = [0, 256], sizes = [1, 128], strides = [1, 1]} : vector<1x640xf32> to vector<1x128xf32>
    %363 = arith.addf %361, %362 : vector<1x128xf32>
    %364 = vector.extract_strided_slice %358 {offsets = [0, 384], sizes = [1, 128], strides = [1, 1]} : vector<1x640xf32> to vector<1x128xf32>
    %365 = arith.addf %363, %364 : vector<1x128xf32>
    %366 = vector.extract_strided_slice %358 {offsets = [0, 512], sizes = [1, 128], strides = [1, 1]} : vector<1x640xf32> to vector<1x128xf32>
    %367 = arith.addf %365, %366 : vector<1x128xf32>
    %cst_89 = arith.constant 6.250000e-03 : f32
    %368 = vector.broadcast %cst_89 : f32 to vector<1x128xf32>
    %369 = arith.mulf %367, %368 : vector<1x128xf32>
    %c0_90 = arith.constant 0 : index
    %c0_91 = arith.constant 0 : index
    %370 = vector.load %arg9[%c0_90, %c0_91] : memref<1x128xf32, #tpu.memory_space<vmem>>, vector<1x128xf32>
    %cst_92 = arith.constant 9.99999974E-6 : f32
    %371 = vector.broadcast %cst_92 : f32 to vector<1x128xf32>
    %372 = arith.addf %369, %371 : vector<1x128xf32>
    %373 = math.rsqrt %372 : vector<1x128xf32>
    %374 = arith.mulf %370, %373 : vector<1x128xf32>
    %375 = tpu.concatenate %374, %374, %374, %374, %374 in 1 : vector<1x128xf32>, vector<1x128xf32>, vector<1x128xf32>, vector<1x128xf32>, vector<1x128xf32> -> vector<1x640xf32>
    %376 = vector.broadcast %375 : vector<1x640xf32> to vector<64x640xf32>
    %377 = arith.mulf %355, %376 : vector<64x640xf32>
    %c0_93 = arith.constant 0 : index
    %c0_94 = arith.constant 0 : index
    %378 = vector.load %arg10[%c0_93, %c0_94] : memref<1x128xf32, #tpu.memory_space<vmem>>, vector<1x128xf32>
    %379 = tpu.concatenate %378, %378, %378, %378, %378 in 1 : vector<1x128xf32>, vector<1x128xf32>, vector<1x128xf32>, vector<1x128xf32>, vector<1x128xf32> -> vector<1x640xf32>
    %380 = vector.broadcast %379 : vector<1x640xf32> to vector<64x640xf32>
    %381 = arith.addf %377, %380 : vector<64x640xf32>
    %cst_95 = arith.constant 0.000000e+00 : f32
    %382 = vector.broadcast %cst_95 : f32 to vector<64x640xf32>
    %383 = arith.maximumf %381, %382 : vector<64x640xf32>
    %384 = vector.extract_strided_slice %383 {offsets = [0, 0], sizes = [64, 128], strides = [1, 1]} : vector<64x640xf32> to vector<64x128xf32>
    %385 = vector.extract_strided_slice %383 {offsets = [0, 128], sizes = [64, 128], strides = [1, 1]} : vector<64x640xf32> to vector<64x128xf32>
    %386 = arith.addf %384, %385 : vector<64x128xf32>
    %387 = vector.extract_strided_slice %383 {offsets = [0, 256], sizes = [64, 128], strides = [1, 1]} : vector<64x640xf32> to vector<64x128xf32>
    %388 = arith.addf %386, %387 : vector<64x128xf32>
    %389 = vector.extract_strided_slice %383 {offsets = [0, 384], sizes = [64, 128], strides = [1, 1]} : vector<64x640xf32> to vector<64x128xf32>
    %390 = arith.addf %388, %389 : vector<64x128xf32>
    %391 = vector.extract_strided_slice %383 {offsets = [0, 512], sizes = [64, 128], strides = [1, 1]} : vector<64x640xf32> to vector<64x128xf32>
    %392 = arith.addf %390, %391 : vector<64x128xf32>
    %393 = vector.extract_strided_slice %392 {offsets = [0, 0], sizes = [8, 128], strides = [1, 1]} : vector<64x128xf32> to vector<8x128xf32>
    %394 = vector.extract_strided_slice %392 {offsets = [8, 0], sizes = [8, 128], strides = [1, 1]} : vector<64x128xf32> to vector<8x128xf32>
    %395 = arith.addf %393, %394 : vector<8x128xf32>
    %396 = vector.extract_strided_slice %392 {offsets = [16, 0], sizes = [8, 128], strides = [1, 1]} : vector<64x128xf32> to vector<8x128xf32>
    %397 = arith.addf %395, %396 : vector<8x128xf32>
    %398 = vector.extract_strided_slice %392 {offsets = [24, 0], sizes = [8, 128], strides = [1, 1]} : vector<64x128xf32> to vector<8x128xf32>
    %399 = arith.addf %397, %398 : vector<8x128xf32>
    %400 = vector.extract_strided_slice %392 {offsets = [32, 0], sizes = [8, 128], strides = [1, 1]} : vector<64x128xf32> to vector<8x128xf32>
    %401 = arith.addf %399, %400 : vector<8x128xf32>
    %402 = vector.extract_strided_slice %392 {offsets = [40, 0], sizes = [8, 128], strides = [1, 1]} : vector<64x128xf32> to vector<8x128xf32>
    %403 = arith.addf %401, %402 : vector<8x128xf32>
    %404 = vector.extract_strided_slice %392 {offsets = [48, 0], sizes = [8, 128], strides = [1, 1]} : vector<64x128xf32> to vector<8x128xf32>
    %405 = arith.addf %403, %404 : vector<8x128xf32>
    %406 = vector.extract_strided_slice %392 {offsets = [56, 0], sizes = [8, 128], strides = [1, 1]} : vector<64x128xf32> to vector<8x128xf32>
    %407 = arith.addf %405, %406 : vector<8x128xf32>
    %cst_96 = arith.constant 2.500000e-02 : f32
    %408 = vector.broadcast %cst_96 : f32 to vector<8x128xf32>
    %409 = arith.mulf %407, %408 : vector<8x128xf32>
    %410 = arith.truncf %409 : vector<8x128xf32> to vector<8x128xbf16>
    %c0_97 = arith.constant 0 : index
    %c0_98 = arith.constant 0 : index
    %411 = vector.load %arg11[%c0_97, %c0_98] : memref<128x128xbf16, #tpu.memory_space<vmem>>, vector<128x128xbf16>
    %cst_99 = arith.constant dense<0.000000e+00> : vector<8x128xf32>
    %412 = tpu.matmul %410, %411, %cst_99 {dimension_numbers = #tpu.dot_dimension_numbers<[1], [0], [0], [1], [0, 0, 1, 1], [], []>} : vector<8x128xbf16>, vector<128x128xbf16>, vector<8x128xf32> -> vector<8x128xf32>
    %c0_100 = arith.constant 0 : index
    %c0_101 = arith.constant 0 : index
    %413 = vector.load %arg12[%c0_100, %c0_101] : memref<1x128xf32, #tpu.memory_space<vmem>>, vector<1x128xf32>
    %414 = vector.broadcast %413 : vector<1x128xf32> to vector<8x128xf32>
    %415 = arith.addf %412, %414 : vector<8x128xf32>
    %c0_102 = arith.constant 0 : index
    %c0_103 = arith.constant 0 : index
    %416 = vector.load %arg13[%c0_102, %c0_103] : memref<8x128xf32, #tpu.memory_space<vmem>>, vector<8x128xf32>
    tpu.vector_store %arg13[%c0_102, %c0_103], %415 {strides = array<i32>} : memref<8x128xf32, #tpu.memory_space<vmem>>, vector<8x128xf32>,
    return
  }
}

</mosaic_0001>

<bundles_post_ra>
// kernel: tile.8
= control target key start
LH: loop header
LB: loop body
LE: loop exit
PB: predicated region body
PF: predicated region fallthrough
CT: control target
= control target key end

     0   :  { %s22_s0 = inlined_call_operand.vmem [shape: f32[8], index: 0, kind: input, shape index: {}]   ;;  %s23_s1 = inlined_call_operand.vmem [shape: f32[8,8], index: 1, kind: output, shape index: {}]  }
   0x1   :  { %v4_v0 = vld [vmem:[%s22_s0] ss:$0 sm:$0xff] }
   0x2   :  { %5 = vst [vmem:[%s23_s1] sm:$0xff] %v4_v0 }

// kernel: tile.0
= control target key start
LH: loop header
LB: loop body
LE: loop exit
PB: predicated region body
PF: predicated region fallthrough
CT: control target
= control target key end

     0   :  { %vm3_vm0 = vcmask 7168   ;;  %s84_s8 = smov 125   ;;  %s85_s13 = smov 126   ;;  %s167_s0 = inlined_call_operand.vmem [shape: f32[8,8], index: 0, kind: input, shape index: {}]   ;;  %s168_s1 = inlined_call_operand.vmem [shape: f32[64,1], index: 1, kind: output, shape index: {}]  }
   0x1   :  { %v6_v0 = vld [vmem:[%s167_s0] sm:$0xff]   ;;  %s83_s0 = smov 127   ;;  %s86_s14 = smov 124  }
   0x2   :  { %7 = vrot.lane.b32.xlu0 %v6_v0, %s83_s0  ;;  %23 = vrot.lane.b32.xlu1 %v6_v0, %s84_s8  ;;  %4 = vst.msk [vmem:[%s168_s1] ss:$8 sm:$0xf] %vm3_vm0, %v6_v0   ;;  %5 = vst.msk [vmem:[%s168_s1] ss:$8 sm:$0xf0] %vm3_vm0, %v6_v0  }
   0x3   :  { %s87_s15 = smov 123   ;;  %s88_s16 = smov 122  }
   0x4   :  { %s89_s17 = smov 121  }
   0x6   :  { %15 = vrot.lane.b32.xlu0 %v6_v0, %s85_s13  ;;  %31 = vrot.lane.b32.xlu1 %v6_v0, %s86_s14 }
   0xa   :  { %39 = vrot.lane.b32.xlu0 %v6_v0, %s87_s15  ;;  %47 = vrot.lane.b32.xlu1 %v6_v0, %s88_s16 }
   0xe   :  { %55 = vrot.lane.b32.xlu0 %v6_v0, %s89_s17 }
  0x74   :  { %v8_v1 = vpop.permute.xlu0 %7   ;;  %v24_v2 = vpop.permute.xlu1 %23  }
  0x75   :  { %62 = vst.msk [vmem:[%s168_s1 + $0x1] ss:$8 sm:$0xf] %vm3_vm0, %v8_v1   ;;  %63 = vst.msk [vmem:[%s168_s1 + $0x1] ss:$8 sm:$0xf0] %vm3_vm0, %v8_v1  }
  0x76   :  { %66 = vst.msk [vmem:[%s168_s1 + $0x3] ss:$8 sm:$0xf] %vm3_vm0, %v24_v2   ;;  %67 = vst.msk [vmem:[%s168_s1 + $0x3] ss:$8 sm:$0xf0] %vm3_vm0, %v24_v2  }
  0x78   :  { %v16_v3 = vpop.permute.xlu0 %15   ;;  %v32_v4 = vpop.permute.xlu1 %31  }
  0x79   :  { %64 = vst.msk [vmem:[%s168_s1 + $0x2] ss:$8 sm:$0xf] %vm3_vm0, %v16_v3   ;;  %65 = vst.msk [vmem:[%s168_s1 + $0x2] ss:$8 sm:$0xf0] %vm3_vm0, %v16_v3  }
  0x7a   :  { %68 = vst.msk [vmem:[%s168_s1 + $0x4] ss:$8 sm:$0xf] %vm3_vm0, %v32_v4   ;;  %69 = vst.msk [vmem:[%s168_s1 + $0x4] ss:$8 sm:$0xf0] %vm3_vm0, %v32_v4  }
  0x7c   :  { %v40_v5 = vpop.permute.xlu0 %39   ;;  %v48_v6 = vpop.permute.xlu1 %47  }
  0x7d   :  { %70 = vst.msk [vmem:[%s168_s1 + $0x5] ss:$8 sm:$0xf] %vm3_vm0, %v40_v5   ;;  %71 = vst.msk [vmem:[%s168_s1 + $0x5] ss:$8 sm:$0xf0] %vm3_vm0, %v40_v5  }
  0x7e   :  { %72 = vst.msk [vmem:[%s168_s1 + $0x6] ss:$8 sm:$0xf] %vm3_vm0, %v48_v6   ;;  %73 = vst.msk [vmem:[%s168_s1 + $0x6] ss:$8 sm:$0xf0] %vm3_vm0, %v48_v6  }
  0x80   :  { %v56_v7 = vpop.permute.xlu0 %55  }
  0x81   :  { %74 = vst.msk [vmem:[%s168_s1 + $0x7] ss:$8 sm:$0xf] %vm3_vm0, %v56_v7   ;;  %75 = vst.msk [vmem:[%s168_s1 + $0x7] ss:$8 sm:$0xf0] %vm3_vm0, %v56_v7  }

// kernel: lstmcnn_forward.1
= control target key start
LH: loop header
LB: loop body
LE: loop exit
PB: predicated region body
PF: predicated region fallthrough
CT: control target
= control target key end

     0   :  { %v7275_v0 = vmov 0.0   ;;  %vm4721_vm0 = vmmov 0   ;;  %vm96_vm1 = vcmask 130048   ;;  %v4722_v3 = vmov 0   ;;  %s4723_s18 = smov 64   ;;  %s7261_s2 = inlined_call_operand.vmem [shape: bf16[16,128], index: 2, kind: input, shape index: {}]   ;;  %s7262_s3 = inlined_call_operand.vmem [shape: bf16[32,128], index: 3, kind: input, shape index: {}]   ;;  %s7263_s0 = inlined_call_operand.vmem [shape: bf16[64,16], index: 0, kind: input, shape index: {}]   ;;  %s7264_s4 = inlined_call_operand.vmem [shape: f32[1,128], index: 4, kind: input, shape index: {}]   ;;  %s7265_s1 = inlined_call_operand.vmem [shape: f32[64,1], index: 1, kind: input, shape index: {}]   ;;  %s7266_s5 = inlined_call_operand.vmem [shape: bf16[32,1024], index: 5, kind: input, shape index: {}]   ;;  %s7267_s7 = inlined_call_operand.vmem [shape: f32[1,64], index: 7, kind: input, shape index: {}]   ;;  %s7268_s8 = inlined_call_operand.vmem [shape: bf16[512,640], index: 8, kind: input, shape index: {}]   ;;  %s7269_s6 = inlined_call_operand.vmem [shape: f32[1,64], index: 6, kind: input, shape index: {}]   ;;  %s7270_s11 = inlined_call_operand.vmem [shape: bf16[128,128], index: 11, kind: input, shape index: {}]   ;;  %s7271_s9 = inlined_call_operand.vmem [shape: f32[1,128], index: 9, kind: input, shape index: {}]   ;;  %s7272_s10 = inlined_call_operand.vmem [shape: f32[1,128], index: 10, kind: input, shape index: {}]   ;;  %s7273_s12 = inlined_call_operand.vmem [shape: f32[1,128], index: 12, kind: input, shape index: {}]   ;;  %s7274_s13 = inlined_call_operand.vmem [shape: f32[8,128], index: 13, kind: output, shape index: {}]  }
   0x1   :  { %4322 = vmatprep.subr.bf16.mxu1 %v7275_v0  ;;  %v4413_v1 = vld [vmem:[%s7261_s2] sm:$0xff]   ;;  %4326 = vmatprep.mubr.msk.bf16.mxu1 %vm4721_vm0, %v7275_v0  ;;  %v4804_v2 = vld [vmem:[%s7262_s3 + $0x8] sm:$0xff]   ;;  %vm190_vm2 = vcmask 261120   ;;  %v4418_v51 = vld [vmem:[%s7263_s0 + $0x10] sm:$0xff]   ;;  %vm1340_vm3 = vcmask 523264  }
   0x2   :  { %4411 = vset.pattern.permute.xlu0 %v4722_v3  ;;  %4412 = vset.pattern.permute.xlu1 %v4722_v3  ;;  %v4415_v4 = vld [vmem:[%s7263_s0] sm:$0xff]   ;;  %v4416_v5 = vld [vmem:[%s7263_s0 + $0x8] sm:$0xff]   ;;  %v4419_v52 = vld [vmem:[%s7263_s0 + $0x18] sm:$0xff]  }
   0x3   :  { %4312 = vmatprep.subr.bf16.mxu0 %v4413_v1  ;;  %4323 = vmatpush3.bf16.msra.mxu1 %v4804_v2  ;;  %v4820_v6 = vld [vmem:[%s7262_s3] sm:$0xff]  }
   0x4   :  { %4313 = vmatpush3.bf16.msra.mxu0 %v4413_v1  ;;  %4314 = vmatprep.mubr.msk.bf16.mxu0 %vm96_vm1, %v4415_v4  ;;  %v4842_v8 = vld [vmem:[%s7264_s4] ss:$0 sm:$0xff]  ;;  %s4724_s4 = smov 32  }
   0x5   :  { %4324 = vmatprep.subr.bf16.mxu1 %v7275_v0  ;;  %4338 = vmatprep.subr.bf16.mxu0 %v7275_v0 }
   0x7   :  { %4315 = vmatmul.mubr.msk.bf16.vlgmr.msra.gmra.mxu0 %vm96_vm1, %v4416_v5  ;;  %4325 = vmatpush3.bf16.msra.mxu1 %v4820_v6 }
   0x8   :  { %4339 = vmatpush3.bf16.msra.mxu0 %v4804_v2  ;;  %4330 = vmatprep.subr.bf16.mxu1 %v7275_v0 }
   0x9   :  { %4340 = vmatprep.subr.bf16.mxu0 %v7275_v0  ;;  %4318 = vmatprep.mubr.msk.bf16.mxu0 %vm96_vm1, %v4418_v51 }
   0xa   :  { %4327 = vmatmul.mubr.bf16.vlgmr.msra.gmra.mxu1 %v4722_v3 }
   0xb   :  { %4331 = vmatpush3.bf16.msra.mxu1 %v4804_v2  ;;  %4334 = vmatprep.mubr.msk.bf16.mxu1 %vm4721_vm0, %v7275_v0 }
   0xc   :  { %4332 = vmatprep.subr.bf16.mxu1 %v7275_v0  ;;  %4341 = vmatpush3.bf16.msra.mxu0 %v4820_v6 }
   0xd   :  { %4354 = vmatprep.subr.bf16.mxu0 %v7275_v0 }
   0xf   :  { %4333 = vmatpush3.bf16.msra.mxu1 %v4820_v6  ;;  %4319 = vmatmul.mubr.msk.bf16.gmra.mxu0 %vm96_vm1, %v4419_v52 }
  0x10   :  { %4346 = vmatprep.subr.bf16.mxu1 %v7275_v0  ;;  %4342 = vmatprep.mubr.msk.bf16.mxu0 %vm4721_vm0, %v7275_v0 }
  0xc7   :  { %v4837_v7 = vpop.f32.mrf.mxu0 }
  0xc8   :  { %v152_v62 = vadd.f32 %v4837_v7, %v4842_v8 }
  0xc9   :  { %v143_v9 = vpop.f32.mrf.mxu0 }
  0xca   :  { %v144_v10 = vadd.f32 %v4842_v8, %v143_v9  ;;  %v228_v11 = vpop.f32.mrf.mxu1 }
  0xcb   :  { %v4860_v32 = vpop.f32.mrf.mxu0 }
  0xcc   :  { %v234_v12 = vadd.f32 %v228_v11, %v144_v10  ;;  %v4328_v13 = vpop.f32.mrf.mxu1 }
  0xcd   :  { %v146_v33 = vpop.f32.mrf.mxu0 }
  0xce   :  { %4652 = vtanh.f32 %v234_v12  ;;  %v231_v14 = vpop.f32.mrf.mxu1  ;;  %v235_v17 = vsub.f32 0.0, %v234_v12  ;;  %v147_v34 = vadd.f32 %v4842_v8, %v146_v33 }
  0xcf   :  { %v4888_v58 = vpop.f32.mrf.mxu0 }
  0xd0   :  { %v4329_v15 = vpop.f32.mrf.mxu1  ;;  %v236_v18 = vmul.f32 1.442695, %v235_v17 }
  0xd1   :  { %v4890_v59 = vpop.f32.mrf.mxu0 }
  0xd2   :  { %4654 = vpow2.f32 %v236_v18 }
  0xd3   :  { %v4892_v60 = vpop.f32.mrf.mxu0 }
  0xd5   :  { %v4894_v61 = vpop.f32.mrf.mxu0 }
  0xdb   :  { %v4653_v16 = vpop.eup %4652 }
  0xdc   :  { %243 = vrot.lane.b32.xlu0 %v4653_v16, %s4723_s18 }
  0xdf   :  { %v4655_v19 = vpop.eup %4654 }
  0xe0   :  { %v238_v20 = vadd.f32 1.0, %v4655_v19 }
  0xe2   :  { %4656 = vrcp.f32 %v238_v20 }
  0xef   :  { %v4657_v21 = vpop.eup %4656 }
  0xf0   :  { %v241_v24 = vmul.f32 0.0, %v4657_v21 }
 0x14e   :  { %v244_v22 = vpop.permute.xlu0 %243 }
 0x14f   :  { %v246_v23 = vmul.f32 %v4657_v21, %v244_v22 }
 0x151   :  { %248 = vrot.lane.b32.xlu0 %v246_v23, %s4724_s4 }
 0x1c3   :  { %v249_v25 = vpop.permute.xlu0 %248 }
 0x1c4   :  { %v251_v26 = vadd.f32 %v249_v25, %v241_v24  ;;  %v155_v25 = vadd.f32 %v4860_v32, %v4842_v8 }
 0x1c6   :  { %4658 = vtanh.f32 %v251_v26 }
 0x1d3   :  { %v4659_v27 = vpop.eup %4658 }
 0x1d4   :  { %254 = vrot.lane.b32.xlu1 %v4659_v27, %s4723_s18 }
 0x246   :  { %v255_v28 = vpop.permute.xlu1 %254 }
 0x247   :  { %v4848_v29 = vmul.f32 %v4657_v21, %v255_v28 }
 0x249   :  { %v258_v30 = vpack.c.bf16 %v4848_v29, %v4848_v29 }
 0x24b   :  { %260 = vrot.lane.b32.xlu1 %v258_v30, %s4724_s4 }
 0x2bd   :  { %v261_v31 = vpop.permute.xlu1 %260 }
 0x2be   :  { %4335 = vmatmul.mubr.msk.bf16.vlgmr.msra.gmra.mxu1 %vm190_vm2, %v261_v31 }
 0x2bf   :  { %4347 = vmatpush3.bf16.msra.mxu1 %v4804_v2  ;;  %4350 = vmatprep.mubr.msk.bf16.mxu1 %vm4721_vm0, %v7275_v0 }
 0x2c0   :  { %4348 = vmatprep.subr.bf16.mxu1 %v7275_v0 }
 0x2c3   :  { %4349 = vmatpush3.bf16.msra.mxu1 %v4820_v6 }
 0x2c4   :  { %4362 = vmatprep.subr.bf16.mxu1 %v7275_v0 }
 0x37e   :  { %v299_v35 = vpop.f32.mrf.mxu1 }
 0x37f   :  { %v305_v36 = vadd.f32 %v299_v35, %v147_v34 }
 0x380   :  { %v4336_v37 = vpop.f32.mrf.mxu1 }
 0x381   :  { %4660 = vtanh.f32 %v305_v36  ;;  %v306_v41 = vsub.f32 0.0, %v305_v36 }
 0x382   :  { %v302_v38 = vpop.f32.mrf.mxu1 }
 0x383   :  { %v307_v42 = vmul.f32 1.442695, %v306_v41 }
 0x384   :  { %v4337_v39 = vpop.f32.mrf.mxu1 }
 0x385   :  { %4662 = vpow2.f32 %v307_v42 }
 0x38e   :  { %v4661_v40 = vpop.eup %4660 }
 0x38f   :  { %314 = vrot.lane.b32.xlu0 %v4661_v40, %s4723_s18 }
 0x392   :  { %v4663_v43 = vpop.eup %4662 }
 0x393   :  { %v309_v44 = vadd.f32 1.0, %v4663_v43 }
 0x395   :  { %4664 = vrcp.f32 %v309_v44 }
 0x3a2   :  { %v4665_v45 = vpop.eup %4664 }
 0x3a3   :  { %v312_v48 = vmul.f32 %v4665_v45, %v251_v26 }
 0x401   :  { %v315_v46 = vpop.permute.xlu0 %314 }
 0x402   :  { %v317_v47 = vmul.f32 %v4665_v45, %v315_v46 }
 0x404   :  { %319 = vrot.lane.b32.xlu1 %v317_v47, %s4724_s4 }
 0x476   :  { %v320_v49 = vpop.permute.xlu1 %319 }
 0x477   :  { %v322_v50 = vadd.f32 %v320_v49, %v312_v48  ;;  %v160_v48 = vadd.f32 %v4842_v8, %v4890_v59 }
 0x479   :  { %4666 = vtanh.f32 %v322_v50 }
 0x486   :  { %v4667_v53 = vpop.eup %4666 }
 0x487   :  { %325 = vrot.lane.b32.xlu0 %v4667_v53, %s4723_s18 }
 0x4f9   :  { %v326_v54 = vpop.permute.xlu0 %325 }
 0x4fa   :  { %v4876_v55 = vmul.f32 %v4665_v45, %v326_v54 }
 0x4fc   :  { %v329_v56 = vpack.c.bf16 %v4876_v55, %v4876_v55 }
 0x4fe   :  { %331 = vrot.lane.b32.xlu1 %v329_v56, %s4724_s4 }
 0x570   :  { %v332_v57 = vpop.permute.xlu1 %331 }
 0x571   :  { %4343 = vmatmul.mubr.msk.bf16.vlgmr.msra.gmra.mxu0 %vm190_vm2, %v332_v57 }
 0x572   :  { %4355 = vmatpush3.bf16.msra.mxu0 %v4804_v2  ;;  %4358 = vmatprep.mubr.msk.bf16.mxu0 %vm4721_vm0, %v7275_v0 }
 0x573   :  { %4356 = vmatprep.subr.bf16.mxu0 %v7275_v0 }
 0x576   :  { %4357 = vmatpush3.bf16.msra.mxu0 %v4820_v6 }
 0x577   :  { %4370 = vmatprep.subr.bf16.mxu0 %v7275_v0 }
 0x631   :  { %v370_v63 = vpop.f32.mrf.mxu0 }
 0x632   :  { %v376_v1 = vadd.f32 %v370_v63, %v152_v62 }
 0x633   :  { %v4344_v4 = vpop.f32.mrf.mxu0 }
 0x634   :  { %4668 = vtanh.f32 %v376_v1  ;;  %v377_v11 = vsub.f32 0.0, %v376_v1 }
 0x635   :  { %v373_v5 = vpop.f32.mrf.mxu0 }
 0x636   :  { %v378_v12 = vmul.f32 1.442695, %v377_v11 }
 0x637   :  { %v4345_v9 = vpop.f32.mrf.mxu0 }
 0x638   :  { %4670 = vpow2.f32 %v378_v12 }
 0x641   :  { %v4669_v10 = vpop.eup %4668 }
 0x642   :  { %385 = vrot.lane.b32.xlu0 %v4669_v10, %s4723_s18 }
 0x645   :  { %v4671_v13 = vpop.eup %4670 }
 0x646   :  { %v380_v14 = vadd.f32 1.0, %v4671_v13 }
 0x648   :  { %4672 = vrcp.f32 %v380_v14 }
 0x655   :  { %v4673_v15 = vpop.eup %4672 }
 0x656   :  { %v383_v7 = vmul.f32 %v4673_v15, %v322_v50 }
 0x6b4   :  { %v386_v16 = vpop.permute.xlu0 %385 }
 0x6b5   :  { %v388_v17 = vmul.f32 %v4673_v15, %v386_v16  ;;  %v163_v16 = vadd.f32 %v4842_v8, %v4894_v61 }
 0x6b7   :  { %390 = vrot.lane.b32.xlu1 %v388_v17, %s4724_s4 }
 0x729   :  { %v391_v18 = vpop.permute.xlu1 %390 }
 0x72a   :  { %v393_v19 = vadd.f32 %v391_v18, %v383_v7 }
 0x72c   :  { %4674 = vtanh.f32 %v393_v19 }
 0x739   :  { %v4675_v20 = vpop.eup %4674 }
 0x73a   :  { %396 = vrot.lane.b32.xlu0 %v4675_v20, %s4723_s18 }
 0x7ac   :  { %v397_v21 = vpop.permute.xlu0 %396 }
 0x7ad   :  { %v4901_v22 = vmul.f32 %v4673_v15, %v397_v21 }
 0x7af   :  { %v400_v23 = vpack.c.bf16 %v4901_v22, %v4901_v22 }
 0x7b1   :  { %402 = vrot.lane.b32.xlu1 %v400_v23, %s4724_s4 }
 0x823   :  { %v403_v24 = vpop.permute.xlu1 %402 }
 0x824   :  { %4351 = vmatmul.mubr.msk.bf16.vlgmr.msra.gmra.mxu1 %vm190_vm2, %v403_v24 }
 0x825   :  { %4363 = vmatpush3.bf16.msra.mxu1 %v4804_v2  ;;  %4366 = vmatprep.mubr.msk.bf16.mxu1 %vm4721_vm0, %v7275_v0 }
 0x826   :  { %4364 = vmatprep.subr.bf16.mxu1 %v7275_v0 }
 0x829   :  { %4365 = vmatpush3.bf16.msra.mxu1 %v4820_v6 }
 0x82a   :  { %4378 = vmatprep.subr.bf16.mxu1 %v7275_v0 }
 0x8e4   :  { %v441_v26 = vpop.f32.mrf.mxu1 }
 0x8e5   :  { %v447_v27 = vadd.f32 %v441_v26, %v155_v25 }
 0x8e6   :  { %v4352_v28 = vpop.f32.mrf.mxu1 }
 0x8e7   :  { %4676 = vtanh.f32 %v447_v27  ;;  %v448_v34 = vsub.f32 0.0, %v447_v27 }
 0x8e8   :  { %v444_v30 = vpop.f32.mrf.mxu1 }
 0x8e9   :  { %v449_v35 = vmul.f32 1.442695, %v448_v34 }
 0x8ea   :  { %v4353_v31 = vpop.f32.mrf.mxu1 }
 0x8eb   :  { %4678 = vpow2.f32 %v449_v35 }
 0x8f4   :  { %v4677_v33 = vpop.eup %4676 }
 0x8f5   :  { %456 = vrot.lane.b32.xlu0 %v4677_v33, %s4723_s18 }
 0x8f8   :  { %v4679_v36 = vpop.eup %4678 }
 0x8f9   :  { %v451_v37 = vadd.f32 1.0, %v4679_v36 }
 0x8fb   :  { %4680 = vrcp.f32 %v451_v37  ;;  %v168_v37 = vadd.f32 %v4888_v58, %v4842_v8 }
 0x908   :  { %v4681_v38 = vpop.eup %4680 }
 0x909   :  { %v454_v32 = vmul.f32 %v4681_v38, %v393_v19 }
 0x967   :  { %v457_v39 = vpop.permute.xlu0 %456 }
 0x968   :  { %v459_v40 = vmul.f32 %v4681_v38, %v457_v39 }
 0x96a   :  { %461 = vrot.lane.b32.xlu1 %v459_v40, %s4724_s4 }
 0x9dc   :  { %v462_v41 = vpop.permute.xlu1 %461 }
 0x9dd   :  { %v464_v42 = vadd.f32 %v462_v41, %v454_v32 }
 0x9df   :  { %4682 = vtanh.f32 %v464_v42 }
 0x9ec   :  { %v4683_v43 = vpop.eup %4682 }
 0x9ed   :  { %467 = vrot.lane.b32.xlu0 %v4683_v43, %s4723_s18 }
 0xa5f   :  { %v468_v44 = vpop.permute.xlu0 %467 }
 0xa60   :  { %v4918_v45 = vmul.f32 %v4681_v38, %v468_v44 }
 0xa62   :  { %v471_v46 = vpack.c.bf16 %v4918_v45, %v4918_v45 }
 0xa64   :  { %473 = vrot.lane.b32.xlu1 %v471_v46, %s4724_s4 }
 0xad6   :  { %v474_v47 = vpop.permute.xlu1 %473 }
 0xad7   :  { %4359 = vmatmul.mubr.msk.bf16.vlgmr.msra.gmra.mxu0 %vm190_vm2, %v474_v47 }
 0xad8   :  { %4371 = vmatpush3.bf16.msra.mxu0 %v4804_v2  ;;  %4374 = vmatprep.mubr.msk.bf16.mxu0 %vm4721_vm0, %v7275_v0 }
 0xad9   :  { %4372 = vmatprep.subr.bf16.mxu0 %v7275_v0 }
 0xadc   :  { %4373 = vmatpush3.bf16.msra.mxu0 %v4820_v6 }
 0xb97   :  { %v512_v49 = vpop.f32.mrf.mxu0 }
 0xb98   :  { %v518_v50 = vadd.f32 %v512_v49, %v160_v48 }
 0xb99   :  { %v4360_v51 = vpop.f32.mrf.mxu0 }
 0xb9a   :  { %4684 = vtanh.f32 %v518_v50  ;;  %v519_v56 = vsub.f32 0.0, %v518_v50 }
 0xb9b   :  { %v515_v52 = vpop.f32.mrf.mxu0 }
 0xb9c   :  { %v520_v57 = vmul.f32 1.442695, %v519_v56 }
 0xb9d   :  { %v4361_v53 = vpop.f32.mrf.mxu0 }
 0xb9e   :  { %4686 = vpow2.f32 %v520_v57 }
 0xba7   :  { %v4685_v54 = vpop.eup %4684 }
 0xba8   :  { %527 = vrot.lane.b32.xlu0 %v4685_v54, %s4723_s18 }
 0xbab   :  { %v4687_v62 = vpop.eup %4686 }
 0xbac   :  { %v522_v63 = vadd.f32 1.0, %v4687_v62 }
 0xbae   :  { %4688 = vrcp.f32 %v522_v63  ;;  %v171_v63 = vadd.f32 %v4892_v60, %v4842_v8  ;;  %v50_v8 = vld [vmem:[%s7265_s1 + $0x28] sm:$0xff]  ;;  %v52_v60 = vld [vmem:[%s7265_s1 + $0x38] sm:$0xff] }
 0xbbb   :  { %v4689_v1 = vpop.eup %4688 }
 0xbbc   :  { %v525_v59 = vmul.f32 %v4689_v1, %v464_v42 }
 0xc1a   :  { %v528_v4 = vpop.permute.xlu0 %527 }
 0xc1b   :  { %v530_v5 = vmul.f32 %v4689_v1, %v528_v4 }
 0xc1d   :  { %532 = vrot.lane.b32.xlu1 %v530_v5, %s4724_s4 }
 0xc8f   :  { %v533_v9 = vpop.permute.xlu1 %532 }
 0xc90   :  { %v535_v10 = vadd.f32 %v533_v9, %v525_v59 }
 0xc92   :  { %4690 = vtanh.f32 %v535_v10 }
 0xc9f   :  { %v4691_v11 = vpop.eup %4690 }
 0xca0   :  { %538 = vrot.lane.b32.xlu0 %v4691_v11, %s4723_s18  ;;  %v45_v11 = vld [vmem:[%s7265_s1] sm:$0xff] }
 0xd12   :  { %v539_v12 = vpop.permute.xlu0 %538 }
 0xd13   :  { %v4934_v13 = vmul.f32 %v4689_v1, %v539_v12  ;;  %v48_v12 = vld [vmem:[%s7265_s1 + $0x18] sm:$0xff] }
 0xd15   :  { %v542_v14 = vpack.c.bf16 %v4934_v13, %v4934_v13 }
 0xd17   :  { %544 = vrot.lane.b32.xlu1 %v542_v14, %s4724_s4 }
 0xd89   :  { %v545_v15 = vpop.permute.xlu1 %544 }
 0xd8a   :  { %4367 = vmatmul.mubr.msk.bf16.vlgmr.msra.gmra.mxu1 %vm190_vm2, %v545_v15 }
 0xd8b   :  { %4379 = vmatpush3.bf16.msra.mxu1 %v4804_v2  ;;  %4382 = vmatprep.mubr.msk.bf16.mxu1 %vm4721_vm0, %v7275_v0 }
 0xd8c   :  { %4380 = vmatprep.subr.bf16.mxu1 %v7275_v0 }
 0xd8f   :  { %4381 = vmatpush3.bf16.msra.mxu1 %v4820_v6 }
 0xe4a   :  { %v583_v17 = vpop.f32.mrf.mxu1 }
 0xe4b   :  { %v589_v7 = vadd.f32 %v583_v17, %v163_v16 }
 0xe4c   :  { %v4368_v18 = vpop.f32.mrf.mxu1 }
 0xe4d   :  { %4692 = vtanh.f32 %v589_v7  ;;  %v590_v2 = vsub.f32 0.0, %v589_v7 }
 0xe4e   :  { %v586_v19 = vpop.f32.mrf.mxu1 }
 0xe4f   :  { %v591_v23 = vmul.f32 1.442695, %v590_v2  ;;  %v49_v2 = vld [vmem:[%s7265_s1 + $0x20] sm:$0xff] }
 0xe50   :  { %v4369_v20 = vpop.f32.mrf.mxu1 }
 0xe51   :  { %4694 = vpow2.f32 %v591_v23  ;;  %v46_v20 = vld [vmem:[%s7265_s1 + $0x8] sm:$0xff]  ;;  %v51_v23 = vld [vmem:[%s7265_s1 + $0x30] sm:$0xff] }
 0xe5a   :  { %v4693_v21 = vpop.eup %4692 }
 0xe5b   :  { %598 = vrot.lane.b32.xlu0 %v4693_v21, %s4723_s18  ;;  %v47_v21 = vld [vmem:[%s7265_s1 + $0x10] sm:$0xff] }
 0xe5e   :  { %v4695_v24 = vpop.eup %4694 }
 0xe5f   :  { %v593_v25 = vadd.f32 1.0, %v4695_v24  ;;  %v815_v24 = vld [vmem:[%s7266_s5 + $0x40] sm:$0xff] }
 0xe61   :  { %4696 = vrcp.f32 %v593_v25  ;;  %v819_v25 = vld [vmem:[%s7266_s5 + $0x60] sm:$0xff] }
 0xe6e   :  { %v4697_v26 = vpop.eup %4696 }
 0xe6f   :  { %v596_v61 = vmul.f32 %v4697_v26, %v535_v10 }
 0xecd   :  { %v599_v6 = vpop.permute.xlu0 %598 }
 0xece   :  { %v601_v27 = vmul.f32 %v4697_v26, %v599_v6  ;;  %v4000_v6 = vcombine.low %v815_v24, %v819_v25 }
 0xed0   :  { %603 = vrot.lane.b32.xlu1 %v601_v27, %s4724_s4  ;;  %v4001_v27 = vcombine.high %v815_v24, %v819_v25 }
 0xed2   :  { %939 = vmatprep.subr.bf16.mxu0 %v4001_v27 }
 0xf42   :  { %v604_v28 = vpop.permute.xlu1 %603 }
 0xf43   :  { %v606_v30 = vadd.f32 %v604_v28, %v596_v61  ;;  %v820_v61 = vld [vmem:[%s7266_s5 + $0x68] sm:$0xff]  ;;  %v807_v28 = vld [vmem:[%s7266_s5] sm:$0xff] }
 0xf45   :  { %4698 = vtanh.f32 %v606_v30 }
 0xf52   :  { %v4699_v31 = vpop.eup %4698 }
 0xf53   :  { %609 = vrot.lane.b32.xlu0 %v4699_v31, %s4723_s18 }
 0xfc5   :  { %v610_v33 = vpop.permute.xlu0 %609 }
 0xfc6   :  { %v4950_v34 = vmul.f32 %v4697_v26, %v610_v33  ;;  %v816_v26 = vld [vmem:[%s7266_s5 + $0x48] sm:$0xff] }
 0xfc7   :  { %v4002_v31 = vcombine.low %v816_v26, %v820_v61  ;;  %v4003_v33 = vcombine.high %v816_v26, %v820_v61 }
 0xfc8   :  { %v613_v35 = vpack.c.bf16 %v4950_v34, %v4950_v34 }
 0xfc9   :  { %1012 = vmatprep.subr.bf16.mxu1 %v4003_v33 }
 0xfca   :  { %615 = vrot.lane.b32.xlu1 %v613_v35, %s4724_s4  ;;  %v808_v35 = vld [vmem:[%s7266_s5 + $0x8] sm:$0xff] }
0x103c   :  { %v616_v36 = vpop.permute.xlu1 %615 }
0x103d   :  { %4375 = vmatmul.mubr.msk.bf16.vlgmr.msra.gmra.mxu0 %vm190_vm2, %v616_v36  ;;  %v812_v36 = vld [vmem:[%s7266_s5 + $0x28] sm:$0xff] }
0x103e   :  { %959 = vmatprep.mubr.bf16.mxu0 %v4722_v3  ;;  %940 = vmatpush1.bf16.msra.mxu0 %v4000_v6 }
0x10fd   :  { %v654_v38 = vpop.f32.mrf.mxu0 }
0x10fe   :  { %v660_v39 = vadd.f32 %v654_v38, %v168_v37  ;;  %v3995_v38 = vcombine.high %v808_v35, %v812_v36 }
0x10ff   :  { %v4376_v40 = vpop.f32.mrf.mxu0 }
0x1100   :  { %4700 = vtanh.f32 %v660_v39  ;;  %v661_v43 = vsub.f32 0.0, %v660_v39  ;;  %v3994_v40 = vcombine.low %v808_v35, %v812_v36 }
0x1101   :  { %v657_v32 = vpop.f32.mrf.mxu0 }
0x1102   :  { %v662_v44 = vmul.f32 1.442695, %v661_v43 }
0x1103   :  { %v4377_v41 = vpop.f32.mrf.mxu0 }
0x1104   :  { %4702 = vpow2.f32 %v662_v44 }
0x110d   :  { %v4701_v42 = vpop.eup %4700 }
0x110e   :  { %669 = vrot.lane.b32.xlu0 %v4701_v42, %s4723_s18 }
0x1111   :  { %v4703_v46 = vpop.eup %4702 }
0x1112   :  { %v664_v47 = vadd.f32 1.0, %v4703_v46 }
0x1114   :  { %4704 = vrcp.f32 %v664_v47 }
0x1121   :  { %v4705_v48 = vpop.eup %4704 }
0x1122   :  { %v667_v58 = vmul.f32 %v4705_v48, %v606_v30  ;;  %v811_v30 = vld [vmem:[%s7266_s5 + $0x20] sm:$0xff] }
0x1123   :  { %v3993_v37 = vcombine.high %v807_v28, %v811_v30  ;;  %v3992_v39 = vcombine.low %v807_v28, %v811_v30 }
0x1125   :  { %941 = vmatprep.subr.bf16.mxu0 %v3993_v37 }
0x1126   :  { %942 = vmatpush1.bf16.msra.mxu0 %v3992_v39 }
0x1180   :  { %v670_v49 = vpop.permute.xlu0 %669 }
0x1181   :  { %v672_v50 = vmul.f32 %v4705_v48, %v670_v49 }
0x1183   :  { %674 = vrot.lane.b32.xlu1 %v672_v50, %s4724_s4 }
0x11f5   :  { %v675_v51 = vpop.permute.xlu1 %674 }
0x11f6   :  { %v4961_v52 = vadd.f32 %v675_v51, %v667_v58 }
0x11f8   :  { %4706 = vtanh.f32 %v4961_v52 }
0x1205   :  { %v4707_v53 = vpop.eup %4706 }
0x1206   :  { %680 = vrot.lane.b32.xlu0 %v4707_v53, %s4723_s18 }
0x1278   :  { %v681_v54 = vpop.permute.xlu0 %680 }
0x1279   :  { %v4965_v56 = vmul.f32 %v4705_v48, %v681_v54 }
0x127b   :  { %v684_v57 = vpack.c.bf16 %v4965_v56, %v4965_v56 }
0x127d   :  { %686 = vrot.lane.b32.xlu1 %v684_v57, %s4724_s4  ;;  %v821_v57 = vld [vmem:[%s7266_s5 + $0x70] sm:$0xff] }
0x12ef   :  { %v687_v62 = vpop.permute.xlu1 %686 }
0x12f0   :  { %4383 = vmatmul.mubr.msk.bf16.vlgmr.msra.gmra.mxu1 %vm190_vm2, %v687_v62 }
0x12f1   :  { %1032 = vmatprep.mubr.bf16.mxu1 %v4722_v3  ;;  %1013 = vmatpush1.bf16.msra.mxu1 %v4002_v31 }
0x12f2   :  { %1014 = vmatprep.subr.bf16.mxu1 %v3995_v38 }
0x12f5   :  { %1015 = vmatpush1.bf16.msra.mxu1 %v3994_v40 }
0x13b0   :  { %v725_v1 = vpop.f32.mrf.mxu1 }
0x13b1   :  { %v731_v4 = vadd.f32 %v725_v1, %v171_v63 }
0x13b2   :  { %v4384_v5 = vpop.f32.mrf.mxu1 }
0x13b3   :  { %4708 = vtanh.f32 %v731_v4  ;;  %v732_v14 = vsub.f32 0.0, %v731_v4  ;;  %v822_v4 = vld [vmem:[%s7266_s5 + $0x78] sm:$0xff] }
0x13b4   :  { %v728_v59 = vpop.f32.mrf.mxu1 }
0x13b5   :  { %v733_v15 = vmul.f32 1.442695, %v732_v14 }
0x13b6   :  { %v4385_v9 = vpop.f32.mrf.mxu1 }
0x13b7   :  { %4710 = vpow2.f32 %v733_v15 }
0x13c0   :  { %v4709_v10 = vpop.eup %4708 }
0x13c1   :  { %740 = vrot.lane.b32.xlu0 %v4709_v10, %s4723_s18 }
0x13c4   :  { %v4711_v16 = vpop.eup %4710 }
0x13c5   :  { %757 = vperm.xlu0 %4411, %v45_v11   ;;  %v735_v17 = vadd.f32 1.0, %v4711_v16 }
0x13c7   :  { %4712 = vrcp.f32 %v735_v17 }
0x13c9   :  { %772 = vperm.xlu0 %4411, %v48_v12   ;;  %v810_v12 = vld [vmem:[%s7266_s5 + $0x18] sm:$0xff] }
0x13cd   :  { %782 = vperm.xlu0 %4411, %v50_v8   ;;  %v814_v8 = vld [vmem:[%s7266_s5 + $0x38] sm:$0xff] }
0x13ce   :  { %v3999_v17 = vcombine.high %v810_v12, %v814_v8 }
0x13d1   :  { %792 = vperm.xlu0 %4411, %v52_v60  }
0x13d4   :  { %v4987_v7 = vpop.eup %4712 }
0x13d5   :  { %v738_v32 = vmul.f32 %v4987_v7, %v4961_v52 }
0x1433   :  { %v741_v18 = vpop.permute.xlu0 %740 }
0x1434   :  { %v743_v19 = vmul.f32 %v4987_v7, %v741_v18 }
0x1436   :  { %745 = vrot.lane.b32.xlu1 %v743_v19, %s4724_s4 }
0x143a   :  { %762 = vperm.xlu1 %4412, %v46_v20  }
0x143e   :  { %767 = vperm.xlu1 %4412, %v47_v21  }
0x1440   :  { %v5029_v43 = vpop.permute.xlu0 %757 }
0x1441   :  { %7424 = vst [vmem:[#allocation2_spill] sm:$0xff] %v5029_v43  ;;  %v795_v47 = vmul.f32 %v5029_v43, %v4848_v29 }
0x1442   :  { %777 = vperm.xlu1 %4412, %v49_v2  }
0x1444   :  { %v5031_v44 = vpop.permute.xlu0 %772 }
0x1445   :  { %7425 = vst [vmem:[#allocation3_spill] sm:$0xff] %v5031_v44  ;;  %v798_v52 = vmul.f32 %v5031_v44, %v4918_v45 }
0x1446   :  { %787 = vperm.xlu1 %4412, %v51_v23  }
0x1448   :  { %v5047_v53 = vpop.permute.xlu0 %782 }
0x1449   :  { %7428 = vst [vmem:[#allocation6_spill] sm:$0xff] %v5047_v53  ;;  %v800_v62 = vmul.f32 %v5047_v53, %v4950_v34  ;;  %v813_v34 = vld [vmem:[%s7266_s5 + $0x30] sm:$0xff] }
0x144c   :  { %v5071_v11 = vpop.permute.xlu0 %792 }
0x144d   :  { %7431 = vst [vmem:[#allocation9_spill] sm:$0xff] %v5071_v11 }
0x14a8   :  { %v746_v41 = vpop.permute.xlu1 %745 }
0x14a9   :  { %v748_v42 = vadd.f32 %v746_v41, %v738_v32 }
0x14ab   :  { %4714 = vtanh.f32 %v748_v42 }
0x14b5   :  { %v5033_v46 = vpop.permute.xlu1 %762 }
0x14b6   :  { %7426 = vst [vmem:[#allocation4_spill] sm:$0xff] %v5033_v46  ;;  %v796_v48 = vmul.f32 %v5033_v46, %v4876_v55  ;;  %v817_v55 = vld [vmem:[%s7266_s5 + $0x50] sm:$0xff] }
0x14b7   :  { %v4004_v63 = vcombine.low %v817_v55, %v821_v57  ;;  %v4005_v1 = vcombine.high %v817_v55, %v821_v57 }
0x14b8   :  { %v4715_v49 = vpop.eup %4714  ;;  %v803_v50 = vpack.c.bf16 %v796_v48, %v795_v47 }
0x14b9   :  { %v5039_v58 = vpop.permute.xlu1 %767  ;;  %751 = vrot.lane.b32.xlu1 %v4715_v49, %s4723_s18  ;;  %1085 = vmatprep.subr.bf16.mxu0 %v4005_v1 }
0x14ba   :  { %7427 = vst [vmem:[#allocation5_spill] sm:$0xff] %v5039_v58  ;;  %827 = vrot.lane.b32.xlu0 %v803_v50, %s4724_s4  ;;  %v797_v51 = vmul.f32 %v5039_v58, %v4901_v22  ;;  %v818_v22 = vld [vmem:[%s7266_s5 + $0x58] sm:$0xff] }
0x14bb   :  { %v4006_v5 = vcombine.low %v818_v22, %v822_v4  ;;  %v4007_v59 = vcombine.high %v818_v22, %v822_v4 }
0x14bc   :  { %v804_v29 = vpack.c.bf16 %v798_v52, %v797_v51 }
0x14bd   :  { %v5049_v54 = vpop.permute.xlu1 %777  ;;  %1158 = vmatprep.subr.bf16.mxu1 %v4007_v59 }
0x14be   :  { %7429 = vst [vmem:[#allocation7_spill] sm:$0xff] %v5049_v54  ;;  %829 = vrot.lane.b32.xlu1 %v804_v29, %s4724_s4  ;;  %v799_v45 = vmul.f32 %v5049_v54, %v4934_v13  ;;  %v809_v13 = vld [vmem:[%s7266_s5 + $0x10] sm:$0xff] }
0x14bf   :  { %v3997_v16 = vcombine.high %v809_v13, %v813_v34  ;;  %v3996_v20 = vcombine.low %v809_v13, %v813_v34 }
0x14c0   :  { %v805_v9 = vpack.c.bf16 %v800_v62, %v799_v45 }
0x14c1   :  { %v5069_v10 = vpop.permute.xlu1 %787 }
0x14c2   :  { %831 = vrot.lane.b32.xlu0 %v805_v9, %s4724_s4  ;;  %7430 = vst [vmem:[#allocation8_spill] sm:$0xff] %v5069_v10  ;;  %v801_v19 = vmul.f32 %v5069_v10, %v4965_v56 }
0x152b   :  { %v752_v60 = vpop.permute.xlu1 %751 }
0x152c   :  { %v754_v14 = vmul.f32 %v4987_v7, %v752_v60  ;;  %v828_v15 = vpop.permute.xlu0 %827  ;;  %v3998_v7 = vcombine.low %v810_v12, %v814_v8 }
0x152d   :  { %4008 = vmatmul.mubr.msk.bf16.vlgmr.msra.gmra.mxu0 %vm190_vm2, %v828_v15  ;;  %4012 = vmatmul.mubr.msk.bf16.vlgmr.msra.gmra.mxu1 %vm190_vm2, %v828_v15 }
0x152e   :  { %v802_v18 = vmul.f32 %v5071_v11, %v754_v14  ;;  %969 = vmatprep.mubr.bf16.mxu0 %v4722_v3  ;;  %1042 = vmatprep.mubr.bf16.mxu1 %v4722_v3 }
0x152f   :  { %1086 = vmatpush1.bf16.msra.mxu0 %v4004_v63  ;;  %1159 = vmatpush1.bf16.msra.mxu1 %v4006_v5 }
0x1530   :  { %v806_v21 = vpack.c.bf16 %v802_v18, %v801_v19  ;;  %1087 = vmatprep.subr.bf16.mxu0 %v3997_v16  ;;  %1160 = vmatprep.subr.bf16.mxu1 %v3999_v17  ;;  %v830_v2 = vpop.permute.xlu1 %829 }
0x1532   :  { %833 = vrot.lane.b32.xlu1 %v806_v21, %s4724_s4 }
0x1533   :  { %1088 = vmatpush1.bf16.msra.mxu0 %v3996_v20  ;;  %1161 = vmatpush1.bf16.msra.mxu1 %v3998_v7 }
0x1534   :  { %v832_v56 = vpop.permute.xlu0 %831 }
0x1535   :  { %4009 = vmatmul.mubr.msk.bf16.gmra.mxu0 %vm190_vm2, %v830_v2  ;;  %4013 = vmatmul.mubr.msk.bf16.gmra.mxu1 %vm190_vm2, %v830_v2 }
0x1536   :  { %979 = vmatprep.mubr.bf16.mxu0 %v4722_v3  ;;  %1052 = vmatprep.mubr.bf16.mxu1 %v4722_v3 }
0x153d   :  { %4010 = vmatmul.mubr.msk.bf16.gmra.mxu0 %vm190_vm2, %v832_v56  ;;  %4014 = vmatmul.mubr.msk.bf16.gmra.mxu1 %vm190_vm2, %v832_v56 }
0x153e   :  { %989 = vmatprep.mubr.bf16.mxu0 %v4722_v3  ;;  %1062 = vmatprep.mubr.bf16.mxu1 %v4722_v3 }
0x15a4   :  { %v834_v23 = vpop.permute.xlu1 %833 }
0x15a5   :  { %4011 = vmatmul.mubr.msk.bf16.gmra.mxu0 %vm190_vm2, %v834_v23  ;;  %4015 = vmatmul.mubr.msk.bf16.gmra.mxu1 %vm190_vm2, %v834_v23 }
0x15a6   :  { %1105 = vmatprep.mubr.bf16.mxu0 %v4722_v3  ;;  %1178 = vmatprep.mubr.bf16.mxu1 %v4722_v3 }
0x15ad   :  { %4016 = vmatmul.mubr.msk.bf16.vlgmr.msra.gmra.mxu0 %vm190_vm2, %v828_v15  ;;  %4020 = vmatmul.mubr.msk.bf16.vlgmr.msra.gmra.mxu1 %vm190_vm2, %v828_v15 }
0x15ae   :  { %1115 = vmatprep.mubr.bf16.mxu0 %v4722_v3  ;;  %1188 = vmatprep.mubr.bf16.mxu1 %v4722_v3 }
0x15b5   :  { %4017 = vmatmul.mubr.msk.bf16.gmra.mxu0 %vm190_vm2, %v830_v2  ;;  %4021 = vmatmul.mubr.msk.bf16.gmra.mxu1 %vm190_vm2, %v830_v2 }
0x15b6   :  { %1125 = vmatprep.mubr.bf16.mxu0 %v4722_v3  ;;  %1198 = vmatprep.mubr.bf16.mxu1 %v4722_v3 }
0x15bd   :  { %4018 = vmatmul.mubr.msk.bf16.gmra.mxu0 %vm190_vm2, %v832_v56  ;;  %4022 = vmatmul.mubr.msk.bf16.gmra.mxu1 %vm190_vm2, %v832_v56 }
0x15be   :  { %1135 = vmatprep.mubr.bf16.mxu0 %v4722_v3  ;;  %1208 = vmatprep.mubr.bf16.mxu1 %v4722_v3 }
0x15c5   :  { %4019 = vmatmul.mubr.msk.bf16.gmra.mxu0 %vm190_vm2, %v834_v23  ;;  %4023 = vmatmul.mubr.msk.bf16.gmra.mxu1 %vm190_vm2, %v834_v23 }
0x15ed   :  { %v5120_v24 = vpop.f32.mrf.mxu0  ;;  %v5122_v25 = vpop.f32.mrf.mxu1 }
0x15ef   :  { %v5124_v26 = vpop.f32.mrf.mxu0  ;;  %v5126_v6 = vpop.f32.mrf.mxu1 }
0x15f1   :  { %v5128_v27 = vpop.f32.mrf.mxu0  ;;  %v5130_v61 = vpop.f32.mrf.mxu1 }
0x15f2   :  { %7432 = vst [vmem:[#allocation10_spill] sm:$0xff] %v5128_v27  ;;  %7433 = vst [vmem:[#allocation11_spill] sm:$0xff] %v5130_v61  ;;  %v1219_v59 = vadd.f32 %v5128_v27, %v5120_v24  ;;  %v1245_v9 = vadd.f32 %v5130_v61, %v5122_v25 }
0x15f3   :  { %v5132_v28 = vpop.f32.mrf.mxu0  ;;  %v5134_v30 = vpop.f32.mrf.mxu1 }
0x15f4   :  { %7434 = vst [vmem:[#allocation12_spill] sm:$0xff] %v5132_v28  ;;  %v1232_v12 = vadd.f32 %v5132_v28, %v5124_v26  ;;  %v1258_v8 = vadd.f32 %v5134_v30, %v5126_v6 }
0x15f5   :  { %v5136_v3 = vpop.f32.mrf.mxu0  ;;  %v5138_v31 = vpop.f32.mrf.mxu1 }
0x15f6   :  { %7435 = vst [vmem:[#allocation13_spill] sm:$0xff] %v5136_v3  ;;  %7436 = vst [vmem:[#allocation14_spill] sm:$0xff] %v5138_v31  ;;  %v1220_v60 = vadd.f32 %v1219_v59, %v5136_v3  ;;  %v1246_v14 = vadd.f32 %v1245_v9, %v5138_v31 }
0x15f7   :  { %v5140_v33 = vpop.f32.mrf.mxu0  ;;  %v5142_v35 = vpop.f32.mrf.mxu1 }
0x15f8   :  { %7437 = vst [vmem:[#allocation15_spill] sm:$0xff] %v5140_v33  ;;  %v1233_v17 = vadd.f32 %v1232_v12, %v5140_v33  ;;  %v1259_v18 = vadd.f32 %v1258_v8, %v5142_v35 }
0x15f9   :  { %v5144_v36 = vpop.f32.mrf.mxu0  ;;  %v5146_v37 = vpop.f32.mrf.mxu1 }
0x15fa   :  { %7438 = vst [vmem:[#allocation16_spill] sm:$0xff] %v5144_v36  ;;  %7439 = vst [vmem:[#allocation17_spill] sm:$0xff] %v5146_v37  ;;  %v1221_v19 = vadd.f32 %v1220_v60, %v5144_v36  ;;  %v1247_v20 = vadd.f32 %v1246_v14, %v5146_v37 }
0x15fb   :  { %v5148_v38 = vpop.f32.mrf.mxu0  ;;  %v5150_v39 = vpop.f32.mrf.mxu1 }
0x15fc   :  { %7440 = vst [vmem:[#allocation18_spill] sm:$0xff] %v5148_v38  ;;  %v1234_v2 = vadd.f32 %v1233_v17, %v5148_v38  ;;  %v1260_v56 = vadd.f32 %v1259_v18, %v5150_v39 }
0x15fd   :  { %v5152_v40 = vpop.f32.mrf.mxu0  ;;  %v5154_v32 = vpop.f32.mrf.mxu1 }
0x15fe   :  { %7441 = vst [vmem:[#allocation19_spill] sm:$0xff] %v5152_v40  ;;  %7442 = vst [vmem:[#allocation20_spill] sm:$0xff] %v5154_v32  ;;  %v1222_v23 = vadd.f32 %v1221_v19, %v5152_v40  ;;  %v1248_v59 = vadd.f32 %v1247_v20, %v5154_v32 }
0x15ff   :  { %v5156_v41 = vpop.f32.mrf.mxu0  ;;  %v5158_v42 = vpop.f32.mrf.mxu1 }
0x1600   :  { %7443 = vst [vmem:[#allocation21_spill] sm:$0xff] %v5156_v41  ;;  %v1235_v8 = vadd.f32 %v1234_v2, %v5156_v41  ;;  %v1261_v60 = vadd.f32 %v1260_v56, %v5158_v42 }
0x1601   :  { %v5160_v47 = vpop.f32.mrf.mxu0  ;;  %v5162_v48 = vpop.f32.mrf.mxu1 }
0x1602   :  { %7444 = vst [vmem:[#allocation22_spill] sm:$0xff] %v5160_v47  ;;  %7445 = vst [vmem:[#allocation23_spill] sm:$0xff] %v5162_v48  ;;  %v1223_v14 = vadd.f32 %v1222_v23, %v5160_v47  ;;  %v1249_v0 = vadd.f32 %v1248_v59, %v5162_v48 }
0x1603   :  { %v5164_v49 = vpop.f32.mrf.mxu0  ;;  %v5166_v50 = vpop.f32.mrf.mxu1 }
0x1604   :  { %7446 = vst [vmem:[#allocation24_spill] sm:$0xff] %v5164_v49  ;;  %v1236_v18 = vadd.f32 %v1235_v8, %v5164_v49  ;;  %v1262_v19 = vadd.f32 %v1261_v60, %v5166_v50 }
0x1665   :  { %v5168_v51 = vpop.f32.mrf.mxu0  ;;  %v5170_v52 = vpop.f32.mrf.mxu1 }
0x1666   :  { %7447 = vst [vmem:[#allocation25_spill] sm:$0xff] %v5168_v51  ;;  %7448 = vst [vmem:[#allocation26_spill] sm:$0xff] %v5170_v52  ;;  %v1224_v20 = vadd.f32 %v1223_v14, %v5168_v51  ;;  %v1250_v32 = vadd.f32 %v1249_v0, %v5170_v52 }
0x1667   :  { %v5172_v29 = vpop.f32.mrf.mxu0  ;;  %v5174_v55 = vpop.f32.mrf.mxu1 }
0x1668   :  { %7449 = vst [vmem:[#allocation27_spill] sm:$0xff] %v5172_v29  ;;  %v1237_v56 = vadd.f32 %v1236_v18, %v5172_v29  ;;  %v1263_v23 = vadd.f32 %v1262_v19, %v5174_v55 }
0x1669   :  { %v5176_v57 = vpop.f32.mrf.mxu0  ;;  %v5178_v22 = vpop.f32.mrf.mxu1 }
0x166a   :  { %7450 = vst [vmem:[#allocation28_spill] sm:$0xff] %v5176_v57  ;;  %7451 = vst [vmem:[#allocation29_spill] sm:$0xff] %v5178_v22  ;;  %v1225_v59 = vadd.f32 %v1224_v20, %v5176_v57  ;;  %v1251_v48 = vadd.f32 %v1250_v32, %v5178_v22 }
0x166b   :  { %v5180_v45 = vpop.f32.mrf.mxu0  ;;  %v5182_v62 = vpop.f32.mrf.mxu1 }
0x166c   :  { %7452 = vst [vmem:[#allocation30_spill] sm:$0xff] %v5180_v45  ;;  %v1238_v14 = vadd.f32 %v1237_v56, %v5180_v45  ;;  %v1264_v18 = vadd.f32 %v1263_v23, %v5182_v62  ;;  %v1226_v29 = vrot.slane %v1225_v59, 4  ;;  %v1252_v51 = vrot.slane %v1251_v48, 4 }
0x166d   :  { %v5184_v63 = vpop.f32.mrf.mxu0  ;;  %v5186_v1 = vpop.f32.mrf.mxu1 }
0x166e   :  { %7453 = vst [vmem:[#allocation31_spill] sm:$0xff] %v5186_v1  ;;  %v1239_v36 = vrot.slane %v1238_v14, 4  ;;  %v1265_v31 = vrot.slane %v1264_v18, 4 }
0x166f   :  { %v5188_v4 = vpop.f32.mrf.mxu0  ;;  %v5190_v5 = vpop.f32.mrf.mxu1 }
0x1671   :  { %v5196_v13 = vpop.f32.mrf.mxu0  ;;  %v5198_v34 = vpop.f32.mrf.mxu1 }
0x1672   :  { %7454 = vst [vmem:[#allocation32_spill] sm:$0xff] %v5196_v13  ;;  %7455 = vst [vmem:[#allocation33_spill] sm:$0xff] %v5198_v34  ;;  %v1271_v60 = vadd.f32 %v5196_v13, %v5184_v63  ;;  %v1297_v0 = vadd.f32 %v5198_v34, %v5186_v1 }
0x1673   :  { %v5206_v15 = vpop.f32.mrf.mxu0  ;;  %v5208_v16 = vpop.f32.mrf.mxu1 }
0x1674   :  { %7456 = vst [vmem:[#allocation34_spill] sm:$0xff] %v5206_v15  ;;  %v1284_v32 = vadd.f32 %v5206_v15, %v5188_v4  ;;  %v1310_v20 = vadd.f32 %v5208_v16, %v5190_v5 }
0x1675   :  { %v5214_v7 = vpop.f32.mrf.mxu0  ;;  %v5216_v21 = vpop.f32.mrf.mxu1 }
0x1676   :  { %7457 = vst [vmem:[#allocation35_spill] sm:$0xff] %v5214_v7  ;;  %7458 = vst [vmem:[#allocation36_spill] sm:$0xff] %v5216_v21  ;;  %v1272_v22 = vadd.f32 %v1271_v60, %v5214_v7  ;;  %v1298_v57 = vadd.f32 %v1297_v0, %v5216_v21 }
0x1677   :  { %v5222_v9 = vpop.f32.mrf.mxu0  ;;  %v5224_v12 = vpop.f32.mrf.mxu1 }
0x1678   :  { %7459 = vst [vmem:[#allocation37_spill] sm:$0xff] %v5222_v9  ;;  %v1285_v23 = vadd.f32 %v1284_v32, %v5222_v9  ;;  %v1311_v45 = vadd.f32 %v1310_v20, %v5224_v12  ;;  %v1227_v9 = vadd.f32 %v1226_v29, %v1225_v59  ;;  %v1253_v20 = vadd.f32 %v1252_v51, %v1251_v48 }
0x1679   :  { %v5230_v37 = vpop.f32.mrf.mxu0  ;;  %v5232_v17 = vpop.f32.mrf.mxu1 }
0x167a   :  { %7460 = vst [vmem:[#allocation38_spill] sm:$0xff] %v5230_v37  ;;  %7461 = vst [vmem:[#allocation39_spill] sm:$0xff] %v5232_v17  ;;  %v1273_v41 = vadd.f32 %v1272_v22, %v5230_v37  ;;  %v1299_v38 = vadd.f32 %v1298_v57, %v5232_v17  ;;  %v1228_v59 = vrot.slane %v1227_v9, 2 }
0x167b   :  { %v5238_v40 = vpop.f32.mrf.mxu0  ;;  %v5240_v2 = vpop.f32.mrf.mxu1 }
0x167c   :  { %7462 = vst [vmem:[#allocation40_spill] sm:$0xff] %v5238_v40  ;;  %v1286_v0 = vadd.f32 %v1285_v23, %v5238_v40  ;;  %v1312_v21 = vadd.f32 %v1311_v45, %v5240_v2  ;;  %v1240_v40 = vadd.f32 %v1239_v36, %v1238_v14  ;;  %v1266_v45 = vadd.f32 %v1265_v31, %v1264_v18 }
0x167d   :  { %v5246_v47 = vpop.f32.mrf.mxu0  ;;  %v5248_v8 = vpop.f32.mrf.mxu1 }
0x167e   :  { %7463 = vst [vmem:[#allocation41_spill] sm:$0xff] %v5246_v47  ;;  %7464 = vst [vmem:[#allocation42_spill] sm:$0xff] %v5248_v8  ;;  %v1274_v7 = vadd.f32 %v1273_v41, %v5246_v47  ;;  %v1300_v32 = vadd.f32 %v1299_v38, %v5248_v8 }
0x167f   :  { %v5256_v52 = vpop.f32.mrf.mxu0  ;;  %v5258_v19 = vpop.f32.mrf.mxu1 }
0x1680   :  { %7465 = vst [vmem:[#allocation43_spill] sm:$0xff] %v5256_v52  ;;  %v1287_v57 = vadd.f32 %v1286_v0, %v5256_v52  ;;  %v1313_v17 = vadd.f32 %v1312_v21, %v5258_v19  ;;  %v1254_v21 = vrot.slane %v1253_v20, 2 }
0x1681   :  { %v5266_v49 = vpop.f32.mrf.mxu0  ;;  %v5268_v56 = vpop.f32.mrf.mxu1 }
0x1682   :  { %7466 = vst [vmem:[#allocation44_spill] sm:$0xff] %v5266_v49  ;;  %7467 = vst [vmem:[#allocation45_spill] sm:$0xff] %v5268_v56  ;;  %v1275_v37 = vadd.f32 %v1274_v7, %v5266_v49  ;;  %v1301_v23 = vadd.f32 %v1300_v32, %v5268_v56  ;;  %v1241_v32 = vrot.slane %v1240_v40, 2 }
0x1683   :  { %v5274_v33 = vpop.f32.mrf.mxu0  ;;  %v5276_v60 = vpop.f32.mrf.mxu1 }
0x1684   :  { %7468 = vst [vmem:[#allocation46_spill] sm:$0xff] %v5274_v33  ;;  %v1288_v38 = vadd.f32 %v1287_v57, %v5274_v33  ;;  %v1314_v48 = vadd.f32 %v1313_v17, %v5276_v60  ;;  %v1267_v17 = vrot.slane %v1266_v45, 2  ;;  %v1229_v33 = vadd.f32 %v1228_v59, %v1227_v9 }
0x1685   :  { %v5282_v3 = vpop.f32.mrf.mxu0  ;;  %v5284_v22 = vpop.f32.mrf.mxu1 }
0x1686   :  { %7469 = vst [vmem:[#allocation47_spill] sm:$0xff] %v5282_v3  ;;  %7470 = vst [vmem:[#allocation48_spill] sm:$0xff] %v5284_v22  ;;  %v1276_v51 = vadd.f32 %v1275_v37, %v5282_v3  ;;  %v1302_v29 = vadd.f32 %v1301_v23, %v5284_v22  ;;  %v1230_v15 = vrot.slane %v1229_v33, 1 }
0x1687   :  { %v5290_v34 = vpop.f32.mrf.mxu0  ;;  %v5292_v41 = vpop.f32.mrf.mxu1 }
0x1688   :  { %7471 = vst [vmem:[#allocation49_spill] sm:$0xff] %v5290_v34  ;;  %v1289_v31 = vadd.f32 %v1288_v38, %v5290_v34  ;;  %v1315_v36 = vadd.f32 %v1314_v48, %v5292_v41  ;;  %v1255_v38 = vadd.f32 %v1254_v21, %v1253_v20  ;;  %v1231_v21 = vadd.f32 %v1230_v15, %v1229_v33 }
0x1689   :  { %v5298_v0 = vpop.f32.mrf.mxu0  ;;  %v5300_v7 = vpop.f32.mrf.mxu1 }
0x168a   :  { %7472 = vst [vmem:[#allocation50_spill] sm:$0xff] %v5298_v0  ;;  %7473 = vst [vmem:[#allocation51_spill] sm:$0xff] %v5300_v7  ;;  %v1277_v14 = vadd.f32 %v1276_v51, %v5298_v0  ;;  %v1303_v18 = vadd.f32 %v1302_v29, %v5300_v7  ;;  %v1242_v0 = vadd.f32 %v1241_v32, %v1240_v40  ;;  %v1256_v13 = vrot.slane %v1255_v38, 1 }
0x168b   :  { %v5306_v57 = vpop.f32.mrf.mxu0  ;;  %v5308_v37 = vpop.f32.mrf.mxu1  ;;  %v1268_v29 = vadd.f32 %v1267_v17, %v1266_v45 }
0x168c   :  { %7474 = vst [vmem:[#allocation52_spill] sm:$0xff] %v5306_v57  ;;  %v1278_v23 = vrot.slane %v1277_v14, 4  ;;  %v1304_v22 = vrot.slane %v1303_v18, 4  ;;  %v1290_v3 = vadd.f32 %v1289_v31, %v5306_v57  ;;  %v1316_v56 = vadd.f32 %v1315_v36, %v5308_v37 }
0x168d   :  { %v1243_v57 = vrot.slane %v1242_v0, 1  ;;  %v1269_v36 = vrot.slane %v1268_v29, 1 }
0x168e   :  { %v1279_v34 = vadd.f32 %v1278_v23, %v1277_v14  ;;  %v1305_v48 = vadd.f32 %v1304_v22, %v1303_v18  ;;  %v1291_v49 = vrot.slane %v1290_v3, 4  ;;  %v1317_v51 = vrot.slane %v1316_v56, 4 }
0x168f   :  { %v1257_v14 = vadd.f32 %v1256_v13, %v1255_v38 }
0x1690   :  { %v1280_v7 = vrot.slane %v1279_v34, 2  ;;  %v1306_v8 = vrot.slane %v1305_v48, 2  ;;  %v1292_v52 = vadd.f32 %v1291_v49, %v1290_v3  ;;  %v1318_v47 = vadd.f32 %v1317_v51, %v1316_v56 }
0x1691   :  { %v1244_v3 = vadd.f32 %v1243_v57, %v1242_v0  ;;  %v1270_v49 = vadd.f32 %v1269_v36, %v1268_v29 }
0x1692   :  { %v1281_v61 = vadd.f32 %v1280_v7, %v1279_v34  ;;  %v1307_v28 = vadd.f32 %v1306_v8, %v1305_v48  ;;  %v1293_v27 = vrot.slane %v1292_v52, 2  ;;  %v1319_v31 = vrot.slane %v1318_v47, 2 }
0x1694   :  { %v1282_v9 = vrot.slane %v1281_v61, 1  ;;  %v1308_v20 = vrot.slane %v1307_v28, 1  ;;  %v1294_v59 = vadd.f32 %v1293_v27, %v1292_v52  ;;  %v1320_v22 = vadd.f32 %v1319_v31, %v1318_v47 }
0x1696   :  { %v1283_v40 = vadd.f32 %v1282_v9, %v1281_v61  ;;  %v1309_v45 = vadd.f32 %v1308_v20, %v1307_v28  ;;  %v1295_v18 = vrot.slane %v1294_v59, 1  ;;  %v1321_v32 = vrot.slane %v1320_v22, 1 }
0x1697   :  { %v1343_v61 = vlaneseq }
0x1698   :  { %v1296_v56 = vadd.f32 %v1295_v18, %v1294_v59  ;;  %v1322_v17 = vadd.f32 %v1321_v32, %v1320_v22  ;;  %v1323_v34 = vadd.f32 %v1283_v40, %v1231_v21  ;;  %v1325_v8 = vadd.f32 %v1309_v45, %v1257_v14 }
0x1699   :  { %v1344_v28 = vshrl.u32 %v1343_v61, 7 }
0x169a   :  { %v1324_v7 = vadd.f32 %v1296_v56, %v1244_v3  ;;  %v1326_v23 = vadd.f32 %v1322_v17, %v1270_v49  ;;  %v1327_v48 = vadd.f32 %v1325_v8, %v1323_v34 }
0x169b   :  { %v5317_v52 = vsub.s32 0, %v1344_v28 }
0x169c   :  { %v1328_v51 = vadd.f32 %v1326_v23, %v1324_v7 }
0x169d   :  { %7475 = vst [vmem:[#allocation53_spill] sm:$0xff] %v5317_v52 }
0x169e   :  { %v1329_v1 = vadd.f32 %v1328_v51, %v1327_v48 }
0x16a0   :  { %1331 = vrot.lane.b32.xlu0 %v1329_v1, %s4723_s18 }
0x1712   :  { %v1332_v27 = vpop.permute.xlu0 %1331 }
0x1713   :  { %v1334_v33 = vadd.f32 %v1332_v27, %v1329_v1 }
0x1715   :  { %v5313_v47 = vmul.f32 0.002232143, %v1334_v33 }
0x1717   :  { %1337 = vrot.lane.b32.xlu1 %v5313_v47, %s4723_s18  ;;  %v1342_v13 = vsel %vm1340_vm3, %v5313_v47, 0.0 }
0x1718   :  { %v1350_v15 = vrot.slane %v1342_v13, %v5317_v52 }
0x171a   :  { %v1354_v0 = vsub.f32 %v5126_v6, %v1350_v15  ;;  %v1358_v57 = vsub.f32 %v5190_v5, %v1350_v15  ;;  %v1362_v1 = vsub.f32 %v5134_v30, %v1350_v15  ;;  %v1366_v38 = vsub.f32 %v5208_v16, %v1350_v15 }
0x171b   :  { %v1370_v6 = vsub.f32 %v5142_v35, %v1350_v15  ;;  %v1374_v5 = vsub.f32 %v5224_v12, %v1350_v15  ;;  %v1378_v22 = vsub.f32 %v5150_v39, %v1350_v15  ;;  %v1382_v21 = vsub.f32 %v5240_v2, %v1350_v15 }
0x171c   :  { %v5327_v29 = vmul.f32 %v1354_v0, %v5029_v43  ;;  %v5330_v31 = vmul.f32 %v1358_v57, %v5029_v43  ;;  %v5333_v36 = vmul.f32 %v1362_v1, %v5033_v46  ;;  %v5336_v9 = vmul.f32 %v1366_v38, %v5033_v46 }
0x171d   :  { %v5351_v35 = vmul.f32 %v1370_v6, %v5039_v58  ;;  %v5354_v12 = vmul.f32 %v1374_v5, %v5039_v58  ;;  %v1386_v45 = vsub.f32 %v5158_v42, %v1350_v15  ;;  %v1390_v18 = vsub.f32 %v5258_v19, %v1350_v15 }
0x171e   :  { %7476 = vst [vmem:[#allocation54_spill] sm:$0xff] %v5327_v29  ;;  %7477 = vst [vmem:[#allocation55_spill] sm:$0xff] %v5330_v31  ;;  %v1482_v30 = vmul.f32 %v5327_v29, %v5327_v29  ;;  %v1486_v16 = vmul.f32 %v5330_v31, %v5330_v31  ;;  %v1490_v20 = vmul.f32 %v5333_v36, %v5333_v36 }
0x171f   :  { %7478 = vst [vmem:[#allocation56_spill] sm:$0xff] %v5333_v36  ;;  %7479 = vst [vmem:[#allocation57_spill] sm:$0xff] %v5336_v9  ;;  %v1494_v59 = vmul.f32 %v5336_v9, %v5336_v9  ;;  %v5359_v32 = vmul.f32 %v1378_v22, %v5031_v44  ;;  %v5362_v3 = vmul.f32 %v1382_v21, %v5031_v44 }
0x1720   :  { %7480 = vst [vmem:[#allocation58_spill] sm:$0xff] %v5351_v35  ;;  %7481 = vst [vmem:[#allocation59_spill] sm:$0xff] %v5354_v12  ;;  %v1582_v14 = vadd.f32 %v1490_v20, %v1482_v30  ;;  %v1498_v39 = vmul.f32 %v5351_v35, %v5351_v35  ;;  %v1502_v2 = vmul.f32 %v5354_v12, %v5354_v12 }
0x1721   :  { %v1634_v40 = vadd.f32 %v1494_v59, %v1486_v16  ;;  %7482 = vst [vmem:[#allocation60_spill] sm:$0xff] %v5359_v32  ;;  %7483 = vst [vmem:[#allocation61_spill] sm:$0xff] %v5362_v3  ;;  %v1394_v17 = vsub.f32 %v5166_v50, %v1350_v15  ;;  %v1398_v42 = vsub.f32 %v5276_v60, %v1350_v15 }
0x1722   :  { %v1583_v49 = vadd.f32 %v1582_v14, %v1498_v39  ;;  %v5371_v19 = vmul.f32 %v1386_v45, %v5049_v54  ;;  %v5374_v34 = vmul.f32 %v1390_v18, %v5049_v54  ;;  %v1506_v8 = vmul.f32 %v5359_v32, %v5359_v32 }
0x1723   :  { %v1635_v56 = vadd.f32 %v1634_v40, %v1502_v2  ;;  %v1510_v7 = vmul.f32 %v5362_v3, %v5362_v3  ;;  %v1402_v51 = vsub.f32 %v5174_v55, %v1350_v15  ;;  %v1406_v50 = vsub.f32 %v5292_v41, %v1350_v15 }
0x1724   :  { %7484 = vst [vmem:[#allocation62_spill] sm:$0xff] %v5371_v19  ;;  %7485 = vst [vmem:[#allocation63_spill] sm:$0xff] %v5374_v34  ;;  %v1584_v23 = vadd.f32 %v1583_v49, %v1506_v8  ;;  %v5383_v60 = vmul.f32 %v1394_v17, %v5047_v53  ;;  %v5386_v27 = vmul.f32 %v1398_v42, %v5047_v53 }
0x1725   :  { %v1636_v48 = vadd.f32 %v1635_v56, %v1510_v7  ;;  %v1514_v33 = vmul.f32 %v5371_v19, %v5371_v19  ;;  %v1518_v61 = vmul.f32 %v5374_v34, %v5374_v34  ;;  %v1410_v0 = vsub.f32 %v5182_v62, %v1350_v15 }
0x1726   :  { %7486 = vst [vmem:[#allocation64_spill] sm:$0xff] %v5383_v60  ;;  %7487 = vst [vmem:[#allocation65_spill] sm:$0xff] %v5386_v27  ;;  %v1414_v55 = vsub.f32 %v5308_v37, %v1350_v15  ;;  %v5395_v41 = vmul.f32 %v1402_v51, %v5069_v10  ;;  %v5398_v57 = vmul.f32 %v1406_v50, %v5069_v10  ;;  %v7494_v51 = vld [vmem:[#allocation31_spill] sm:$0xff] }
0x1727   :  { %v1585_v28 = vadd.f32 %v1584_v23, %v1514_v33  ;;  %v1637_v13 = vadd.f32 %v1636_v48, %v1518_v61  ;;  %v1522_v1 = vmul.f32 %v5383_v60, %v5383_v60  ;;  %v1526_v38 = vmul.f32 %v5386_v27, %v5386_v27  ;;  %v7495_v33 = vld [vmem:[#allocation10_spill] sm:$0xff] }
0x1728   :  { %7488 = vst [vmem:[#allocation66_spill] sm:$0xff] %v5395_v41  ;;  %7489 = vst [vmem:[#allocation67_spill] sm:$0xff] %v5398_v57  ;;  %v5405_v30 = vmul.f32 %v1410_v0, %v5071_v11  ;;  %v5408_v62 = vmul.f32 %v1414_v55, %v5071_v11  ;;  %v1530_v37 = vmul.f32 %v5395_v41, %v5395_v41 }
0x1729   :  { %v1586_v6 = vadd.f32 %v1585_v28, %v1522_v1  ;;  %v1638_v5 = vadd.f32 %v1637_v13, %v1526_v38  ;;  %v1534_v15 = vmul.f32 %v5398_v57, %v5398_v57  ;;  %v7501_v38 = vld [vmem:[#allocation13_spill] sm:$0xff] }
0x172a   :  { %7490 = vst [vmem:[#allocation68_spill] sm:$0xff] %v5405_v30  ;;  %7491 = vst [vmem:[#allocation69_spill] sm:$0xff] %v5408_v62  ;;  %v1538_v59 = vmul.f32 %v5405_v30, %v5405_v30  ;;  %v1542_v22 = vmul.f32 %v5408_v62, %v5408_v62 }
0x172b   :  { %v1587_v16 = vadd.f32 %v1586_v6, %v1530_v37  ;;  %v1639_v20 = vadd.f32 %v1638_v5, %v1534_v15  ;;  %v7502_v5 = vld [vmem:[#allocation15_spill] sm:$0xff]  ;;  %v7503_v15 = vld [vmem:[#allocation14_spill] sm:$0xff] }
0x172d   :  { %v1588_v21 = vadd.f32 %v1587_v16, %v1538_v59  ;;  %v1640_v14 = vadd.f32 %v1639_v20, %v1542_v22  ;;  %v7504_v20 = vld [vmem:[#allocation35_spill] sm:$0xff]  ;;  %v7505_v22 = vld [vmem:[#allocation37_spill] sm:$0xff] }
0x172f   :  { %v1589_v40 = vrot.slane %v1588_v21, 4  ;;  %v1641_v45 = vrot.slane %v1640_v14, 4 }
0x1731   :  { %v5420_v2 = vadd.f32 %v1589_v40, %v1588_v21  ;;  %v5422_v49 = vadd.f32 %v1641_v45, %v1640_v14  ;;  %v7506_v14 = vld [vmem:[#allocation36_spill] sm:$0xff] }
0x1732   :  { %v7507_v45 = vld [vmem:[#allocation16_spill] sm:$0xff] }
0x1733   :  { %7492 = vst [vmem:[#allocation70_spill] sm:$0xff] %v5420_v2  ;;  %7493 = vst [vmem:[#allocation71_spill] sm:$0xff] %v5422_v49 }
0x1789   :  { %v1338_v18 = vpop.permute.xlu1 %1337 }
0x178a   :  { %v1341_v39 = vsel %vm1340_vm3, %v5313_v47, %v1338_v18 }
0x178b   :  { %v5425_v56 = vrot.slane %v1341_v39, %v5317_v52  ;;  %v7508_v39 = vld [vmem:[#allocation18_spill] sm:$0xff] }
0x178d   :  { %v1351_v8 = vsub.f32 %v5120_v24, %v5425_v56  ;;  %v1352_v7 = vsub.f32 %v5124_v26, %v5425_v56  ;;  %v1353_v47 = vsub.f32 %v5122_v25, %v5425_v56  ;;  %v1355_v23 = vsub.f32 %v5184_v63, %v5425_v56  ;;  %v7496_v24 = vld [vmem:[#allocation12_spill] sm:$0xff]  ;;  %v7497_v26 = vld [vmem:[#allocation11_spill] sm:$0xff]  ;;  %v7499_v63 = vld [vmem:[#allocation34_spill] sm:$0xff] }
0x178e   :  { %v1356_v48 = vsub.f32 %v5188_v4, %v5425_v56  ;;  %v1357_v50 = vsub.f32 %v7494_v51, %v5425_v56  ;;  %v1359_v61 = vsub.f32 %v7495_v33, %v5425_v56  ;;  %v1360_v28 = vsub.f32 %v7496_v24, %v5425_v56  ;;  %v7498_v25 = vld [vmem:[#allocation32_spill] sm:$0xff]  ;;  %v7500_v4 = vld [vmem:[#allocation33_spill] sm:$0xff] }
0x178f   :  { %v1361_v13 = vsub.f32 %v7497_v26, %v5425_v56  ;;  %v1363_v0 = vsub.f32 %v7498_v25, %v5425_v56  ;;  %v1364_v55 = vsub.f32 %v7499_v63, %v5425_v56  ;;  %v1365_v1 = vsub.f32 %v7500_v4, %v5425_v56  ;;  %v7509_v33 = vld [vmem:[#allocation17_spill] sm:$0xff]  ;;  %v7510_v26 = vld [vmem:[#allocation38_spill] sm:$0xff]  ;;  %v7511_v63 = vld [vmem:[#allocation40_spill] sm:$0xff] }
0x1790   :  { %v1367_v6 = vsub.f32 %v7501_v38, %v5425_v56  ;;  %v1368_v37 = vsub.f32 %v7502_v5, %v5425_v56  ;;  %v1369_v16 = vsub.f32 %v7503_v15, %v5425_v56  ;;  %v1371_v59 = vsub.f32 %v7504_v20, %v5425_v56  ;;  %v7512_v38 = vld [vmem:[#allocation39_spill] sm:$0xff] }
0x1791   :  { %v1372_v21 = vsub.f32 %v7505_v22, %v5425_v56  ;;  %v1373_v40 = vsub.f32 %v7506_v14, %v5425_v56  ;;  %v1375_v18 = vsub.f32 %v7507_v45, %v5425_v56  ;;  %v1376_v51 = vsub.f32 %v7508_v39, %v5425_v56  ;;  %v7513_v15 = vld [vmem:[#allocation19_spill] sm:$0xff]  ;;  %v7514_v22 = vld [vmem:[#allocation21_spill] sm:$0xff]  ;;  %v7515_v45 = vld [vmem:[#allocation20_spill] sm:$0xff] }
0x1792   :  { %v1377_v24 = vsub.f32 %v7509_v33, %v5425_v56  ;;  %v1379_v25 = vsub.f32 %v7510_v26, %v5425_v56  ;;  %v1380_v4 = vsub.f32 %v7511_v63, %v5425_v56  ;;  %v1381_v5 = vsub.f32 %v7512_v38, %v5425_v56  ;;  %v7516_v33 = vld [vmem:[#allocation41_spill] sm:$0xff]  ;;  %v7517_v26 = vld [vmem:[#allocation43_spill] sm:$0xff]  ;;  %v7518_v63 = vld [vmem:[#allocation42_spill] sm:$0xff] }
0x1793   :  { %v1383_v20 = vsub.f32 %v7513_v15, %v5425_v56  ;;  %v1384_v14 = vsub.f32 %v7514_v22, %v5425_v56  ;;  %v1385_v39 = vsub.f32 %v7515_v45, %v5425_v56  ;;  %v1387_v42 = vsub.f32 %v7516_v33, %v5425_v56  ;;  %v7519_v38 = vld [vmem:[#allocation22_spill] sm:$0xff]  ;;  %v7520_v15 = vld [vmem:[#allocation24_spill] sm:$0xff]  ;;  %v7521_v22 = vld [vmem:[#allocation23_spill] sm:$0xff] }
0x1794   :  { %v1388_v17 = vsub.f32 %v7517_v26, %v5425_v56  ;;  %v1389_v62 = vsub.f32 %v7518_v63, %v5425_v56  ;;  %v1391_v30 = vsub.f32 %v7519_v38, %v5425_v56  ;;  %v1392_v57 = vsub.f32 %v7520_v15, %v5425_v56  ;;  %v7522_v45 = vld [vmem:[#allocation44_spill] sm:$0xff]  ;;  %v7523_v33 = vld [vmem:[#allocation46_spill] sm:$0xff]  ;;  %v7524_v26 = vld [vmem:[#allocation45_spill] sm:$0xff] }
0x1795   :  { %v1393_v41 = vsub.f32 %v7521_v22, %v5425_v56  ;;  %v1395_v27 = vsub.f32 %v7522_v45, %v5425_v56  ;;  %v1396_v60 = vsub.f32 %v7523_v33, %v5425_v56  ;;  %v1397_v34 = vsub.f32 %v7524_v26, %v5425_v56  ;;  %v7525_v63 = vld [vmem:[#allocation25_spill] sm:$0xff]  ;;  %v7526_v38 = vld [vmem:[#allocation27_spill] sm:$0xff]  ;;  %v7527_v15 = vld [vmem:[#allocation26_spill] sm:$0xff] }
0x1796   :  { %v1399_v19 = vsub.f32 %v7525_v63, %v5425_v56  ;;  %v1400_v3 = vsub.f32 %v7526_v38, %v5425_v56  ;;  %v1401_v32 = vsub.f32 %v7527_v15, %v5425_v56  ;;  %v7528_v22 = vld [vmem:[#allocation47_spill] sm:$0xff]  ;;  %v7529_v45 = vld [vmem:[#allocation49_spill] sm:$0xff]  ;;  %v7530_v33 = vld [vmem:[#allocation48_spill] sm:$0xff] }
0x1797   :  { %v1403_v12 = vsub.f32 %v7528_v22, %v5425_v56  ;;  %v1404_v35 = vsub.f32 %v7529_v45, %v5425_v56  ;;  %v1405_v9 = vsub.f32 %v7530_v33, %v5425_v56  ;;  %v7531_v26 = vld [vmem:[#allocation28_spill] sm:$0xff]  ;;  %v7532_v63 = vld [vmem:[#allocation30_spill] sm:$0xff]  ;;  %v7533_v38 = vld [vmem:[#allocation29_spill] sm:$0xff]  ;;  %v5526_v33 = vmul.f32 %v1351_v8, %v5029_v43 }
0x1798   :  { %v1407_v36 = vsub.f32 %v7531_v26, %v5425_v56  ;;  %v1408_v31 = vsub.f32 %v7532_v63, %v5425_v56  ;;  %v1409_v29 = vsub.f32 %v7533_v38, %v5425_v56  ;;  %v7534_v15 = vld [vmem:[#allocation50_spill] sm:$0xff]  ;;  %v7535_v22 = vld [vmem:[#allocation52_spill] sm:$0xff]  ;;  %v7536_v45 = vld [vmem:[#allocation51_spill] sm:$0xff]  ;;  %v5529_v26 = vmul.f32 %v1352_v7, %v5029_v43 }
0x1799   :  { %v1411_v52 = vsub.f32 %v7534_v15, %v5425_v56  ;;  %v1412_v49 = vsub.f32 %v7535_v22, %v5425_v56  ;;  %v1413_v2 = vsub.f32 %v7536_v45, %v5425_v56  ;;  %7537 = vst [vmem:[#allocation31_spill] sm:$0xff] %v5526_v33  ;;  %v5532_v63 = vmul.f32 %v1353_v47, %v5029_v43 }
0x179a   :  { %7538 = vst [vmem:[#allocation10_spill] sm:$0xff] %v5529_v26  ;;  %v5535_v38 = vmul.f32 %v1355_v23, %v5029_v43  ;;  %v5538_v15 = vmul.f32 %v1356_v48, %v5029_v43  ;;  %v5541_v22 = vmul.f32 %v1357_v50, %v5029_v43  ;;  %v5544_v56 = vmul.f32 %v1359_v61, %v5033_v46 }
0x179b   :  { %7539 = vst [vmem:[#allocation12_spill] sm:$0xff] %v5532_v63  ;;  %v5547_v8 = vmul.f32 %v1360_v28, %v5033_v46  ;;  %v5550_v7 = vmul.f32 %v1361_v13, %v5033_v46  ;;  %v5553_v47 = vmul.f32 %v1363_v0, %v5033_v46  ;;  %v5556_v23 = vmul.f32 %v1364_v55, %v5033_v46 }
0x179c   :  { %7540 = vst [vmem:[#allocation11_spill] sm:$0xff] %v5535_v38  ;;  %7541 = vst [vmem:[#allocation32_spill] sm:$0xff] %v5538_v15  ;;  %v5559_v48 = vmul.f32 %v1365_v1, %v5033_v46  ;;  %v5562_v50 = vmul.f32 %v1367_v6, %v5039_v58  ;;  %v5565_v61 = vmul.f32 %v1368_v37, %v5039_v58 }
0x179d   :  { %7542 = vst [vmem:[#allocation34_spill] sm:$0xff] %v5541_v22  ;;  %7543 = vst [vmem:[#allocation33_spill] sm:$0xff] %v5544_v56  ;;  %v5568_v28 = vmul.f32 %v1369_v16, %v5039_v58  ;;  %v5571_v13 = vmul.f32 %v1371_v59, %v5039_v58  ;;  %v5574_v0 = vmul.f32 %v1372_v21, %v5039_v58 }
0x179e   :  { %7544 = vst [vmem:[#allocation13_spill] sm:$0xff] %v5547_v8  ;;  %7545 = vst [vmem:[#allocation15_spill] sm:$0xff] %v5550_v7  ;;  %v5577_v55 = vmul.f32 %v1373_v40, %v5039_v58  ;;  %v5580_v1 = vmul.f32 %v1375_v18, %v5031_v44  ;;  %v5583_v6 = vmul.f32 %v1376_v51, %v5031_v44 }
0x179f   :  { %7546 = vst [vmem:[#allocation14_spill] sm:$0xff] %v5553_v47  ;;  %7547 = vst [vmem:[#allocation35_spill] sm:$0xff] %v5556_v23  ;;  %v5586_v37 = vmul.f32 %v1377_v24, %v5031_v44  ;;  %v5589_v16 = vmul.f32 %v1379_v25, %v5031_v44  ;;  %v5592_v59 = vmul.f32 %v1380_v4, %v5031_v44 }
0x17a0   :  { %7548 = vst [vmem:[#allocation37_spill] sm:$0xff] %v5559_v48  ;;  %7549 = vst [vmem:[#allocation36_spill] sm:$0xff] %v5562_v50  ;;  %v5595_v21 = vmul.f32 %v1381_v5, %v5031_v44  ;;  %v5598_v40 = vmul.f32 %v1383_v20, %v5049_v54  ;;  %v5601_v18 = vmul.f32 %v1384_v14, %v5049_v54 }
0x17a1   :  { %7550 = vst [vmem:[#allocation16_spill] sm:$0xff] %v5565_v61  ;;  %7551 = vst [vmem:[#allocation18_spill] sm:$0xff] %v5568_v28  ;;  %v5604_v51 = vmul.f32 %v1385_v39, %v5049_v54  ;;  %v5607_v24 = vmul.f32 %v1387_v42, %v5049_v54  ;;  %v5610_v25 = vmul.f32 %v1388_v17, %v5049_v54 }
0x17a2   :  { %7552 = vst [vmem:[#allocation17_spill] sm:$0xff] %v5571_v13  ;;  %7553 = vst [vmem:[#allocation38_spill] sm:$0xff] %v5574_v0  ;;  %v5613_v4 = vmul.f32 %v1389_v62, %v5049_v54  ;;  %v5616_v5 = vmul.f32 %v1391_v30, %v5047_v53  ;;  %v5619_v20 = vmul.f32 %v1392_v57, %v5047_v53 }
0x17a3   :  { %7554 = vst [vmem:[#allocation40_spill] sm:$0xff] %v5577_v55  ;;  %7555 = vst [vmem:[#allocation39_spill] sm:$0xff] %v5580_v1  ;;  %v5622_v14 = vmul.f32 %v1393_v41, %v5047_v53  ;;  %v5625_v39 = vmul.f32 %v1395_v27, %v5047_v53  ;;  %v5628_v42 = vmul.f32 %v1396_v60, %v5047_v53 }
0x17a4   :  { %7556 = vst [vmem:[#allocation19_spill] sm:$0xff] %v5583_v6  ;;  %7557 = vst [vmem:[#allocation21_spill] sm:$0xff] %v5586_v37  ;;  %v5631_v17 = vmul.f32 %v1397_v34, %v5047_v53  ;;  %v5634_v62 = vmul.f32 %v1399_v19, %v5069_v10  ;;  %v5637_v30 = vmul.f32 %v1400_v3, %v5069_v10 }
0x17a5   :  { %7558 = vst [vmem:[#allocation20_spill] sm:$0xff] %v5589_v16  ;;  %7559 = vst [vmem:[#allocation41_spill] sm:$0xff] %v5592_v59  ;;  %v5640_v57 = vmul.f32 %v1401_v32, %v5069_v10  ;;  %v5643_v41 = vmul.f32 %v1403_v12, %v5069_v10  ;;  %v5646_v27 = vmul.f32 %v1404_v35, %v5069_v10 }
0x17a6   :  { %7560 = vst [vmem:[#allocation43_spill] sm:$0xff] %v5595_v21  ;;  %7561 = vst [vmem:[#allocation42_spill] sm:$0xff] %v5598_v40  ;;  %v5649_v60 = vmul.f32 %v1405_v9, %v5069_v10  ;;  %v5652_v34 = vmul.f32 %v1407_v36, %v5071_v11  ;;  %v5655_v19 = vmul.f32 %v1408_v31, %v5071_v11 }
0x17a7   :  { %7562 = vst [vmem:[#allocation22_spill] sm:$0xff] %v5601_v18  ;;  %7563 = vst [vmem:[#allocation24_spill] sm:$0xff] %v5604_v51  ;;  %v5658_v3 = vmul.f32 %v1409_v29, %v5071_v11  ;;  %v5661_v32 = vmul.f32 %v1411_v52, %v5071_v11  ;;  %v5664_v12 = vmul.f32 %v1412_v49, %v5071_v11 }
0x17a8   :  { %7564 = vst [vmem:[#allocation23_spill] sm:$0xff] %v5607_v24  ;;  %7565 = vst [vmem:[#allocation44_spill] sm:$0xff] %v5610_v25  ;;  %v5667_v35 = vmul.f32 %v1413_v2, %v5071_v11  ;;  %v1479_v9 = vmul.f32 %v5526_v33, %v5526_v33  ;;  %v1480_v36 = vmul.f32 %v5529_v26, %v5529_v26 }
0x17a9   :  { %7566 = vst [vmem:[#allocation46_spill] sm:$0xff] %v5613_v4  ;;  %7567 = vst [vmem:[#allocation45_spill] sm:$0xff] %v5616_v5  ;;  %v1481_v31 = vmul.f32 %v5532_v63, %v5532_v63  ;;  %v1483_v29 = vmul.f32 %v5535_v38, %v5535_v38  ;;  %v1484_v52 = vmul.f32 %v5538_v15, %v5538_v15 }
0x17aa   :  { %7568 = vst [vmem:[#allocation25_spill] sm:$0xff] %v5619_v20  ;;  %7569 = vst [vmem:[#allocation27_spill] sm:$0xff] %v5622_v14  ;;  %v1485_v49 = vmul.f32 %v5541_v22, %v5541_v22  ;;  %v1487_v2 = vmul.f32 %v5544_v56, %v5544_v56  ;;  %v1488_v45 = vmul.f32 %v5547_v8, %v5547_v8 }
0x17ab   :  { %7570 = vst [vmem:[#allocation26_spill] sm:$0xff] %v5625_v39  ;;  %7571 = vst [vmem:[#allocation47_spill] sm:$0xff] %v5628_v42  ;;  %v1489_v26 = vmul.f32 %v5550_v7, %v5550_v7  ;;  %v1491_v63 = vmul.f32 %v5553_v47, %v5553_v47  ;;  %v1492_v38 = vmul.f32 %v5556_v23, %v5556_v23 }
0x17ac   :  { %v1493_v15 = vmul.f32 %v5559_v48, %v5559_v48  ;;  %v1495_v22 = vmul.f32 %v5562_v50, %v5562_v50  ;;  %v1496_v56 = vmul.f32 %v5565_v61, %v5565_v61  ;;  %v1497_v8 = vmul.f32 %v5568_v28, %v5568_v28 }
0x17ad   :  { %v1499_v7 = vmul.f32 %v5571_v13, %v5571_v13  ;;  %v1500_v47 = vmul.f32 %v5574_v0, %v5574_v0  ;;  %v1501_v23 = vmul.f32 %v5577_v55, %v5577_v55  ;;  %v1503_v48 = vmul.f32 %v5580_v1, %v5580_v1 }
0x17ae   :  { %v1504_v50 = vmul.f32 %v5583_v6, %v5583_v6  ;;  %v1505_v61 = vmul.f32 %v5586_v37, %v5586_v37  ;;  %v1507_v28 = vmul.f32 %v5589_v16, %v5589_v16  ;;  %v1508_v13 = vmul.f32 %v5592_v59, %v5592_v59 }
0x17af   :  { %v1509_v0 = vmul.f32 %v5595_v21, %v5595_v21  ;;  %v1511_v55 = vmul.f32 %v5598_v40, %v5598_v40  ;;  %v1512_v1 = vmul.f32 %v5601_v18, %v5601_v18  ;;  %v1513_v6 = vmul.f32 %v5604_v51, %v5604_v51 }
0x17b0   :  { %v1515_v37 = vmul.f32 %v5607_v24, %v5607_v24  ;;  %v1516_v16 = vmul.f32 %v5610_v25, %v5610_v25  ;;  %v1517_v59 = vmul.f32 %v5613_v4, %v5613_v4  ;;  %v1519_v21 = vmul.f32 %v5616_v5, %v5616_v5 }
0x17b1   :  { %v1520_v40 = vmul.f32 %v5619_v20, %v5619_v20  ;;  %v1521_v18 = vmul.f32 %v5622_v14, %v5622_v14  ;;  %v1523_v51 = vmul.f32 %v5625_v39, %v5625_v39  ;;  %v1524_v24 = vmul.f32 %v5628_v42, %v5628_v42 }
0x17b2   :  { %v1525_v25 = vmul.f32 %v5631_v17, %v5631_v17  ;;  %v1543_v33 = vadd.f32 %v1487_v2, %v1479_v9  ;;  %v1556_v4 = vadd.f32 %v1488_v45, %v1480_v36  ;;  %v1569_v11 = vadd.f32 %v1489_v26, %v1481_v31 }
0x17b3   :  { %v1595_v10 = vadd.f32 %v1491_v63, %v1483_v29  ;;  %v1527_v5 = vmul.f32 %v5634_v62, %v5634_v62  ;;  %v1528_v20 = vmul.f32 %v5637_v30, %v5637_v30  ;;  %v1608_v14 = vadd.f32 %v1492_v38, %v1484_v52 }
0x17b4   :  { %v1621_v53 = vadd.f32 %v1493_v15, %v1485_v49  ;;  %v1544_v54 = vadd.f32 %v1543_v33, %v1495_v22  ;;  %v1557_v39 = vadd.f32 %v1556_v4, %v1496_v56  ;;  %v1570_v44 = vadd.f32 %v1569_v11, %v1497_v8 }
0x17b5   :  { %v1596_v58 = vadd.f32 %v1595_v10, %v1499_v7  ;;  %v1529_v42 = vmul.f32 %v5640_v57, %v5640_v57  ;;  %v1531_v9 = vmul.f32 %v5643_v41, %v5643_v41  ;;  %v1609_v26 = vadd.f32 %v1608_v14, %v1500_v47 }
0x17b6   :  { %v1622_v63 = vadd.f32 %v1621_v53, %v1501_v23  ;;  %v1545_v36 = vadd.f32 %v1544_v54, %v1503_v48  ;;  %v1558_v31 = vadd.f32 %v1557_v39, %v1504_v50  ;;  %v1571_v29 = vadd.f32 %v1570_v44, %v1505_v61 }
0x17b7   :  { %v1597_v2 = vadd.f32 %v1596_v58, %v1507_v28  ;;  %v1532_v38 = vmul.f32 %v5646_v27, %v5646_v27  ;;  %v1533_v33 = vmul.f32 %v5649_v60, %v5649_v60  ;;  %v1610_v11 = vadd.f32 %v1609_v26, %v1508_v13  ;;  %v7574_v26 = vld [vmem:[#allocation71_spill] sm:$0xff] }
0x17b8   :  { %v1623_v10 = vadd.f32 %v1622_v63, %v1509_v0  ;;  %v1546_v15 = vadd.f32 %v1545_v36, %v1511_v55  ;;  %v1559_v22 = vadd.f32 %v1558_v31, %v1512_v1  ;;  %v1572_v56 = vadd.f32 %v1571_v29, %v1513_v6 }
0x17b9   :  { %v1598_v8 = vadd.f32 %v1597_v2, %v1515_v37  ;;  %v1535_v7 = vmul.f32 %v5652_v34, %v5652_v34  ;;  %v1536_v53 = vmul.f32 %v5655_v19, %v5655_v19  ;;  %v1611_v44 = vadd.f32 %v1610_v11, %v1516_v16 }
0x17ba   :  { %v1624_v58 = vadd.f32 %v1623_v10, %v1517_v59  ;;  %v1547_v54 = vadd.f32 %v1546_v15, %v1519_v21  ;;  %v1560_v47 = vadd.f32 %v1559_v22, %v1520_v40  ;;  %v1573_v23 = vadd.f32 %v1572_v56, %v1521_v18 }
0x17bb   :  { %v1599_v48 = vadd.f32 %v1598_v8, %v1523_v51  ;;  %v1537_v50 = vmul.f32 %v5658_v3, %v5658_v3  ;;  %v1539_v61 = vmul.f32 %v5661_v32, %v5661_v32  ;;  %v1612_v28 = vadd.f32 %v1611_v44, %v1524_v24 }
0x17bc   :  { %v1625_v13 = vadd.f32 %v1624_v58, %v1525_v25  ;;  %v1548_v0 = vadd.f32 %v1547_v54, %v1527_v5  ;;  %v1561_v55 = vadd.f32 %v1560_v47, %v1528_v20  ;;  %v1574_v1 = vadd.f32 %v1573_v23, %v1529_v42  ;;  %v7572_v42 = vld [vmem:[#allocation70_spill] sm:$0xff] }
0x17bd   :  { %v1600_v6 = vadd.f32 %v1599_v48, %v1531_v9  ;;  %v1540_v37 = vmul.f32 %v5664_v12, %v5664_v12  ;;  %v1541_v16 = vmul.f32 %v5667_v35, %v5667_v35  ;;  %v1613_v59 = vadd.f32 %v1612_v28, %v1532_v38 }
0x17be   :  { %v1626_v21 = vadd.f32 %v1625_v13, %v1533_v33  ;;  %v1549_v40 = vadd.f32 %v1548_v0, %v1535_v7  ;;  %v1562_v18 = vadd.f32 %v1561_v55, %v1536_v53  ;;  %v1575_v51 = vadd.f32 %v1574_v1, %v1537_v50 }
0x17bf   :  { %v1601_v4 = vadd.f32 %v1600_v6, %v1539_v61  ;;  %v1614_v14 = vadd.f32 %v1613_v59, %v1540_v37  ;;  %v7573_v52 = vrot.slane %v7572_v42, 2  ;;  %v7575_v63 = vrot.slane %v7574_v26, 2 }
0x17c0   :  { %v1627_v39 = vadd.f32 %v1626_v21, %v1541_v16  ;;  %v1550_v24 = vrot.slane %v1549_v40, 4  ;;  %v1563_v25 = vrot.slane %v1562_v18, 4  ;;  %v1576_v5 = vrot.slane %v1575_v51, 4 }
0x17c1   :  { %v1602_v20 = vrot.slane %v1601_v4, 4  ;;  %v1592_v49 = vadd.f32 %v7573_v52, %v7572_v42  ;;  %v1615_v45 = vrot.slane %v1614_v14, 4  ;;  %v1644_v36 = vadd.f32 %v7575_v63, %v7574_v26  ;;  %v5778_v42 = vld [vmem:[%s7267_s7] sm:$0x1]  ;;  %v7576_v52 = vld [vmem:[#allocation53_spill] sm:$0xff] }
0x17c2   :  { %v1628_v9 = vrot.slane %v1627_v39, 4  ;;  %v1551_v31 = vadd.f32 %v1550_v24, %v1549_v40  ;;  %v1564_v29 = vadd.f32 %v1563_v25, %v1562_v18  ;;  %v1577_v2 = vadd.f32 %v1576_v5, %v1575_v51  ;;  %v4423_v26 = vld [vmem:[%s7268_s8 + $0x118] ss:$20 sps:$4 sm:$0xff]   ;;  %v4425_v63 = vld [vmem:[%s7268_s8 + $0x11c] ss:$20 sps:$4 sm:$0xff]  }
0x17c3   :  { %v1603_v38 = vadd.f32 %v1602_v20, %v1601_v4  ;;  %v1616_v33 = vadd.f32 %v1615_v45, %v1614_v14  ;;  %v1593_v8 = vrot.slane %v1592_v49, 1  ;;  %v1645_v44 = vrot.slane %v1644_v36, 1  ;;  %v4420_v45 = vld [vmem:[%s7268_s8 + $0x398] ss:$20 sps:$4 sm:$0xff]   ;;  %2997 = vmatprep.subr.bf16.mxu0 %v4425_v63  ;;  %v4497_v63 = vld [vmem:[%s7268_s8 + $0x1bc] ss:$20 sps:$4 sm:$0xff]  }
0x17c4   :  { %v1629_v11 = vadd.f32 %v1628_v9, %v1627_v39  ;;  %v1552_v10 = vrot.slane %v1551_v31, 2  ;;  %v1565_v15 = vrot.slane %v1564_v29, 2  ;;  %v1578_v22 = vrot.slane %v1577_v2, 2  ;;  %v4422_v9 = vld [vmem:[%s7268_s8 + $0x39c] ss:$20 sps:$4 sm:$0xff]   ;;  %2998 = vmatpush1.bf16.msra.mxu0 %v4423_v26 }
0x17c5   :  { %v1604_v56 = vrot.slane %v1603_v38, 2  ;;  %v1617_v7 = vrot.slane %v1616_v33, 2  ;;  %v1594_v55 = vadd.f32 %v1593_v8, %v1592_v49  ;;  %v1646_v37 = vadd.f32 %v1645_v44, %v1644_v36  ;;  %3070 = vmatprep.subr.bf16.mxu1 %v4422_v9  ;;  %v4426_v36 = vld [vmem:[%s7268_s8 + $0x370] ss:$20 sps:$4 sm:$0xff]   ;;  %v4441_v8 = vld [vmem:[%s7268_s8 + $0xa0] ss:$20 sps:$4 sm:$0xff]  }
0x17c6   :  { %v1630_v53 = vrot.slane %v1629_v11, 2  ;;  %v1553_v58 = vadd.f32 %v1552_v10, %v1551_v31  ;;  %v1566_v54 = vadd.f32 %v1565_v15, %v1564_v29  ;;  %v1579_v47 = vadd.f32 %v1578_v22, %v1577_v2  ;;  %v4428_v31 = vld [vmem:[%s7268_s8 + $0x374] ss:$20 sps:$4 sm:$0xff]   ;;  %3071 = vmatpush1.bf16.msra.mxu1 %v4420_v45  ;;  %v4429_v29 = vld [vmem:[%s7268_s8 + $0xf0] ss:$20 sps:$4 sm:$0xff]  }
0x17c7   :  { %v1605_v23 = vadd.f32 %v1604_v56, %v1603_v38  ;;  %v1618_v48 = vadd.f32 %v1617_v7, %v1616_v33  ;;  %v1650_v24 = vadd.f32 %v1646_v37, %v1594_v55  ;;  %v1751_v49 = vrot.slane %v5778_v42, %v7576_v52  ;;  %3072 = vmatprep.subr.bf16.mxu1 %v4428_v31  ;;  %v4431_v2 = vld [vmem:[%s7268_s8 + $0xf4] ss:$20 sps:$4 sm:$0xff]   ;;  %v4434_v38 = vld [vmem:[%s7268_s8 + $0x34c] ss:$20 sps:$4 sm:$0xff]   ;;  %v4440_v15 = vld [vmem:[%s7268_s8 + $0x324] ss:$20 sps:$4 sm:$0xff]  }
0x17c8   :  { %v1631_v50 = vadd.f32 %v1630_v53, %v1629_v11  ;;  %v1554_v61 = vrot.slane %v1553_v58, 1  ;;  %v1567_v28 = vrot.slane %v1566_v54, 1  ;;  %v1580_v13 = vrot.slane %v1579_v47, 1  ;;  %2999 = vmatprep.subr.bf16.mxu0 %v4431_v2  ;;  %v4432_v33 = vld [vmem:[%s7268_s8 + $0x348] ss:$20 sps:$4 sm:$0xff]  }
0x17c9   :  { %v1606_v0 = vrot.slane %v1605_v23, 1  ;;  %v1619_v1 = vrot.slane %v1618_v48, 1  ;;  %v4437_v11 = vld [vmem:[%s7268_s8 + $0xcc] ss:$20 sps:$4 sm:$0xff]   ;;  %v4435_v10 = vld [vmem:[%s7268_s8 + $0xc8] ss:$20 sps:$4 sm:$0xff]   ;;  %3000 = vmatpush1.bf16.msra.mxu0 %v4429_v29 }
0x17ca   :  { %v1632_v6 = vrot.slane %v1631_v50, 1  ;;  %v1555_v16 = vadd.f32 %v1554_v61, %v1553_v58  ;;  %v1568_v59 = vadd.f32 %v1567_v28, %v1566_v54  ;;  %v1581_v21 = vadd.f32 %v1580_v13, %v1579_v47  ;;  %3073 = vmatpush1.bf16.msra.mxu1 %v4426_v36  ;;  %3001 = vmatprep.subr.bf16.mxu0 %v4437_v11  ;;  %v4443_v22 = vld [vmem:[%s7268_s8 + $0xa4] ss:$20 sps:$4 sm:$0xff]   ;;  %v4438_v56 = vld [vmem:[%s7268_s8 + $0x320] ss:$20 sps:$4 sm:$0xff]  }
0x17cb   :  { %v1607_v40 = vadd.f32 %v1606_v0, %v1605_v23  ;;  %v1620_v18 = vadd.f32 %v1619_v1, %v1618_v48  ;;  %3074 = vmatprep.subr.bf16.mxu1 %v4434_v38  ;;  %v4446_v7 = vld [vmem:[%s7268_s8 + $0x2fc] ss:$20 sps:$4 sm:$0xff]   ;;  %v4444_v44 = vld [vmem:[%s7268_s8 + $0x2f8] ss:$20 sps:$4 sm:$0xff]   ;;  %v4452_v54 = vld [vmem:[%s7268_s8 + $0x2d4] ss:$20 sps:$4 sm:$0xff]  }
0x17cc   :  { %v1633_v51 = vadd.f32 %v1632_v6, %v1631_v50  ;;  %v4449_v53 = vld [vmem:[%s7268_s8 + $0x7c] ss:$20 sps:$4 sm:$0xff]   ;;  %v4447_v58 = vld [vmem:[%s7268_s8 + $0x78] ss:$20 sps:$4 sm:$0xff]   ;;  %v4455_v47 = vld [vmem:[%s7268_s8 + $0x54] ss:$20 sps:$4 sm:$0xff]  }
0x17cd   :  { %v1647_v4 = vadd.f32 %v1607_v40, %v1555_v16  ;;  %v1648_v14 = vadd.f32 %v1620_v18, %v1568_v59  ;;  %3002 = vmatpush1.bf16.msra.mxu0 %v4435_v10  ;;  %v4450_v23 = vld [vmem:[%s7268_s8 + $0x2d0] ss:$20 sps:$4 sm:$0xff]   ;;  %v4458_v50 = vld [vmem:[%s7268_s8 + $0x2ac] ss:$20 sps:$4 sm:$0xff]   ;;  %v4456_v28 = vld [vmem:[%s7268_s8 + $0x2a8] ss:$20 sps:$4 sm:$0xff]  }
0x17ce   :  { %v1649_v39 = vadd.f32 %v1633_v51, %v1581_v21  ;;  %3075 = vmatpush1.bf16.msra.mxu1 %v4432_v33  ;;  %3003 = vmatprep.subr.bf16.mxu0 %v4443_v22  ;;  %v4453_v48 = vld [vmem:[%s7268_s8 + $0x50] ss:$20 sps:$4 sm:$0xff]   ;;  %v4461_v61 = vld [vmem:[%s7268_s8 + $0x2c] ss:$20 sps:$4 sm:$0xff]   ;;  %v4459_v13 = vld [vmem:[%s7268_s8 + $0x28] ss:$20 sps:$4 sm:$0xff]  }
0x17cf   :  { %v1652_v5 = vadd.f32 %v1650_v24, %v1648_v14  ;;  %3076 = vmatprep.subr.bf16.mxu1 %v4440_v15  ;;  %v4464_v0 = vld [vmem:[%s7268_s8 + $0x284] ss:$20 sps:$4 sm:$0xff]   ;;  %v4462_v1 = vld [vmem:[%s7268_s8 + $0x280] ss:$20 sps:$4 sm:$0xff]   ;;  %v4470_v37 = vld [vmem:[%s7268_s8 + $0x4dc] ss:$20 sps:$4 sm:$0xff]  }
0x17d0   :  { %v1651_v25 = vadd.f32 %v1649_v39, %v1647_v4  ;;  %v4467_v55 = vld [vmem:[%s7268_s8 + $0x4] ss:$20 sps:$4 sm:$0xff]   ;;  %v4465_v6 = vld [vmem:[%s7268_s8] ss:$20 sps:$4 sm:$0xff]   ;;  %v4473_v16 = vld [vmem:[%s7268_s8 + $0x25c] ss:$20 sps:$4 sm:$0xff]  }
0x17d1   :  { %3004 = vmatpush1.bf16.msra.mxu0 %v4441_v8  ;;  %v4468_v59 = vld [vmem:[%s7268_s8 + $0x4d8] ss:$20 sps:$4 sm:$0xff]   ;;  %v4476_v40 = vld [vmem:[%s7268_s8 + $0x4b4] ss:$20 sps:$4 sm:$0xff]   ;;  %v4474_v18 = vld [vmem:[%s7268_s8 + $0x4b0] ss:$20 sps:$4 sm:$0xff]  }
0x17d2   :  { %v5771_v20 = vadd.f32 %v1652_v5, %v1651_v25  ;;  %3077 = vmatpush1.bf16.msra.mxu1 %v4438_v56  ;;  %3005 = vmatprep.subr.bf16.mxu0 %v4449_v53  ;;  %v4471_v21 = vld [vmem:[%s7268_s8 + $0x258] ss:$20 sps:$4 sm:$0xff]   ;;  %v4479_v51 = vld [vmem:[%s7268_s8 + $0x234] ss:$20 sps:$4 sm:$0xff]   ;;  %v4477_v4 = vld [vmem:[%s7268_s8 + $0x230] ss:$20 sps:$4 sm:$0xff]  }
0x17d3   :  { %3078 = vmatprep.subr.bf16.mxu1 %v4446_v7  ;;  %v4482_v14 = vld [vmem:[%s7268_s8 + $0x48c] ss:$20 sps:$4 sm:$0xff]   ;;  %v4480_v24 = vld [vmem:[%s7268_s8 + $0x488] ss:$20 sps:$4 sm:$0xff]   ;;  %v4488_v5 = vld [vmem:[%s7268_s8 + $0x464] ss:$20 sps:$4 sm:$0xff]  }
0x17d4   :  { %1655 = vrot.lane.b32.xlu0 %v5771_v20, %s4723_s18  ;;  %v4485_v39 = vld [vmem:[%s7268_s8 + $0x20c] ss:$20 sps:$4 sm:$0xff]   ;;  %v4483_v25 = vld [vmem:[%s7268_s8 + $0x208] ss:$20 sps:$4 sm:$0xff]   ;;  %v1756_v22 = vsel %vm1340_vm3, %v5778_v42, 0.0 }
0x17d5   :  { %3006 = vmatpush1.bf16.msra.mxu0 %v4447_v58  ;;  %v4486_v45 = vld [vmem:[%s7268_s8 + $0x460] ss:$20 sps:$4 sm:$0xff]   ;;  %v4494_v26 = vld [vmem:[%s7268_s8 + $0x43c] ss:$20 sps:$4 sm:$0xff]   ;;  %v4492_v36 = vld [vmem:[%s7268_s8 + $0x438] ss:$20 sps:$4 sm:$0xff]   ;;  %v5953_v7 = vrot.slane %v1756_v22, %v7576_v52 }
0x17d6   :  { %3079 = vmatpush1.bf16.msra.mxu1 %v4444_v44  ;;  %3007 = vmatprep.subr.bf16.mxu0 %v4455_v47  ;;  %v4489_v9 = vld [vmem:[%s7268_s8 + $0x1e0] ss:$20 sps:$4 sm:$0xff]   ;;  %v4495_v31 = vld [vmem:[%s7268_s8 + $0x1b8] ss:$20 sps:$4 sm:$0xff]  }
0x17d7   :  { %3080 = vmatprep.subr.bf16.mxu1 %v4452_v54  ;;  %v1660_v11 = vld [vmem:[%s7269_s6] sm:$0x1]  ;;  %v7578_v58 = vld [vmem:[#allocation55_spill] sm:$0xff]  ;;  %v7579_v47 = vld [vmem:[#allocation56_spill] sm:$0xff] }
0x17d8   :  { %1752 = vrot.lane.b32.xlu0 %v1751_v49, %s4723_s18  ;;  %v4491_v49 = vld [vmem:[%s7268_s8 + $0x1e4] ss:$20 sps:$4 sm:$0xff]  }
0x17d9   :  { %3008 = vmatpush1.bf16.msra.mxu0 %v4453_v48  ;;  %v7577_v53 = vld [vmem:[#allocation54_spill] sm:$0xff]  ;;  %v7580_v48 = vld [vmem:[#allocation57_spill] sm:$0xff] }
0x17da   :  { %3081 = vmatpush1.bf16.msra.mxu1 %v4450_v23  ;;  %3009 = vmatprep.subr.bf16.mxu0 %v4461_v61  ;;  %v7581_v61 = vld [vmem:[#allocation58_spill] sm:$0xff] }
0x17db   :  { %3082 = vmatprep.subr.bf16.mxu1 %v4458_v50 }
0x17dd   :  { %3010 = vmatpush1.bf16.msra.mxu0 %v4459_v13  ;;  %v7582_v13 = vld [vmem:[#allocation59_spill] sm:$0xff] }
0x17de   :  { %3083 = vmatpush1.bf16.msra.mxu1 %v4456_v28  ;;  %3011 = vmatprep.subr.bf16.mxu0 %v4467_v55  ;;  %v7583_v55 = vld [vmem:[#allocation60_spill] sm:$0xff] }
0x17df   :  { %3084 = vmatprep.subr.bf16.mxu1 %v4464_v0 }
0x17e1   :  { %3012 = vmatpush1.bf16.msra.mxu0 %v4465_v6 }
0x17e2   :  { %3085 = vmatpush1.bf16.msra.mxu1 %v4462_v1  ;;  %3013 = vmatprep.subr.bf16.mxu0 %v4473_v16 }
0x17e3   :  { %3086 = vmatprep.subr.bf16.mxu1 %v4470_v37 }
0x17e5   :  { %3014 = vmatpush2.bf16.msra.mxu0 %v4471_v21  ;;  %v7584_v21 = vld [vmem:[#allocation61_spill] sm:$0xff] }
0x17e6   :  { %3087 = vmatpush2.bf16.msra.mxu1 %v4468_v59  ;;  %3015 = vmatprep.subr.bf16.mxu0 %v4479_v51 }
0x17e7   :  { %3088 = vmatprep.subr.bf16.mxu1 %v4476_v40 }
0x17e9   :  { %3016 = vmatpush2.bf16.msra.mxu0 %v4477_v4 }
0x17ea   :  { %3089 = vmatpush2.bf16.msra.mxu1 %v4474_v18  ;;  %3017 = vmatprep.subr.bf16.mxu0 %v4485_v39 }
0x17eb   :  { %3090 = vmatprep.subr.bf16.mxu1 %v4482_v14 }
0x17ed   :  { %3018 = vmatpush2.bf16.msra.mxu0 %v4483_v25 }
0x17ee   :  { %3091 = vmatpush2.bf16.msra.mxu1 %v4480_v24  ;;  %3019 = vmatprep.subr.bf16.mxu0 %v4491_v49 }
0x17ef   :  { %3092 = vmatprep.subr.bf16.mxu1 %v4488_v5 }
0x17f1   :  { %3020 = vmatpush2.bf16.msra.mxu0 %v4489_v9 }
0x17f2   :  { %3093 = vmatpush2.bf16.msra.mxu1 %v4486_v45  ;;  %3021 = vmatprep.subr.bf16.mxu0 %v4497_v63 }
0x17f3   :  { %3094 = vmatprep.subr.bf16.mxu1 %v4494_v26 }
0x17f5   :  { %3022 = vmatpush2.bf16.msra.mxu0 %v4495_v31 }
0x17f6   :  { %3095 = vmatpush2.bf16.msra.mxu1 %v4492_v36  ;;  %v7585_v36 = vld [vmem:[#allocation62_spill] sm:$0xff] }
0x1846   :  { %v1656_v29 = vpop.permute.xlu0 %1655 }
0x1847   :  { %v1658_v2 = vadd.f32 %v1656_v29, %v5771_v20  ;;  %v7586_v29 = vld [vmem:[#allocation63_spill] sm:$0xff] }
0x1849   :  { %v1659_v38 = vmul.f32 0.002232143, %v1658_v2 }
0x184b   :  { %v1661_v33 = vadd.f32 1e-05, %v1659_v38  ;;  %v4500_v38 = vld [vmem:[%s7268_s8 + $0x414] ss:$20 sps:$4 sm:$0xff]  }
0x184c   :  { %3096 = vmatprep.subr.bf16.mxu1 %v4500_v38 }
0x184d   :  { %4716 = vrsqrt.f32 %v1661_v33 }
0x185a   :  { %v4717_v10 = vpop.eup %4716 }
0x185b   :  { %v5943_v15 = vmul.f32 %v4717_v10, %v1660_v11  ;;  %v7587_v10 = vld [vmem:[#allocation64_spill] sm:$0xff] }
0x185d   :  { %v1668_v56 = vrot.slane %v5943_v15, %v7576_v52  ;;  %v1673_v8 = vsel %vm1340_vm3, %v5943_v15, 0.0 }
0x185e   :  { %v1681_v20 = vrot.slane %v1673_v8, %v7576_v52 }
0x185f   :  { %1669 = vrot.lane.b32.xlu1 %v1668_v56, %s4723_s18  ;;  %v7588_v56 = vld [vmem:[#allocation65_spill] sm:$0xff] }
0x1860   :  { %v1685_v44 = vmul.f32 %v1681_v20, %v7577_v53  ;;  %v1689_v54 = vmul.f32 %v1681_v20, %v7578_v58  ;;  %v1693_v23 = vmul.f32 %v1681_v20, %v7579_v47  ;;  %v1697_v50 = vmul.f32 %v1681_v20, %v7580_v48  ;;  %v4498_v58 = vld [vmem:[%s7268_s8 + $0x410] ss:$20 sps:$4 sm:$0xff]   ;;  %v7589_v48 = vld [vmem:[#allocation5_spill] sm:$0xff] }
0x1861   :  { %v1701_v28 = vmul.f32 %v1681_v20, %v7581_v61  ;;  %v1705_v0 = vmul.f32 %v1681_v20, %v7582_v13  ;;  %v1709_v1 = vmul.f32 %v1681_v20, %v7583_v55  ;;  %v1713_v40 = vmul.f32 %v1681_v20, %v7584_v21  ;;  %3097 = vmatpush2.bf16.msra.mxu1 %v4498_v58 }
0x1862   :  { %v1768_v6 = vadd.f32 %v5953_v7, %v1685_v44  ;;  %v1772_v37 = vadd.f32 %v5953_v7, %v1689_v54  ;;  %v1776_v16 = vadd.f32 %v5953_v7, %v1693_v23  ;;  %v1780_v59 = vadd.f32 %v5953_v7, %v1697_v50 }
0x1863   :  { %v1784_v18 = vadd.f32 %v5953_v7, %v1701_v28  ;;  %v1788_v51 = vadd.f32 %v5953_v7, %v1705_v0  ;;  %v1792_v4 = vadd.f32 %v5953_v7, %v1709_v1  ;;  %v1796_v5 = vadd.f32 %v5953_v7, %v1713_v40  ;;  %v7591_v1 = vld [vmem:[#allocation66_spill] sm:$0xff]  ;;  %v7593_v40 = vld [vmem:[#allocation67_spill] sm:$0xff] }
0x1864   :  { %v1832_v14 = vmax.f32 %v1768_v6, 0.0  ;;  %v1836_v39 = vmax.f32 %v1772_v37, 0.0  ;;  %v1840_v24 = vmax.f32 %v1776_v16, 0.0  ;;  %v1844_v25 = vmax.f32 %v1780_v59, 0.0  ;;  %v7592_v37 = vld [vmem:[#allocation3_spill] sm:$0xff] }
0x1865   :  { %v1848_v49 = vmax.f32 %v1784_v18, 0.0  ;;  %v1852_v45 = vmax.f32 %v1788_v51, 0.0  ;;  %v1856_v9 = vmax.f32 %v1792_v4, 0.0  ;;  %v1717_v31 = vmul.f32 %v1681_v20, %v7585_v36  ;;  %v7594_v4 = vld [vmem:[#allocation68_spill] sm:$0xff] }
0x1866   :  { %v1896_v26 = vmax.f32 %v1832_v14, %v1836_v39  ;;  %v1900_v63 = vmax.f32 %v1840_v24, %v1844_v25  ;;  %v1721_v2 = vmul.f32 %v1681_v20, %v7586_v29  ;;  %v1860_v33 = vmax.f32 %v1796_v5, 0.0  ;;  %v7595_v39 = vld [vmem:[#allocation69_spill] sm:$0xff]  ;;  %v7598_v29 = vld [vmem:[#allocation6_spill] sm:$0xff] }
0x1867   :  { %v1904_v11 = vmax.f32 %v1848_v49, %v1852_v45  ;;  %v1725_v22 = vmul.f32 %v1681_v20, %v7587_v10  ;;  %v1729_v8 = vmul.f32 %v1681_v20, %v7588_v56  ;;  %v1800_v54 = vadd.f32 %v5953_v7, %v1717_v31 }
0x1868   :  { %v1928_v53 = vmul.f32 %v1896_v26, %v5029_v43  ;;  %v1932_v44 = vmul.f32 %v1900_v63, %v5033_v46  ;;  %v1804_v47 = vadd.f32 %v5953_v7, %v1721_v2  ;;  %v1908_v23 = vmax.f32 %v1856_v9, %v1860_v33  ;;  %v7597_v9 = vld [vmem:[#allocation7_spill] sm:$0xff] }
0x1869   :  { %v1936_v50 = vmul.f32 %v1904_v11, %v7589_v48  ;;  %v1808_v61 = vadd.f32 %v5953_v7, %v1725_v22  ;;  %v1812_v28 = vadd.f32 %v5953_v7, %v1729_v8  ;;  %v1864_v0 = vmax.f32 %v1800_v54, 0.0  ;;  %v4503_v22 = vld [vmem:[%s7268_s8 + $0x194] ss:$20 sps:$4 sm:$0xff]   ;;  %v4501_v8 = vld [vmem:[%s7268_s8 + $0x190] ss:$20 sps:$4 sm:$0xff]  }
0x186a   :  { %v5989_v13 = vpack.c.bf16 %v1932_v44, %v1928_v53  ;;  %v1868_v55 = vmax.f32 %v1804_v47, 0.0  ;;  %v1733_v6 = vmul.f32 %v1681_v20, %v7591_v1  ;;  %v1940_v16 = vmul.f32 %v1908_v23, %v7592_v37  ;;  %v7600_v53 = vld [vmem:[#allocation8_spill] sm:$0xff]  ;;  %3023 = vmatprep.subr.bf16.mxu0 %v4503_v22  ;;  %v7601_v44 = vld [vmem:[#allocation9_spill] sm:$0xff]  ;;  %v4506_v54 = vld [vmem:[%s7268_s8 + $0x3ec] ss:$20 sps:$4 sm:$0xff]  }
0x186b   :  { %v1872_v59 = vmax.f32 %v1808_v61, 0.0  ;;  %v1876_v21 = vmax.f32 %v1812_v28, 0.0  ;;  %v1737_v18 = vmul.f32 %v1681_v20, %v7593_v40  ;;  %v1741_v14 = vmul.f32 %v1681_v20, %v7594_v4  ;;  %3024 = vmatpush2.bf16.msra.mxu0 %v4501_v8  ;;  %v4504_v47 = vld [vmem:[%s7268_s8 + $0x3e8] ss:$20 sps:$4 sm:$0xff]   ;;  %v4509_v23 = vld [vmem:[%s7268_s8 + $0x16c] ss:$20 sps:$4 sm:$0xff]   ;;  %3098 = vmatprep.subr.bf16.mxu1 %v4506_v54  ;;  %v1753_v40 = vpop.permute.xlu0 %1752 }
0x186c   :  { %7590 = vst [vmem:[#allocation49_spill] sm:$0xff] %v5989_v13  ;;  %3102 = vmatprep.mubr.bf16.mxu1 %v5989_v13  ;;  %v1912_v51 = vmax.f32 %v1864_v0, %v1868_v55  ;;  %v1745_v24 = vmul.f32 %v1681_v20, %v7595_v39  ;;  %v1816_v25 = vadd.f32 %v5953_v7, %v1733_v6  ;;  %v4507_v61 = vld [vmem:[%s7268_s8 + $0x168] ss:$20 sps:$4 sm:$0xff]   ;;  %v4512_v28 = vld [vmem:[%s7268_s8 + $0x3c4] ss:$20 sps:$4 sm:$0xff]  }
0x186d   :  { %v5998_v5 = vpack.c.bf16 %v1940_v16, %v1936_v50  ;;  %v1916_v49 = vmax.f32 %v1872_v59, %v1876_v21  ;;  %v1820_v45 = vadd.f32 %v5953_v7, %v1737_v18  ;;  %v1824_v63 = vadd.f32 %v5953_v7, %v1741_v14  ;;  %3025 = vmatprep.subr.bf16.mxu0 %v4509_v23  ;;  %v4510_v0 = vld [vmem:[%s7268_s8 + $0x3c0] ss:$20 sps:$4 sm:$0xff]   ;;  %v4515_v55 = vld [vmem:[%s7268_s8 + $0x144] ss:$20 sps:$4 sm:$0xff]   ;;  %v7603_v4 = vld [vmem:[#allocation31_spill] sm:$0xff] }
0x186e   :  { %v1944_v26 = vmul.f32 %v1912_v51, %v7597_v9  ;;  %v1828_v36 = vadd.f32 %v5953_v7, %v1745_v24  ;;  %v1880_v31 = vmax.f32 %v1816_v25, 0.0  ;;  %3099 = vmatpush2.bf16.msra.mxu1 %v4504_v47  ;;  %v4513_v1 = vld [vmem:[%s7268_s8 + $0x140] ss:$20 sps:$4 sm:$0xff]   ;;  %v4518_v6 = vld [vmem:[%s7268_s8 + $0x3a4] ss:$20 sps:$4 sm:$0xff]   ;;  %v1755_v51 = vsel %vm1340_vm3, %v5778_v42, %v1753_v40  ;;  %v7611_v42 = vld [vmem:[#allocation15_spill] sm:$0xff] }
0x186f   :  { %7596 = vst [vmem:[#allocation48_spill] sm:$0xff] %v5998_v5  ;;  %v1948_v2 = vmul.f32 %v1916_v49, %v7598_v29  ;;  %v1884_v38 = vmax.f32 %v1820_v45, 0.0  ;;  %v1888_v33 = vmax.f32 %v1824_v63, 0.0  ;;  %3026 = vmatpush2.bf16.msra.mxu0 %v4507_v61  ;;  %3100 = vmatprep.subr.bf16.mxu1 %v4512_v28  ;;  %v4521_v16 = vld [vmem:[%s7268_s8 + $0x124] ss:$20 sps:$4 sm:$0xff]   ;;  %v7605_v25 = vld [vmem:[#allocation12_spill] sm:$0xff]  ;;  %v6056_v45 = vrot.slane %v1755_v51, %v7576_v52 }
0x1870   :  { %v1892_v11 = vmax.f32 %v1828_v36, 0.0  ;;  %3027 = vmatprep.subr.bf16.mxu0 %v4515_v55  ;;  %v7604_v39 = vld [vmem:[#allocation10_spill] sm:$0xff]  ;;  %v7607_v36 = vld [vmem:[#allocation32_spill] sm:$0xff]  ;;  %v7614_v54 = vld [vmem:[#allocation37_spill] sm:$0xff] }
0x1871   :  { %v6005_v20 = vpack.c.bf16 %v1948_v2, %v1944_v26  ;;  %v1920_v10 = vmax.f32 %v1880_v31, %v1884_v38  ;;  %v7606_v26 = vld [vmem:[#allocation11_spill] sm:$0xff]  ;;  %v7609_v38 = vld [vmem:[#allocation33_spill] sm:$0xff]  ;;  %v7615_v23 = vld [vmem:[#allocation36_spill] sm:$0xff] }
0x1872   :  { %v1924_v56 = vmax.f32 %v1888_v33, %v1892_v11  ;;  %3101 = vmatpush2.bf16.msra.mxu1 %v4510_v0  ;;  %v7610_v11 = vld [vmem:[#allocation13_spill] sm:$0xff]  ;;  %v7616_v28 = vld [vmem:[#allocation16_spill] sm:$0xff]  ;;  %v7617_v55 = vld [vmem:[#allocation18_spill] sm:$0xff] }
0x1873   :  { %7599 = vst [vmem:[#allocation28_spill] sm:$0xff] %v6005_v20  ;;  %v1952_v7 = vmul.f32 %v1920_v10, %v7600_v53  ;;  %3028 = vmatpush2.bf16.msra.mxu0 %v4513_v1  ;;  %3216 = vmatprep.subr.bf16.mxu1 %v4518_v6  ;;  %v7618_v6 = vld [vmem:[#allocation17_spill] sm:$0xff]  ;;  %v7620_v40 = vld [vmem:[#allocation40_spill] sm:$0xff]  ;;  %v7630_v13 = vld [vmem:[#allocation23_spill] sm:$0xff] }
0x1874   :  { %v1956_v58 = vmul.f32 %v1924_v56, %v7601_v44  ;;  %3143 = vmatprep.subr.bf16.mxu0 %v4521_v16  ;;  %v7612_v56 = vld [vmem:[#allocation14_spill] sm:$0xff]  ;;  %v7633_v53 = vld [vmem:[#allocation45_spill] sm:$0xff]  ;;  %v7635_v29 = vld [vmem:[#allocation27_spill] sm:$0xff] }
0x1875   :  { %v7632_v44 = vld [vmem:[#allocation46_spill] sm:$0xff]  ;;  %v7634_v20 = vld [vmem:[#allocation25_spill] sm:$0xff]  ;;  %v7637_v5 = vld [vmem:[#allocation47_spill] sm:$0xff] }
0x1876   :  { %v6024_v50 = vpack.c.bf16 %v1956_v58, %v1952_v7  ;;  %v7613_v7 = vld [vmem:[#allocation35_spill] sm:$0xff]  ;;  %v7636_v9 = vld [vmem:[#allocation26_spill] sm:$0xff] }
0x1878   :  { %7602 = vst [vmem:[#allocation30_spill] sm:$0xff] %v6024_v50  ;;  %v7631_v50 = vld [vmem:[#allocation44_spill] sm:$0xff] }
0x18d1   :  { %v1670_v59 = vpop.permute.xlu1 %1669 }
0x18d2   :  { %v1672_v21 = vsel %vm1340_vm3, %v5943_v15, %v1670_v59  ;;  %v7608_v15 = vld [vmem:[#allocation34_spill] sm:$0xff] }
0x18d3   :  { %v1677_v18 = vrot.slane %v1672_v21, %v7576_v52  ;;  %v7619_v59 = vld [vmem:[#allocation38_spill] sm:$0xff]  ;;  %v7629_v52 = vld [vmem:[#allocation24_spill] sm:$0xff] }
0x18d5   :  { %v1682_v14 = vmul.f32 %v1677_v18, %v7603_v4  ;;  %v1683_v24 = vmul.f32 %v1677_v18, %v7604_v39  ;;  %v1684_v49 = vmul.f32 %v1677_v18, %v7605_v25  ;;  %v1686_v63 = vmul.f32 %v1677_v18, %v7606_v26  ;;  %v7621_v4 = vld [vmem:[#allocation39_spill] sm:$0xff] }
0x18d6   :  { %v1687_v31 = vmul.f32 %v1677_v18, %v7607_v36  ;;  %v1688_v2 = vmul.f32 %v1677_v18, %v7608_v15  ;;  %v1690_v33 = vmul.f32 %v1677_v18, %v7609_v38  ;;  %v1691_v10 = vmul.f32 %v1677_v18, %v7610_v11  ;;  %v7622_v25 = vld [vmem:[#allocation19_spill] sm:$0xff]  ;;  %v7623_v36 = vld [vmem:[#allocation21_spill] sm:$0xff]  ;;  %v7624_v38 = vld [vmem:[#allocation20_spill] sm:$0xff] }
0x18d7   :  { %v1692_v22 = vmul.f32 %v1677_v18, %v7611_v42  ;;  %v1694_v8 = vmul.f32 %v1677_v18, %v7612_v56  ;;  %v1695_v58 = vmul.f32 %v1677_v18, %v7613_v7  ;;  %v1696_v47 = vmul.f32 %v1677_v18, %v7614_v54  ;;  %v7625_v42 = vld [vmem:[#allocation41_spill] sm:$0xff]  ;;  %v7626_v7 = vld [vmem:[#allocation43_spill] sm:$0xff] }
0x18d8   :  { %v1698_v61 = vmul.f32 %v1677_v18, %v7615_v23  ;;  %v1699_v0 = vmul.f32 %v1677_v18, %v7616_v28  ;;  %v1700_v1 = vmul.f32 %v1677_v18, %v7617_v55  ;;  %v1702_v16 = vmul.f32 %v1677_v18, %v7618_v6  ;;  %v7627_v23 = vld [vmem:[#allocation42_spill] sm:$0xff] }
0x18d9   :  { %v1703_v21 = vmul.f32 %v1677_v18, %v7619_v59  ;;  %v1704_v51 = vmul.f32 %v1677_v18, %v7620_v40  ;;  %v1706_v39 = vmul.f32 %v1677_v18, %v7621_v4  ;;  %v1707_v26 = vmul.f32 %v1677_v18, %v7622_v25  ;;  %v7628_v55 = vld [vmem:[#allocation22_spill] sm:$0xff] }
0x18da   :  { %v1708_v15 = vmul.f32 %v1677_v18, %v7623_v36  ;;  %v1710_v11 = vmul.f32 %v1677_v18, %v7624_v38  ;;  %v1711_v56 = vmul.f32 %v1677_v18, %v7625_v42  ;;  %v1712_v54 = vmul.f32 %v1677_v18, %v7626_v7 }
0x18db   :  { %v1714_v28 = vmul.f32 %v1677_v18, %v7627_v23  ;;  %v1715_v6 = vmul.f32 %v1677_v18, %v7628_v55  ;;  %v1716_v59 = vmul.f32 %v1677_v18, %v7629_v52  ;;  %v1718_v40 = vmul.f32 %v1677_v18, %v7630_v13 }
0x18dc   :  { %v1719_v4 = vmul.f32 %v1677_v18, %v7631_v50  ;;  %v1720_v25 = vmul.f32 %v1677_v18, %v7632_v44  ;;  %v1722_v36 = vmul.f32 %v1677_v18, %v7633_v53  ;;  %v1723_v38 = vmul.f32 %v1677_v18, %v7634_v20 }
0x18dd   :  { %v1724_v42 = vmul.f32 %v1677_v18, %v7635_v29  ;;  %v1726_v7 = vmul.f32 %v1677_v18, %v7636_v9  ;;  %v1727_v23 = vmul.f32 %v1677_v18, %v7637_v5  ;;  %v1728_v55 = vmul.f32 %v1677_v18, %v5631_v17 }
0x18de   :  { %v6092_v52 = vmul.f32 %v1677_v18, %v5634_v62  ;;  %v1731_v13 = vmul.f32 %v1677_v18, %v5637_v30  ;;  %v1732_v50 = vmul.f32 %v1677_v18, %v5640_v57  ;;  %v6097_v44 = vmul.f32 %v1677_v18, %v5643_v41 }
0x18df   :  { %v1735_v20 = vmul.f32 %v1677_v18, %v5646_v27  ;;  %v6101_v29 = vmul.f32 %v1677_v18, %v5649_v60  ;;  %v6104_v9 = vmul.f32 %v1677_v18, %v5652_v34  ;;  %v6107_v17 = vmul.f32 %v1677_v18, %v5655_v19 }
0x18e0   :  { %v6110_v62 = vmul.f32 %v1677_v18, %v5658_v3  ;;  %v6113_v30 = vmul.f32 %v1677_v18, %v5661_v32  ;;  %v6116_v57 = vmul.f32 %v1677_v18, %v5664_v12  ;;  %v6119_v41 = vmul.f32 %v1677_v18, %v5667_v35 }
0x18e1   :  { %7638 = vst [vmem:[#allocation29_spill] sm:$0xff] %v6104_v9  ;;  %v6122_v27 = vadd.f32 %v6056_v45, %v1682_v14  ;;  %v6125_v60 = vadd.f32 %v6056_v45, %v1683_v24  ;;  %v6128_v34 = vadd.f32 %v6056_v45, %v1684_v49  ;;  %v6131_v19 = vadd.f32 %v6056_v45, %v1686_v63 }
0x18e2   :  { %7639 = vst [vmem:[#allocation50_spill] sm:$0xff] %v6113_v30  ;;  %v6134_v3 = vadd.f32 %v6056_v45, %v1687_v31  ;;  %v6137_v32 = vadd.f32 %v6056_v45, %v1688_v2  ;;  %v6140_v12 = vadd.f32 %v6056_v45, %v1690_v33  ;;  %v6143_v35 = vadd.f32 %v6056_v45, %v1691_v10 }
0x18e3   :  { %v6146_v5 = vadd.f32 %v6056_v45, %v1692_v22  ;;  %v1777_v53 = vadd.f32 %v6056_v45, %v1694_v8  ;;  %v6150_v18 = vadd.f32 %v6056_v45, %v1695_v58  ;;  %v1779_v14 = vadd.f32 %v6056_v45, %v1696_v47 }
0x18e4   :  { %v6154_v24 = vadd.f32 %v6056_v45, %v1698_v61  ;;  %v1782_v49 = vadd.f32 %v6056_v45, %v1699_v0  ;;  %v6158_v63 = vadd.f32 %v6056_v45, %v1700_v1  ;;  %v6161_v31 = vadd.f32 %v6056_v45, %v1702_v16 }
0x18e5   :  { %v1786_v2 = vadd.f32 %v6056_v45, %v1703_v21  ;;  %v6165_v33 = vadd.f32 %v6056_v45, %v1704_v51  ;;  %v6168_v10 = vadd.f32 %v6056_v45, %v1706_v39  ;;  %v1790_v22 = vadd.f32 %v6056_v45, %v1707_v26 }
0x18e6   :  { %v6172_v8 = vadd.f32 %v6056_v45, %v1708_v15  ;;  %v6175_v58 = vadd.f32 %v6056_v45, %v1710_v11  ;;  %v1794_v47 = vadd.f32 %v6056_v45, %v1711_v56  ;;  %v6179_v61 = vadd.f32 %v6056_v45, %v1712_v54 }
0x18e7   :  { %v6182_v0 = vadd.f32 %v6056_v45, %v1714_v28  ;;  %v6185_v1 = vadd.f32 %v6056_v45, %v1715_v6  ;;  %v6188_v16 = vadd.f32 %v6056_v45, %v1716_v59  ;;  %v6191_v21 = vadd.f32 %v6056_v45, %v1718_v40 }
0x18e8   :  { %v6194_v51 = vadd.f32 %v6056_v45, %v1719_v4  ;;  %v6197_v39 = vadd.f32 %v6056_v45, %v1720_v25  ;;  %v6200_v26 = vadd.f32 %v6056_v45, %v1722_v36  ;;  %v6203_v15 = vadd.f32 %v6056_v45, %v1723_v38 }
0x18e9   :  { %v6206_v11 = vadd.f32 %v6056_v45, %v1724_v42  ;;  %v6209_v56 = vadd.f32 %v6056_v45, %v1726_v7  ;;  %v6212_v54 = vadd.f32 %v6056_v45, %v1727_v23  ;;  %v6215_v28 = vadd.f32 %v6056_v45, %v1728_v55 }
0x18ea   :  { %v6218_v6 = vadd.f32 %v6056_v45, %v1731_v13  ;;  %v6221_v59 = vadd.f32 %v6056_v45, %v1732_v50  ;;  %v6224_v40 = vadd.f32 %v6056_v45, %v1735_v20  ;;  %v1829_v4 = vmax.f32 %v6122_v27, 0.0 }
0x18eb   :  { %v1830_v25 = vmax.f32 %v6125_v60, 0.0  ;;  %v1831_v36 = vmax.f32 %v6128_v34, 0.0  ;;  %v1833_v38 = vmax.f32 %v6131_v19, 0.0  ;;  %v1834_v42 = vmax.f32 %v6134_v3, 0.0 }
0x18ec   :  { %7640 = vst [vmem:[#allocation52_spill] sm:$0xff] %v6221_v59  ;;  %v1835_v7 = vmax.f32 %v6137_v32, 0.0  ;;  %v1837_v23 = vmax.f32 %v6140_v12, 0.0  ;;  %v1838_v55 = vmax.f32 %v6143_v35, 0.0  ;;  %v1839_v13 = vmax.f32 %v6146_v5, 0.0 }
0x18ed   :  { %v1841_v50 = vmax.f32 %v1777_v53, 0.0  ;;  %v1842_v20 = vmax.f32 %v6150_v18, 0.0  ;;  %v1843_v27 = vmax.f32 %v1779_v14, 0.0  ;;  %v1845_v60 = vmax.f32 %v6154_v24, 0.0 }
0x18ee   :  { %v1846_v59 = vmax.f32 %v1782_v49, 0.0  ;;  %v1847_v34 = vmax.f32 %v6158_v63, 0.0  ;;  %v1849_v19 = vmax.f32 %v6161_v31, 0.0  ;;  %v1850_v3 = vmax.f32 %v1786_v2, 0.0 }
0x18ef   :  { %v1851_v32 = vmax.f32 %v6165_v33, 0.0  ;;  %v1854_v30 = vmax.f32 %v1790_v22, 0.0  ;;  %v1858_v12 = vmax.f32 %v1794_v47, 0.0  ;;  %v1853_v35 = vmax.f32 %v6168_v10, 0.0 }
0x18f0   :  { %v1855_v5 = vmax.f32 %v6172_v8, 0.0  ;;  %v1857_v53 = vmax.f32 %v6175_v58, 0.0  ;;  %v1859_v18 = vmax.f32 %v6179_v61, 0.0  ;;  %v1862_v14 = vmax.f32 %v6185_v1, 0.0 }
0x18f1   :  { %v1866_v24 = vmax.f32 %v6194_v51, 0.0  ;;  %v1870_v49 = vmax.f32 %v6203_v15, 0.0  ;;  %v1874_v63 = vmax.f32 %v6212_v54, 0.0  ;;  %v1893_v31 = vmax.f32 %v1829_v4, %v1833_v38  ;;  %v4516_v15 = vld [vmem:[%s7268_s8 + $0x3a0] ss:$20 sps:$4 sm:$0xff]  }
0x18f2   :  { %v1895_v2 = vmax.f32 %v1831_v36, %v1835_v7  ;;  %v1897_v33 = vmax.f32 %v1837_v23, %v1841_v50  ;;  %v1899_v22 = vmax.f32 %v1839_v13, %v1843_v27  ;;  %v1894_v47 = vmax.f32 %v1830_v25, %v1834_v42  ;;  %v4519_v13 = vld [vmem:[%s7268_s8 + $0x120] ss:$20 sps:$4 sm:$0xff]  }
0x18f3   :  { %v1898_v10 = vmax.f32 %v1838_v55, %v1842_v20  ;;  %v1902_v9 = vmax.f32 %v1846_v59, %v1850_v3  ;;  %v1906_v8 = vmax.f32 %v1854_v30, %v1858_v12  ;;  %v1925_v58 = vmul.f32 %v1893_v31, %v5029_v43 }
0x18f4   :  { %v1927_v61 = vmul.f32 %v1895_v2, %v5029_v43  ;;  %v1929_v1 = vmul.f32 %v1897_v33, %v5033_v46  ;;  %v1931_v51 = vmul.f32 %v1899_v22, %v5033_v46  ;;  %v1926_v54 = vmul.f32 %v1894_v47, %v5029_v43  ;;  %v7643_v2 = vld [vmem:[#allocation6_spill] sm:$0xff] }
0x18f5   :  { %v1930_v4 = vmul.f32 %v1898_v10, %v5033_v46  ;;  %v1934_v25 = vmul.f32 %v1902_v9, %v7589_v48  ;;  %v1938_v30 = vmul.f32 %v1906_v8, %v7592_v37  ;;  %v1903_v38 = vmax.f32 %v1847_v34, %v1851_v32  ;;  %v4536_v10 = vld [vmem:[%s7268_s8 + $0x32c] ss:$20 sps:$4 sm:$0xff]  }
0x18f6   :  { %v6259_v59 = vpack.c.bf16 %v1931_v51, %v1927_v61  ;;  %v6261_v36 = vpack.c.bf16 %v1929_v1, %v1925_v58  ;;  %v1907_v42 = vmax.f32 %v1855_v5, %v1859_v18  ;;  %v6265_v7 = vadd.f32 %v6056_v45, %v6101_v29  ;;  %v7644_v51 = vld [vmem:[#allocation29_spill] sm:$0xff] }
0x18f7   :  { %v6269_v23 = vadd.f32 %v6056_v45, %v6107_v17  ;;  %v6273_v55 = vadd.f32 %v6056_v45, %v6110_v62  ;;  %v6275_v9 = vpack.c.bf16 %v1930_v4, %v1926_v54  ;;  %v6282_v50 = vadd.f32 %v6056_v45, %v6116_v57  ;;  %v4524_v17 = vld [vmem:[%s7268_s8 + $0x37c] ss:$20 sps:$4 sm:$0xff]   ;;  %v7645_v54 = vld [vmem:[#allocation50_spill] sm:$0xff] }
0x18f8   :  { %v1863_v29 = vmax.f32 %v6188_v16, 0.0  ;;  %3103 = vmatmul.mubr.bf16.vlgmr.msra.gmra.mxu1 %v6259_v59  ;;  %v4527_v62 = vld [vmem:[%s7268_s8 + $0xfc] ss:$20 sps:$4 sm:$0xff]   ;;  %v1901_v20 = vmax.f32 %v1845_v60, %v1849_v19  ;;  %v1905_v27 = vmax.f32 %v1853_v35, %v1857_v53  ;;  %v1867_v34 = vmax.f32 %v6197_v39, 0.0  ;;  %v4522_v16 = vld [vmem:[%s7268_s8 + $0x378] ss:$20 sps:$4 sm:$0xff]  }
0x18f9   :  { %3029 = vmatprep.mubr.bf16.mxu0 %v6275_v9  ;;  %3217 = vmatpush1.bf16.msra.mxu1 %v4516_v15  ;;  %v6294_v57 = vpack.c.bf16 %v1938_v30, %v1934_v25  ;;  %v1910_v3 = vmax.f32 %v1862_v14, %v1866_v24  ;;  %v1914_v32 = vmax.f32 %v1870_v49, %v1874_v63  ;;  %v1871_v12 = vmax.f32 %v6206_v11, 0.0  ;;  %v7641_v60 = vld [vmem:[#allocation48_spill] sm:$0xff]  ;;  %v4525_v14 = vld [vmem:[%s7268_s8 + $0xf8] ss:$20 sps:$4 sm:$0xff]  }
0x18fa   :  { %v1875_v5 = vmax.f32 %v6215_v28, 0.0  ;;  %3030 = vmatmul.mubr.bf16.vlgmr.msra.gmra.mxu0 %v6261_v36  ;;  %3112 = vmatprep.mubr.bf16.mxu1 %v7641_v60  ;;  %v4530_v39 = vld [vmem:[%s7268_s8 + $0x354] ss:$20 sps:$4 sm:$0xff]   ;;  %v1935_v19 = vmul.f32 %v1903_v38, %v7589_v48  ;;  %v1939_v35 = vmul.f32 %v1907_v42, %v7592_v37  ;;  %v1861_v53 = vmax.f32 %v6182_v0, 0.0  ;;  %v4531_v4 = vld [vmem:[%s7268_s8 + $0xd0] ss:$20 sps:$4 sm:$0xff]  }
0x18fb   :  { %v1865_v18 = vmax.f32 %v6191_v21, 0.0  ;;  %v1869_v11 = vmax.f32 %v6200_v26, 0.0  ;;  %v1873_v28 = vmax.f32 %v6209_v56, 0.0  ;;  %3144 = vmatpush1.bf16.msra.mxu0 %v4519_v13  ;;  %3039 = vmatprep.mubr.bf16.mxu0 %v6294_v57  ;;  %v1878_v24 = vmax.f32 %v6218_v6, 0.0  ;;  %v4533_v0 = vld [vmem:[%s7268_s8 + $0xd4] ss:$20 sps:$4 sm:$0xff]  }
0x18fc   :  { %v1882_v49 = vmax.f32 %v6224_v40, 0.0  ;;  %3218 = vmatprep.subr.bf16.mxu1 %v4524_v17  ;;  %3145 = vmatprep.subr.bf16.mxu0 %v4527_v62  ;;  %v1933_v21 = vmul.f32 %v1901_v20, %v7589_v48  ;;  %v1937_v26 = vmul.f32 %v1905_v27, %v7592_v37  ;;  %v1886_v56 = vmax.f32 %v6269_v23, 0.0  ;;  %v4528_v6 = vld [vmem:[%s7268_s8 + $0x350] ss:$20 sps:$4 sm:$0xff]   ;;  %v7642_v40 = vld [vmem:[#allocation7_spill] sm:$0xff] }
0x18fd   :  { %v1890_v63 = vmax.f32 %v6282_v50, 0.0  ;;  %3219 = vmatpush1.bf16.msra.mxu1 %v4522_v16  ;;  %v1942_v31 = vmul.f32 %v1910_v3, %v7642_v40  ;;  %v1946_v33 = vmul.f32 %v1914_v32, %v7643_v2  ;;  %v1827_v22 = vadd.f32 %v6056_v45, %v6119_v41  ;;  %v7646_v25 = vld [vmem:[#allocation52_spill] sm:$0xff]  ;;  %v4534_v50 = vld [vmem:[%s7268_s8 + $0x328] ss:$20 sps:$4 sm:$0xff]  }
0x18fe   :  { %3220 = vmatprep.subr.bf16.mxu1 %v4530_v39  ;;  %v6332_v47 = vpack.c.bf16 %v1939_v35, %v1935_v19  ;;  %v1911_v8 = vmax.f32 %v1863_v29, %v1867_v34  ;;  %v1915_v58 = vmax.f32 %v1871_v12, %v1875_v5  ;;  %v1813_v61 = vadd.f32 %v6056_v45, %v6092_v52  ;;  %v7647_v23 = vld [vmem:[#allocation28_spill] sm:$0xff]  ;;  %v4545_v5 = vld [vmem:[%s7268_s8 + $0x84] ss:$20 sps:$4 sm:$0xff]  }
0x18ff   :  { %v1817_v1 = vadd.f32 %v6056_v45, %v6097_v44  ;;  %v1821_v15 = vadd.f32 %v6056_v45, %v7644_v51  ;;  %v1825_v41 = vadd.f32 %v6056_v45, %v7645_v54  ;;  %3146 = vmatpush1.bf16.msra.mxu0 %v4525_v14  ;;  %v1879_v30 = vmax.f32 %v7646_v25, 0.0  ;;  %v4539_v44 = vld [vmem:[%s7268_s8 + $0xac] ss:$20 sps:$4 sm:$0xff]   ;;  %v4552_v54 = vld [vmem:[%s7268_s8 + $0x2b0] ss:$20 sps:$4 sm:$0xff]  }
0x1900   :  { %3113 = vmatmul.mubr.bf16.gmra.mxu1 %v6332_v47  ;;  %3147 = vmatprep.subr.bf16.mxu0 %v4533_v0  ;;  %v6350_v52 = vpack.c.bf16 %v1937_v26, %v1933_v21  ;;  %v1909_v38 = vmax.f32 %v1861_v53, %v1865_v18  ;;  %v1913_v42 = vmax.f32 %v1869_v11, %v1873_v28  ;;  %v1883_v45 = vmax.f32 %v6265_v7, 0.0  ;;  %v4542_v7 = vld [vmem:[%s7268_s8 + $0x304] ss:$20 sps:$4 sm:$0xff]   ;;  %v4540_v35 = vld [vmem:[%s7268_s8 + $0x300] ss:$20 sps:$4 sm:$0xff]  }
0x1901   :  { %3221 = vmatpush1.bf16.msra.mxu1 %v4528_v6  ;;  %3122 = vmatprep.mubr.bf16.mxu1 %v7647_v23  ;;  %v6357_v13 = vpack.c.bf16 %v1946_v33, %v1942_v31  ;;  %v1918_v29 = vmax.f32 %v1878_v24, %v1882_v49  ;;  %v1922_v17 = vmax.f32 %v1886_v56, %v1890_v63  ;;  %v1887_v62 = vmax.f32 %v6273_v55, 0.0  ;;  %v4537_v55 = vld [vmem:[%s7268_s8 + $0xa8] ss:$20 sps:$4 sm:$0xff]   ;;  %v7648_v53 = vld [vmem:[#allocation8_spill] sm:$0xff]  ;;  %v7650_v31 = vld [vmem:[#allocation30_spill] sm:$0xff] }
0x1902   :  { %v1891_v20 = vmax.f32 %v1827_v22, 0.0  ;;  %3040 = vmatmul.mubr.bf16.gmra.mxu0 %v6350_v52  ;;  %3222 = vmatprep.subr.bf16.mxu1 %v4536_v10  ;;  %v1943_v27 = vmul.f32 %v1911_v8, %v7642_v40  ;;  %v1947_v34 = vmul.f32 %v1915_v58, %v7643_v2  ;;  %v1877_v16 = vmax.f32 %v1813_v61, 0.0  ;;  %v7649_v11 = vld [vmem:[#allocation9_spill] sm:$0xff]  ;;  %v4543_v21 = vld [vmem:[%s7268_s8 + $0x80] ss:$20 sps:$4 sm:$0xff]  }
0x1903   :  { %v1881_v3 = vmax.f32 %v1817_v1, 0.0  ;;  %3148 = vmatpush1.bf16.msra.mxu0 %v4531_v4  ;;  %3049 = vmatprep.mubr.bf16.mxu0 %v6357_v13  ;;  %v1885_v32 = vmax.f32 %v1821_v15, 0.0  ;;  %v1889_v12 = vmax.f32 %v1825_v41, 0.0  ;;  %v1941_v39 = vmul.f32 %v1909_v38, %v7642_v40  ;;  %v4548_v24 = vld [vmem:[%s7268_s8 + $0x2dc] ss:$20 sps:$4 sm:$0xff]  }
0x1904   :  { %3149 = vmatprep.subr.bf16.mxu0 %v4539_v44  ;;  %v1945_v19 = vmul.f32 %v1913_v42, %v7643_v2  ;;  %v1950_v18 = vmul.f32 %v1918_v29, %v7648_v53  ;;  %v1954_v28 = vmul.f32 %v1922_v17, %v7649_v11  ;;  %v6383_v14 = vpack.c.bf16 %v1947_v34, %v1943_v27  ;;  %v4551_v56 = vld [vmem:[%s7268_s8 + $0x5c] ss:$20 sps:$4 sm:$0xff]   ;;  %v4546_v22 = vld [vmem:[%s7268_s8 + $0x2d8] ss:$20 sps:$4 sm:$0xff]   ;;  %v4554_v10 = vld [vmem:[%s7268_s8 + $0x2b4] ss:$20 sps:$4 sm:$0xff]  }
0x1905   :  { %3223 = vmatpush1.bf16.msra.mxu1 %v4534_v50  ;;  %v1919_v49 = vmax.f32 %v1879_v30, %v1883_v45  ;;  %v1923_v0 = vmax.f32 %v1887_v62, %v1891_v20  ;;  %v1917_v63 = vmax.f32 %v1877_v16, %v1881_v3  ;;  %v1921_v6 = vmax.f32 %v1885_v32, %v1889_v12  ;;  %v4549_v61 = vld [vmem:[%s7268_s8 + $0x58] ss:$20 sps:$4 sm:$0xff]   ;;  %v4557_v1 = vld [vmem:[%s7268_s8 + $0x34] ss:$20 sps:$4 sm:$0xff]   ;;  %v4555_v25 = vld [vmem:[%s7268_s8 + $0x30] ss:$20 sps:$4 sm:$0xff]  }
0x1906   :  { %3224 = vmatprep.subr.bf16.mxu1 %v4542_v7  ;;  %v6392_v26 = vpack.c.bf16 %v1945_v19, %v1941_v39  ;;  %v6398_v33 = vpack.c.bf16 %v1954_v28, %v1950_v18  ;;  %v4560_v4 = vld [vmem:[%s7268_s8 + $0x28c] ss:$20 sps:$4 sm:$0xff]   ;;  %v7651_v38 = vld [vmem:[#allocation49_spill] sm:$0xff]  ;;  %v4578_v34 = vld [vmem:[%s7268_s8 + $0x494] ss:$20 sps:$4 sm:$0xff]  }
0x1907   :  { %3150 = vmatpush1.bf16.msra.mxu0 %v4537_v55  ;;  %v1951_v8 = vmul.f32 %v1919_v49, %v7648_v53  ;;  %v1955_v58 = vmul.f32 %v1923_v0, %v7649_v11  ;;  %v1949_v51 = vmul.f32 %v1917_v63, %v7648_v53  ;;  %v1953_v15 = vmul.f32 %v1921_v6, %v7649_v11  ;;  %v4563_v44 = vld [vmem:[%s7268_s8 + $0xc] ss:$20 sps:$4 sm:$0xff]   ;;  %v4558_v42 = vld [vmem:[%s7268_s8 + $0x288] ss:$20 sps:$4 sm:$0xff]   ;;  %v4566_v45 = vld [vmem:[%s7268_s8 + $0x4e4] ss:$20 sps:$4 sm:$0xff]  }
0x1908   :  { %3123 = vmatmul.mubr.bf16.gmra.mxu1 %v6383_v14  ;;  %3151 = vmatprep.subr.bf16.mxu0 %v4545_v5  ;;  %v4561_v50 = vld [vmem:[%s7268_s8 + $0x8] ss:$20 sps:$4 sm:$0xff]   ;;  %v4569_v29 = vld [vmem:[%s7268_s8 + $0x264] ss:$20 sps:$4 sm:$0xff]   ;;  %v4564_v17 = vld [vmem:[%s7268_s8 + $0x4e0] ss:$20 sps:$4 sm:$0xff]  }
0x1909   :  { %3225 = vmatpush1.bf16.msra.mxu1 %v4540_v35  ;;  %3132 = vmatprep.mubr.bf16.mxu1 %v7650_v31  ;;  %v6421_v41 = vpack.c.bf16 %v1955_v58, %v1951_v8  ;;  %v6430_v30 = vpack.c.bf16 %v1953_v15, %v1949_v51  ;;  %v4572_v62 = vld [vmem:[%s7268_s8 + $0x4bc] ss:$20 sps:$4 sm:$0xff]   ;;  %v4567_v20 = vld [vmem:[%s7268_s8 + $0x260] ss:$20 sps:$4 sm:$0xff]   ;;  %v4570_v27 = vld [vmem:[%s7268_s8 + $0x4b8] ss:$20 sps:$4 sm:$0xff]  }
0x190a   :  { %3050 = vmatmul.mubr.bf16.gmra.mxu0 %v6392_v26  ;;  %3226 = vmatprep.subr.bf16.mxu1 %v4548_v24  ;;  %v4575_v7 = vld [vmem:[%s7268_s8 + $0x23c] ss:$20 sps:$4 sm:$0xff]   ;;  %v4573_v16 = vld [vmem:[%s7268_s8 + $0x238] ss:$20 sps:$4 sm:$0xff]   ;;  %v4581_v3 = vld [vmem:[%s7268_s8 + $0x214] ss:$20 sps:$4 sm:$0xff]  }
0x190b   :  { %3152 = vmatpush1.bf16.msra.mxu0 %v4543_v21  ;;  %3059 = vmatprep.mubr.bf16.mxu0 %v6398_v33  ;;  %v4576_v55 = vld [vmem:[%s7268_s8 + $0x490] ss:$20 sps:$4 sm:$0xff]   ;;  %v4584_v32 = vld [vmem:[%s7268_s8 + $0x46c] ss:$20 sps:$4 sm:$0xff]   ;;  %v4582_v39 = vld [vmem:[%s7268_s8 + $0x468] ss:$20 sps:$4 sm:$0xff]  }
0x190c   :  { %3153 = vmatprep.subr.bf16.mxu0 %v4551_v56  ;;  %v4579_v12 = vld [vmem:[%s7268_s8 + $0x210] ss:$20 sps:$4 sm:$0xff]   ;;  %v4587_v5 = vld [vmem:[%s7268_s8 + $0x1ec] ss:$20 sps:$4 sm:$0xff]   ;;  %v4585_v35 = vld [vmem:[%s7268_s8 + $0x1e8] ss:$20 sps:$4 sm:$0xff]  }
0x190d   :  { %3227 = vmatpush1.bf16.msra.mxu1 %v4546_v22  ;;  %v4590_v19 = vld [vmem:[%s7268_s8 + $0x444] ss:$20 sps:$4 sm:$0xff]   ;;  %v4588_v28 = vld [vmem:[%s7268_s8 + $0x440] ss:$20 sps:$4 sm:$0xff]   ;;  %v4596_v24 = vld [vmem:[%s7268_s8 + $0x41c] ss:$20 sps:$4 sm:$0xff]  }
0x190e   :  { %3228 = vmatprep.subr.bf16.mxu1 %v4554_v10  ;;  %v4593_v18 = vld [vmem:[%s7268_s8 + $0x1c4] ss:$20 sps:$4 sm:$0xff]   ;;  %v4591_v49 = vld [vmem:[%s7268_s8 + $0x1c0] ss:$20 sps:$4 sm:$0xff]   ;;  %v4599_v0 = vld [vmem:[%s7268_s8 + $0x19c] ss:$20 sps:$4 sm:$0xff]  }
0x190f   :  { %3154 = vmatpush1.bf16.msra.mxu0 %v4549_v61  ;;  %v4594_v21 = vld [vmem:[%s7268_s8 + $0x418] ss:$20 sps:$4 sm:$0xff]   ;;  %v4602_v56 = vld [vmem:[%s7268_s8 + $0x3f4] ss:$20 sps:$4 sm:$0xff]   ;;  %v4600_v22 = vld [vmem:[%s7268_s8 + $0x3f0] ss:$20 sps:$4 sm:$0xff]  }
0x1910   :  { %3133 = vmatmul.mubr.bf16.gmra.mxu1 %v6421_v41  ;;  %3155 = vmatprep.subr.bf16.mxu0 %v4557_v1  ;;  %v4597_v63 = vld [vmem:[%s7268_s8 + $0x198] ss:$20 sps:$4 sm:$0xff]   ;;  %v4605_v6 = vld [vmem:[%s7268_s8 + $0x174] ss:$20 sps:$4 sm:$0xff]   ;;  %v4603_v8 = vld [vmem:[%s7268_s8 + $0x170] ss:$20 sps:$4 sm:$0xff]  }
0x1911   :  { %3229 = vmatpush1.bf16.msra.mxu1 %v4552_v54  ;;  %3248 = vmatprep.mubr.bf16.mxu1 %v7651_v38  ;;  %v4608_v10 = vld [vmem:[%s7268_s8 + $0x3cc] ss:$20 sps:$4 sm:$0xff]   ;;  %v4606_v61 = vld [vmem:[%s7268_s8 + $0x3c8] ss:$20 sps:$4 sm:$0xff]  }
0x1912   :  { %3060 = vmatmul.mubr.bf16.gmra.mxu0 %v6430_v30  ;;  %3230 = vmatprep.subr.bf16.mxu1 %v4560_v4  ;;  %v4611_v58 = vld [vmem:[%s7268_s8 + $0x14c] ss:$20 sps:$4 sm:$0xff]   ;;  %v4612_v1 = vld [vmem:[%s7268_s8 + $0x4e8] ss:$20 sps:$4 sm:$0xff]  }
0x1913   :  { %3156 = vmatpush1.bf16.msra.mxu0 %v4555_v25  ;;  %3175 = vmatprep.mubr.bf16.mxu0 %v6275_v9  ;;  %v4609_v51 = vld [vmem:[%s7268_s8 + $0x148] ss:$20 sps:$4 sm:$0xff]   ;;  %v4616_v4 = vld [vmem:[%s7268_s8 + $0x4c0] ss:$20 sps:$4 sm:$0xff]  }
0x1914   :  { %3157 = vmatprep.subr.bf16.mxu0 %v4563_v44  ;;  %v4613_v15 = vld [vmem:[%s7268_s8 + $0x268] ss:$20 sps:$4 sm:$0xff]   ;;  %v4617_v44 = vld [vmem:[%s7268_s8 + $0x240] ss:$20 sps:$4 sm:$0xff]  }
0x1915   :  { %3231 = vmatpush1.bf16.msra.mxu1 %v4558_v42  ;;  %v4614_v54 = vld [vmem:[%s7268_s8 + $0x3a8] ss:$20 sps:$4 sm:$0xff]   ;;  %v4618_v42 = vld [vmem:[%s7268_s8 + $0x380] ss:$20 sps:$4 sm:$0xff]  }
0x1916   :  { %3232 = vmatprep.subr.bf16.mxu1 %v4566_v45  ;;  %v4615_v25 = vld [vmem:[%s7268_s8 + $0x128] ss:$20 sps:$4 sm:$0xff]   ;;  %v4620_v45 = vld [vmem:[%s7268_s8 + $0x498] ss:$20 sps:$4 sm:$0xff]  }
0x1917   :  { %3158 = vmatpush1.bf16.msra.mxu0 %v4561_v50  ;;  %v4619_v50 = vld [vmem:[%s7268_s8 + $0x100] ss:$20 sps:$4 sm:$0xff]  }
0x1918   :  { %3159 = vmatprep.subr.bf16.mxu0 %v4569_v29  ;;  %v4621_v29 = vld [vmem:[%s7268_s8 + $0x218] ss:$20 sps:$4 sm:$0xff]  }
0x1919   :  { %3233 = vmatpush2.bf16.msra.mxu1 %v4564_v17  ;;  %v4622_v17 = vld [vmem:[%s7268_s8 + $0x358] ss:$20 sps:$4 sm:$0xff]  }
0x191a   :  { %3234 = vmatprep.subr.bf16.mxu1 %v4572_v62  ;;  %v4624_v62 = vld [vmem:[%s7268_s8 + $0x470] ss:$20 sps:$4 sm:$0xff]  }
0x191b   :  { %3160 = vmatpush2.bf16.msra.mxu0 %v4567_v20  ;;  %v4623_v20 = vld [vmem:[%s7268_s8 + $0xd8] ss:$20 sps:$4 sm:$0xff]  }
0x191c   :  { %3161 = vmatprep.subr.bf16.mxu0 %v4575_v7  ;;  %v4625_v7 = vld [vmem:[%s7268_s8 + $0x1f0] ss:$20 sps:$4 sm:$0xff]  }
0x191d   :  { %3235 = vmatpush2.bf16.msra.mxu1 %v4570_v27  ;;  %v4626_v27 = vld [vmem:[%s7268_s8 + $0x330] ss:$20 sps:$4 sm:$0xff]  }
0x191e   :  { %3236 = vmatprep.subr.bf16.mxu1 %v4578_v34  ;;  %v4628_v34 = vld [vmem:[%s7268_s8 + $0x448] ss:$20 sps:$4 sm:$0xff]  }
0x191f   :  { %3162 = vmatpush2.bf16.msra.mxu0 %v4573_v16  ;;  %v4627_v16 = vld [vmem:[%s7268_s8 + $0xb0] ss:$20 sps:$4 sm:$0xff]  }
0x1920   :  { %3163 = vmatprep.subr.bf16.mxu0 %v4581_v3  ;;  %v4629_v3 = vld [vmem:[%s7268_s8 + $0x1c8] ss:$20 sps:$4 sm:$0xff]  }
0x1921   :  { %3237 = vmatpush2.bf16.msra.mxu1 %v4576_v55  ;;  %v4630_v55 = vld [vmem:[%s7268_s8 + $0x308] ss:$20 sps:$4 sm:$0xff]  }
0x1922   :  { %3238 = vmatprep.subr.bf16.mxu1 %v4584_v32  ;;  %v4632_v32 = vld [vmem:[%s7268_s8 + $0x420] ss:$20 sps:$4 sm:$0xff]  }
0x1923   :  { %3164 = vmatpush2.bf16.msra.mxu0 %v4579_v12  ;;  %v4631_v12 = vld [vmem:[%s7268_s8 + $0x88] ss:$20 sps:$4 sm:$0xff]  }
0x1924   :  { %3165 = vmatprep.subr.bf16.mxu0 %v4587_v5  ;;  %v4633_v5 = vld [vmem:[%s7268_s8 + $0x1a0] ss:$20 sps:$4 sm:$0xff]  }
0x1925   :  { %3239 = vmatpush2.bf16.msra.mxu1 %v4582_v39  ;;  %v4634_v39 = vld [vmem:[%s7268_s8 + $0x2e0] ss:$20 sps:$4 sm:$0xff]  }
0x1926   :  { %3240 = vmatprep.subr.bf16.mxu1 %v4590_v19  ;;  %v4636_v19 = vld [vmem:[%s7268_s8 + $0x3f8] ss:$20 sps:$4 sm:$0xff]  }
0x1927   :  { %3166 = vmatpush2.bf16.msra.mxu0 %v4585_v35  ;;  %v4635_v35 = vld [vmem:[%s7268_s8 + $0x60] ss:$20 sps:$4 sm:$0xff]  }
0x1928   :  { %3167 = vmatprep.subr.bf16.mxu0 %v4593_v18  ;;  %v4637_v18 = vld [vmem:[%s7268_s8 + $0x178] ss:$20 sps:$4 sm:$0xff]  }
0x1929   :  { %3241 = vmatpush2.bf16.msra.mxu1 %v4588_v28  ;;  %v4638_v28 = vld [vmem:[%s7268_s8 + $0x2b8] ss:$20 sps:$4 sm:$0xff]  }
0x192a   :  { %3242 = vmatprep.subr.bf16.mxu1 %v4596_v24  ;;  %v4640_v24 = vld [vmem:[%s7268_s8 + $0x3d0] ss:$20 sps:$4 sm:$0xff]  }
0x192b   :  { %3168 = vmatpush2.bf16.msra.mxu0 %v4591_v49  ;;  %v4639_v49 = vld [vmem:[%s7268_s8 + $0x38] ss:$20 sps:$4 sm:$0xff]  }
0x192c   :  { %3169 = vmatprep.subr.bf16.mxu0 %v4599_v0  ;;  %v4641_v0 = vld [vmem:[%s7268_s8 + $0x150] ss:$20 sps:$4 sm:$0xff]  }
0x192d   :  { %3243 = vmatpush2.bf16.msra.mxu1 %v4594_v21  ;;  %v4642_v21 = vld [vmem:[%s7268_s8 + $0x290] ss:$20 sps:$4 sm:$0xff]  }
0x192e   :  { %3244 = vmatprep.subr.bf16.mxu1 %v4602_v56  ;;  %v4643_v56 = vld [vmem:[%s7268_s8 + $0x10] ss:$20 sps:$4 sm:$0xff]  }
0x192f   :  { %3170 = vmatpush2.bf16.msra.mxu0 %v4597_v63 }
0x1930   :  { %3171 = vmatprep.subr.bf16.mxu0 %v4605_v6 }
0x1931   :  { %3245 = vmatpush2.bf16.msra.mxu1 %v4600_v22 }
0x1932   :  { %3246 = vmatprep.subr.bf16.mxu1 %v4608_v10 }
0x1933   :  { %3172 = vmatpush2.bf16.msra.mxu0 %v4603_v8 }
0x1934   :  { %3173 = vmatprep.subr.bf16.mxu0 %v4611_v58 }
0x1935   :  { %3247 = vmatpush2.bf16.msra.mxu1 %v4606_v61 }
0x1936   :  { %4263 = vmatprep.subr.bf16.mxu1 %v4612_v1 }
0x1937   :  { %3174 = vmatpush2.bf16.msra.mxu0 %v4609_v51 }
0x1938   :  { %3249 = vmatmul.mubr.bf16.vlgmr.msra.gmra.mxu1 %v6259_v59  ;;  %4223 = vmatprep.subr.bf16.mxu0 %v4613_v15 }
0x1939   :  { %3258 = vmatprep.mubr.bf16.mxu1 %v7641_v60  ;;  %4264 = vmatpush3.bf16.msra.mxu1 %v4614_v54 }
0x193a   :  { %3176 = vmatmul.mubr.bf16.vlgmr.msra.gmra.mxu0 %v6261_v36  ;;  %4265 = vmatprep.subr.bf16.mxu1 %v4616_v4 }
0x193b   :  { %3185 = vmatprep.mubr.bf16.mxu0 %v6294_v57  ;;  %4224 = vmatpush3.bf16.msra.mxu0 %v4615_v25 }
0x193c   :  { %4225 = vmatprep.subr.bf16.mxu0 %v4617_v44 }
0x193d   :  { %4266 = vmatpush3.bf16.msra.mxu1 %v4618_v42 }
0x193e   :  { %4267 = vmatprep.subr.bf16.mxu1 %v4620_v45 }
0x193f   :  { %4226 = vmatpush3.bf16.msra.mxu0 %v4619_v50 }
0x1940   :  { %3259 = vmatmul.mubr.bf16.gmra.mxu1 %v6332_v47  ;;  %4227 = vmatprep.subr.bf16.mxu0 %v4621_v29 }
0x1941   :  { %3268 = vmatprep.mubr.bf16.mxu1 %v7647_v23  ;;  %4268 = vmatpush3.bf16.msra.mxu1 %v4622_v17 }
0x1942   :  { %3186 = vmatmul.mubr.bf16.gmra.mxu0 %v6350_v52  ;;  %4269 = vmatprep.subr.bf16.mxu1 %v4624_v62 }
0x1943   :  { %3195 = vmatprep.mubr.bf16.mxu0 %v6357_v13  ;;  %4228 = vmatpush3.bf16.msra.mxu0 %v4623_v20 }
0x1944   :  { %4229 = vmatprep.subr.bf16.mxu0 %v4625_v7 }
0x1945   :  { %4270 = vmatpush3.bf16.msra.mxu1 %v4626_v27 }
0x1946   :  { %4271 = vmatprep.subr.bf16.mxu1 %v4628_v34 }
0x1947   :  { %4230 = vmatpush3.bf16.msra.mxu0 %v4627_v16 }
0x1948   :  { %3269 = vmatmul.mubr.bf16.gmra.mxu1 %v6383_v14  ;;  %4231 = vmatprep.subr.bf16.mxu0 %v4629_v3 }
0x1949   :  { %3278 = vmatprep.mubr.bf16.mxu1 %v7650_v31  ;;  %4272 = vmatpush3.bf16.msra.mxu1 %v4630_v55 }
0x194a   :  { %3196 = vmatmul.mubr.bf16.gmra.mxu0 %v6392_v26  ;;  %4273 = vmatprep.subr.bf16.mxu1 %v4632_v32 }
0x194b   :  { %3205 = vmatprep.mubr.bf16.mxu0 %v6398_v33  ;;  %4232 = vmatpush3.bf16.msra.mxu0 %v4631_v12 }
0x194c   :  { %4233 = vmatprep.subr.bf16.mxu0 %v4633_v5 }
0x194d   :  { %4274 = vmatpush3.bf16.msra.mxu1 %v4634_v39 }
0x194e   :  { %4275 = vmatprep.subr.bf16.mxu1 %v4636_v19 }
0x194f   :  { %4234 = vmatpush3.bf16.msra.mxu0 %v4635_v35 }
0x1950   :  { %3279 = vmatmul.mubr.bf16.gmra.mxu1 %v6421_v41  ;;  %4235 = vmatprep.subr.bf16.mxu0 %v4637_v18 }
0x1951   :  { %4276 = vmatpush3.bf16.msra.mxu1 %v4638_v28  ;;  %3386 = vmatprep.mubr.bf16.mxu1 %v7651_v38  ;;  %v7652_v38 = vmov 0.0  }
0x1952   :  { %3206 = vmatmul.mubr.bf16.gmra.mxu0 %v6430_v30  ;;  %4277 = vmatprep.subr.bf16.mxu1 %v4640_v24 }
0x1953   :  { %4236 = vmatpush3.bf16.msra.mxu0 %v4639_v49  ;;  %3321 = vmatprep.mubr.bf16.mxu0 %v6275_v9 }
0x1954   :  { %4237 = vmatprep.subr.bf16.mxu0 %v4641_v0 }
0x1955   :  { %4278 = vmatpush3.bf16.msra.mxu1 %v4642_v21 }
0x1957   :  { %4238 = vmatpush3.bf16.msra.mxu0 %v4643_v56 }
0x1958   :  { %3387 = vmatmul.mubr.bf16.vlgmr.msra.gmra.mxu1 %v6259_v59  ;;  %4386 = vmatprep.subr.bf16.mxu0 %v7652_v38 }
0x1959   :  { %3394 = vmatprep.mubr.bf16.mxu1 %v7641_v60 }
0x195a   :  { %3322 = vmatmul.mubr.bf16.vlgmr.msra.gmra.mxu0 %v6261_v36 }
0x195b   :  { %3329 = vmatprep.mubr.bf16.mxu0 %v6294_v57 }
0x1960   :  { %3395 = vmatmul.mubr.bf16.gmra.mxu1 %v6332_v47 }
0x1961   :  { %3402 = vmatprep.mubr.bf16.mxu1 %v7647_v23 }
0x1962   :  { %3330 = vmatmul.mubr.bf16.gmra.mxu0 %v6350_v52 }
0x1963   :  { %3337 = vmatprep.mubr.bf16.mxu0 %v6357_v13 }
0x1968   :  { %3403 = vmatmul.mubr.bf16.gmra.mxu1 %v6383_v14 }
0x1969   :  { %3410 = vmatprep.mubr.bf16.mxu1 %v7650_v31 }
0x196a   :  { %3338 = vmatmul.mubr.bf16.gmra.mxu0 %v6392_v26 }
0x196b   :  { %3345 = vmatprep.mubr.bf16.mxu0 %v6398_v33 }
0x1970   :  { %3411 = vmatmul.mubr.bf16.gmra.mxu1 %v6421_v41 }
0x1972   :  { %3346 = vmatmul.mubr.bf16.gmra.mxu0 %v6430_v30 }
0x1973   :  { %4402 = vmatprep.mubr.msk.bf16.mxu0 %vm4721_vm0, %v7652_v38 }
0x19b8   :  { %v3104_v59 = vpop.f32.mrf.mxu1 }
0x19ba   :  { %v3031_v36 = vpop.f32.mrf.mxu0  ;;  %v3106_v9 = vpop.f32.mrf.mxu1 }
0x19bb   :  { %v6669_v57 = vadd.f32 %v3104_v59, %v3031_v36 }
0x19bc   :  { %v3033_v60 = vpop.f32.mrf.mxu0  ;;  %v3108_v47 = vpop.f32.mrf.mxu1 }
0x19bd   :  { %v6671_v52 = vadd.f32 %v3106_v9, %v3033_v60 }
0x19be   :  { %v3035_v23 = vpop.f32.mrf.mxu0  ;;  %v3110_v13 = vpop.f32.mrf.mxu1 }
0x19bf   :  { %v6673_v14 = vadd.f32 %v3108_v47, %v3035_v23 }
0x19c0   :  { %v3037_v26 = vpop.f32.mrf.mxu0  ;;  %v3114_v31 = vpop.f32.mrf.mxu1 }
0x19c1   :  { %v3419_v33 = vadd.f32 %v6673_v14, %v6669_v57  ;;  %v6677_v41 = vadd.f32 %v3110_v13, %v3037_v26 }
0x19c2   :  { %v3041_v30 = vpop.f32.mrf.mxu0  ;;  %v3116_v63 = vpop.f32.mrf.mxu1 }
0x19c3   :  { %v3432_v6 = vadd.f32 %v6677_v41, %v6671_v52  ;;  %v6681_v22 = vadd.f32 %v3114_v31, %v3041_v30 }
0x19c4   :  { %v3043_v10 = vpop.f32.mrf.mxu0  ;;  %v3118_v8 = vpop.f32.mrf.mxu1 }
0x19c5   :  { %v3420_v58 = vadd.f32 %v3419_v33, %v6681_v22  ;;  %v6684_v61 = vadd.f32 %v3116_v63, %v3043_v10 }
0x19c6   :  { %v3045_v1 = vpop.f32.mrf.mxu0  ;;  %v3120_v51 = vpop.f32.mrf.mxu1 }
0x19c7   :  { %v3433_v15 = vadd.f32 %v3432_v6, %v6684_v61  ;;  %v6687_v54 = vadd.f32 %v3118_v8, %v3045_v1 }
0x19c8   :  { %v3047_v4 = vpop.f32.mrf.mxu0  ;;  %v3124_v25 = vpop.f32.mrf.mxu1 }
0x19c9   :  { %v3421_v44 = vadd.f32 %v3420_v58, %v6687_v54  ;;  %v6690_v42 = vadd.f32 %v3120_v51, %v3047_v4 }
0x19ca   :  { %v3051_v45 = vpop.f32.mrf.mxu0  ;;  %v3126_v50 = vpop.f32.mrf.mxu1 }
0x19cb   :  { %v3434_v29 = vadd.f32 %v3433_v15, %v6690_v42  ;;  %v6693_v17 = vadd.f32 %v3124_v25, %v3051_v45 }
0x19cc   :  { %v3053_v62 = vpop.f32.mrf.mxu0  ;;  %v3128_v20 = vpop.f32.mrf.mxu1 }
0x19cd   :  { %v3422_v7 = vadd.f32 %v3421_v44, %v6693_v17  ;;  %v6696_v27 = vadd.f32 %v3126_v50, %v3053_v62 }
0x19ce   :  { %v3055_v34 = vpop.f32.mrf.mxu0  ;;  %v3130_v16 = vpop.f32.mrf.mxu1 }
0x19cf   :  { %v3435_v3 = vadd.f32 %v3434_v29, %v6696_v27  ;;  %v6699_v55 = vadd.f32 %v3128_v20, %v3055_v34 }
0x19d0   :  { %v3057_v32 = vpop.f32.mrf.mxu0  ;;  %v3134_v12 = vpop.f32.mrf.mxu1 }
0x19d1   :  { %v3423_v5 = vadd.f32 %v3422_v7, %v6699_v55  ;;  %v6702_v39 = vadd.f32 %v3130_v16, %v3057_v32 }
0x19d2   :  { %v3061_v19 = vpop.f32.mrf.mxu0  ;;  %v3136_v35 = vpop.f32.mrf.mxu1 }
0x19d3   :  { %v3436_v18 = vadd.f32 %v3435_v3, %v6702_v39  ;;  %v6705_v28 = vadd.f32 %v3134_v12, %v3061_v19 }
0x19d4   :  { %v3063_v24 = vpop.f32.mrf.mxu0  ;;  %v3138_v49 = vpop.f32.mrf.mxu1 }
0x19d5   :  { %v3424_v0 = vadd.f32 %v3423_v5, %v6705_v28  ;;  %v6708_v21 = vadd.f32 %v3136_v35, %v3063_v24 }
0x19d6   :  { %v3065_v56 = vpop.f32.mrf.mxu0  ;;  %v3140_v59 = vpop.f32.mrf.mxu1 }
0x19d7   :  { %7653 = vst [vmem:[#allocation51_spill] sm:$0xff] %v6708_v21  ;;  %v6710_v36 = vadd.f32 %v3138_v49, %v3065_v56  ;;  %v3437_v60 = vadd.f32 %v3436_v18, %v6708_v21 }
0x19d8   :  { %v3067_v9 = vpop.f32.mrf.mxu0 }
0x19d9   :  { %7654 = vst [vmem:[#allocation70_spill] sm:$0xff] %v6710_v36  ;;  %v3425_v47 = vadd.f32 %v3424_v0, %v6710_v36  ;;  %v6714_v23 = vadd.f32 %v3140_v59, %v3067_v9 }
0x19db   :  { %7655 = vst [vmem:[#allocation71_spill] sm:$0xff] %v6714_v23  ;;  %v3426_v13 = vrot.slane %v3425_v47, 4  ;;  %v3438_v26 = vadd.f32 %v3437_v60, %v6714_v23 }
0x19dd   :  { %v3427_v31 = vadd.f32 %v3426_v13, %v3425_v47  ;;  %v3439_v33 = vrot.slane %v3438_v26, 4 }
0x19df   :  { %v3428_v30 = vrot.slane %v3427_v31, 2  ;;  %v3440_v63 = vadd.f32 %v3439_v33, %v3438_v26 }
0x19e1   :  { %v3429_v6 = vadd.f32 %v3428_v30, %v3427_v31  ;;  %v3441_v10 = vrot.slane %v3440_v63, 2 }
0x19e3   :  { %v3430_v8 = vrot.slane %v3429_v6, 1  ;;  %v3442_v58 = vadd.f32 %v3441_v10, %v3440_v63 }
0x19e5   :  { %v3443_v1 = vrot.slane %v3442_v58, 1  ;;  %v3431_v51 = vadd.f32 %v3430_v8, %v3429_v6 }
0x19e7   :  { %v3444_v15 = vadd.f32 %v3443_v1, %v3442_v58 }
0x19e9   :  { %v6717_v4 = vadd.f32 %v3444_v15, %v3431_v51 }
0x19f8   :  { %v3250_v25 = vpop.f32.mrf.mxu1 }
0x19fa   :  { %v3177_v44 = vpop.f32.mrf.mxu0  ;;  %v3252_v45 = vpop.f32.mrf.mxu1 }
0x19fb   :  { %v6721_v58 = vadd.f32 %v3250_v25, %v3177_v44 }
0x19fc   :  { %v3179_v50 = vpop.f32.mrf.mxu0  ;;  %v3254_v29 = vpop.f32.mrf.mxu1 }
0x19fd   :  { %v6731_v48 = vadd.f32 %v3252_v45, %v3179_v50 }
0x19fe   :  { %v3181_v62 = vpop.f32.mrf.mxu0  ;;  %v3256_v20 = vpop.f32.mrf.mxu1 }
0x19ff   :  { %v6719_v6 = vadd.f32 %v3254_v29, %v3181_v62 }
0x1a00   :  { %v3183_v7 = vpop.f32.mrf.mxu0  ;;  %v3260_v34 = vpop.f32.mrf.mxu1 }
0x1a01   :  { %v3445_v11 = vadd.f32 %v6719_v6, %v6721_v58  ;;  %v6727_v53 = vadd.f32 %v3256_v20, %v3183_v7 }
0x1a02   :  { %v3187_v16 = vpop.f32.mrf.mxu0  ;;  %v3262_v3 = vpop.f32.mrf.mxu1 }
0x1a03   :  { %v6723_v1 = vadd.f32 %v3260_v34, %v3187_v16  ;;  %v3458_v16 = vadd.f32 %v6727_v53, %v6731_v48 }
0x1a04   :  { %v3189_v32 = vpop.f32.mrf.mxu0  ;;  %v3264_v12 = vpop.f32.mrf.mxu1 }
0x1a05   :  { %v3446_v29 = vadd.f32 %v3445_v11, %v6723_v1  ;;  %v6734_v62 = vadd.f32 %v3262_v3, %v3189_v32 }
0x1a06   :  { %v3191_v5 = vpop.f32.mrf.mxu0  ;;  %v3266_v19 = vpop.f32.mrf.mxu1 }
0x1a07   :  { %v6729_v2 = vadd.f32 %v3264_v12, %v3191_v5  ;;  %v3459_v50 = vadd.f32 %v3458_v16, %v6734_v62 }
0x1a08   :  { %v3193_v35 = vpop.f32.mrf.mxu0  ;;  %v3270_v18 = vpop.f32.mrf.mxu1 }
0x1a09   :  { %v3447_v20 = vadd.f32 %v3446_v29, %v6729_v2  ;;  %v6741_v7 = vadd.f32 %v3266_v19, %v3193_v35 }
0x1a0a   :  { %v3197_v24 = vpop.f32.mrf.mxu0  ;;  %v3272_v49 = vpop.f32.mrf.mxu1 }
0x1a0b   :  { %v6736_v25 = vadd.f32 %v3270_v18, %v3197_v24  ;;  %v3460_v46 = vadd.f32 %v3459_v50, %v6741_v7 }
0x1a0c   :  { %v3199_v0 = vpop.f32.mrf.mxu0  ;;  %v3274_v56 = vpop.f32.mrf.mxu1 }
0x1a0d   :  { %v3448_v11 = vadd.f32 %v3447_v20, %v6736_v25  ;;  %v6747_v3 = vadd.f32 %v3272_v49, %v3199_v0 }
0x1a0e   :  { %v3201_v59 = vpop.f32.mrf.mxu0  ;;  %v3276_v9 = vpop.f32.mrf.mxu1 }
0x1a0f   :  { %v6743_v12 = vadd.f32 %v3274_v56, %v3201_v59  ;;  %v3461_v16 = vadd.f32 %v3460_v46, %v6747_v3 }
0x1a10   :  { %v3203_v60 = vpop.f32.mrf.mxu0  ;;  %v3280_v47 = vpop.f32.mrf.mxu1 }
0x1a11   :  { %v3449_v29 = vadd.f32 %v3448_v11, %v6743_v12  ;;  %v6753_v19 = vadd.f32 %v3276_v9, %v3203_v60 }
0x1a12   :  { %v3207_v13 = vpop.f32.mrf.mxu0  ;;  %v3282_v26 = vpop.f32.mrf.mxu1 }
0x1a13   :  { %v6749_v32 = vadd.f32 %v3280_v47, %v3207_v13  ;;  %7657 = vst [vmem:[#allocation55_spill] sm:$0xff] %v6753_v19  ;;  %v3462_v13 = vadd.f32 %v3461_v16, %v6753_v19 }
0x1a14   :  { %v3209_v31 = vpop.f32.mrf.mxu0  ;;  %v3284_v33 = vpop.f32.mrf.mxu1 }
0x1a15   :  { %7656 = vst [vmem:[#allocation54_spill] sm:$0xff] %v6749_v32  ;;  %v3450_v20 = vadd.f32 %v3449_v29, %v6749_v32  ;;  %v6759_v49 = vadd.f32 %v3282_v26, %v3209_v31 }
0x1a16   :  { %v3211_v30 = vpop.f32.mrf.mxu0  ;;  %v3286_v63 = vpop.f32.mrf.mxu1 }
0x1a17   :  { %v6755_v35 = vadd.f32 %v3284_v33, %v3211_v30  ;;  %v3463_v11 = vadd.f32 %v3462_v13, %v6759_v49 }
0x1a18   :  { %v3213_v10 = vpop.f32.mrf.mxu0  ;;  %v4279_v8 = vpop.f32.mrf.mxu1 }
0x1a19   :  { %7658 = vst [vmem:[#allocation56_spill] sm:$0xff] %v6755_v35  ;;  %v3451_v50 = vadd.f32 %v3450_v20, %v6755_v35  ;;  %v6763_v43 = vadd.f32 %v3286_v63, %v3213_v10 }
0x1a1a   :  { %v4239_v51 = vpop.f32.mrf.mxu0  ;;  %v4280_v15 = vpop.f32.mrf.mxu1 }
0x1a1b   :  { %v4281_v36 = vadd.f32 %v4280_v15, %v4279_v8  ;;  %v3452_v32 = vrot.slane %v3451_v50, 4  ;;  %v3464_v21 = vadd.f32 %v3463_v11, %v6763_v43 }
0x1a1c   :  { %v4240_v40 = vpop.f32.mrf.mxu0  ;;  %v4282_v37 = vpop.f32.mrf.mxu1 }
0x1a1d   :  { %v4241_v29 = vadd.f32 %v4240_v40, %v4239_v51  ;;  %v3453_v40 = vadd.f32 %v3452_v32, %v3451_v50  ;;  %v3465_v51 = vrot.slane %v3464_v21, 4 }
0x1a1e   :  { %v4242_v44 = vpop.f32.mrf.mxu0  ;;  %v4283_v34 = vpop.f32.mrf.mxu1 }
0x1a1f   :  { %v4284_v33 = vadd.f32 %v4283_v34, %v4282_v37  ;;  %v3454_v50 = vrot.slane %v3453_v40, 2 }
0x1a20   :  { %v4243_v5 = vpop.f32.mrf.mxu0  ;;  %v4285_v45 = vpop.f32.mrf.mxu1 }
0x1a21   :  { %v4244_v30 = vadd.f32 %v4243_v5, %v4242_v44  ;;  %v6769_v44 = vadd.f32 %v4281_v36, %v4241_v29 }
0x1a22   :  { %v4245_v18 = vpop.f32.mrf.mxu0  ;;  %v4286_v24 = vpop.f32.mrf.mxu1 }
0x1a23   :  { %v4287_v26 = vadd.f32 %v4286_v24, %v4285_v45  ;;  %v6767_v20 = vadd.f32 %v4284_v33, %v4244_v30 }
0x1a24   :  { %v4246_v56 = vpop.f32.mrf.mxu0  ;;  %v4288_v59 = vpop.f32.mrf.mxu1 }
0x1a25   :  { %v4247_v31 = vadd.f32 %v4246_v56, %v4245_v18  ;;  %v3471_v18 = vadd.f32 %v6767_v20, %v6769_v44 }
0x1a26   :  { %v4248_v0 = vpop.f32.mrf.mxu0  ;;  %v4289_v47 = vpop.f32.mrf.mxu1 }
0x1a27   :  { %v4290_v63 = vadd.f32 %v4289_v47, %v4288_v59  ;;  %v6771_v34 = vadd.f32 %v4287_v26, %v4247_v31 }
0x1a28   :  { %v4249_v9 = vpop.f32.mrf.mxu0  ;;  %v4291_v60 = vpop.f32.mrf.mxu1 }
0x1a29   :  { %v4250_v10 = vadd.f32 %v4249_v9, %v4248_v0  ;;  %v3472_v36 = vadd.f32 %v3471_v18, %v6771_v34 }
0x1a2a   :  { %v4251_v23 = vpop.f32.mrf.mxu0  ;;  %v4292_v46 = vpop.f32.mrf.mxu1 }
0x1a2b   :  { %v4293_v5 = vadd.f32 %v4292_v46, %v4291_v60  ;;  %v6775_v24 = vadd.f32 %v4290_v63, %v4250_v10  ;;  %v3466_v60 = vadd.f32 %v3465_v51, %v3464_v21  ;;  %v3455_v63 = vadd.f32 %v3454_v50, %v3453_v40 }
0x1a2c   :  { %v4252_v16 = vpop.f32.mrf.mxu0  ;;  %v4294_v19 = vpop.f32.mrf.mxu1 }
0x1a2d   :  { %v4253_v8 = vadd.f32 %v4252_v16, %v4251_v23  ;;  %v3473_v33 = vadd.f32 %v3472_v36, %v6775_v24  ;;  %v3467_v31 = vrot.slane %v3466_v60, 2  ;;  %v3456_v51 = vrot.slane %v3455_v63, 1 }
0x1a2e   :  { %v4254_v35 = vpop.f32.mrf.mxu0  ;;  %v4295_v37 = vpop.f32.mrf.mxu1 }
0x1a2f   :  { %v4296_v56 = vadd.f32 %v4295_v37, %v4294_v19  ;;  %v6778_v13 = vadd.f32 %v4293_v5, %v4253_v8  ;;  %v3468_v8 = vadd.f32 %v3467_v31, %v3466_v60 }
0x1a30   :  { %v4255_v15 = vpop.f32.mrf.mxu0  ;;  %v4297_v45 = vpop.f32.mrf.mxu1 }
0x1a31   :  { %v4256_v59 = vadd.f32 %v4255_v15, %v4254_v35  ;;  %v3474_v19 = vadd.f32 %v3473_v33, %v6778_v13  ;;  %v3469_v18 = vrot.slane %v3468_v8, 1 }
0x1a32   :  { %v4257_v0 = vpop.f32.mrf.mxu0  ;;  %v4298_v47 = vpop.f32.mrf.mxu1 }
0x1a33   :  { %v4299_v9 = vadd.f32 %v4298_v47, %v4297_v45  ;;  %v6781_v30 = vadd.f32 %v4296_v56, %v4256_v59  ;;  %v4644_v56 = vld [vmem:[%s7270_s11 + $0x38] sm:$0xff]   ;;  %v3457_v59 = vadd.f32 %v3456_v51, %v3455_v63  ;;  %v4645_v47 = vld [vmem:[%s7270_s11 + $0x30] sm:$0xff]  }
0x1a34   :  { %v4258_v23 = vpop.f32.mrf.mxu0  ;;  %v4300_v32 = vpop.f32.mrf.mxu1  ;;  %4387 = vmatpush3.bf16.msra.mxu0 %v4644_v56  ;;  %v7662_v56 = vld [vmem:[#allocation54_spill] sm:$0xff] }
0x1a35   :  { %v4259_v11 = vadd.f32 %v4258_v23, %v4257_v0  ;;  %v3475_v21 = vadd.f32 %v3474_v19, %v6781_v30  ;;  %4388 = vmatprep.subr.bf16.mxu0 %v7652_v38  ;;  %v3485_v36 = vadd.f32 %v6717_v4, %v3457_v59  ;;  %v4647_v4 = vld [vmem:[%s7270_s11 + $0x20] sm:$0xff]  }
0x1a36   :  { %v4260_v46 = vpop.f32.mrf.mxu0  ;;  %v4301_v29 = vpop.f32.mrf.mxu1 }
0x1a37   :  { %v6784_v35 = vadd.f32 %v4299_v9, %v4259_v11  ;;  %v4302_v26 = vadd.f32 %v4301_v29, %v4300_v32  ;;  %v3470_v9 = vadd.f32 %v3469_v18, %v3468_v8  ;;  %v4646_v32 = vld [vmem:[%s7270_s11 + $0x28] sm:$0xff]   ;;  %v7659_v29 = vld [vmem:[#allocation53_spill] sm:$0xff] }
0x1a38   :  { %v4261_v16 = vpop.f32.mrf.mxu0  ;;  %4389 = vmatpush3.bf16.msra.mxu0 %v4645_v47  ;;  %v7661_v18 = vld [vmem:[#allocation51_spill] sm:$0xff] }
0x1a39   :  { %v4262_v10 = vadd.f32 %v4261_v16, %v4260_v46  ;;  %v3476_v37 = vadd.f32 %v3475_v21, %v6784_v35  ;;  %4390 = vmatprep.subr.bf16.mxu0 %v7652_v38  ;;  %v3486_v50 = vadd.f32 %v3485_v36, %v3470_v9 }
0x1a3b   :  { %v6788_v5 = vadd.f32 %v4302_v26, %v4262_v10  ;;  %v4648_v26 = vld [vmem:[%s7270_s11 + $0x18] sm:$0xff]  }
0x1a3c   :  { %4391 = vmatpush3.bf16.msra.mxu0 %v4646_v32 }
0x1a3d   :  { %v3477_v15 = vadd.f32 %v3476_v37, %v6788_v5  ;;  %4392 = vmatprep.subr.bf16.mxu0 %v7652_v38 }
0x1a3f   :  { %v3478_v45 = vrot.slane %v3477_v15, 4 }
0x1a40   :  { %4393 = vmatpush3.bf16.msra.mxu0 %v4647_v4 }
0x1a41   :  { %v3479_v0 = vadd.f32 %v3478_v45, %v3477_v15  ;;  %4394 = vmatprep.subr.bf16.mxu0 %v7652_v38 }
0x1a43   :  { %v3480_v40 = vrot.slane %v3479_v0, 2 }
0x1a44   :  { %4395 = vmatpush3.bf16.msra.mxu0 %v4648_v26 }
0x1a45   :  { %v3481_v60 = vadd.f32 %v3480_v40, %v3479_v0  ;;  %4396 = vmatprep.subr.bf16.mxu0 %v7652_v38  ;;  %v7664_v0 = vld [vmem:[#allocation71_spill] sm:$0xff] }
0x1a47   :  { %v3482_v23 = vrot.slane %v3481_v60, 1 }
0x1a49   :  { %v3483_v33 = vadd.f32 %v3482_v23, %v3481_v60 }
0x1a4b   :  { %v3487_v11 = vadd.f32 %v3486_v50, %v3483_v33 }
0x1a4d   :  { %v3488_v46 = vmul.f32 0.00625, %v3487_v11 }
0x1a4f   :  { %v6808_v19 = vrot.slane %v3488_v46, %v7659_v29 }
0x1a51   :  { %v3493_v31 = vsub.f32 %v6669_v57, %v6808_v19  ;;  %v3494_v16 = vsub.f32 %v6671_v52, %v6808_v19  ;;  %v3498_v63 = vsub.f32 %v6673_v14, %v6808_v19  ;;  %v3499_v21 = vsub.f32 %v6677_v41, %v6808_v19  ;;  %v4649_v52 = vld [vmem:[%s7270_s11 + $0x10] sm:$0xff]  }
0x1a52   :  { %v3503_v10 = vsub.f32 %v6681_v22, %v6808_v19  ;;  %v3504_v37 = vsub.f32 %v6684_v61, %v6808_v19  ;;  %v3508_v57 = vsub.f32 %v6687_v54, %v6808_v19  ;;  %v3509_v14 = vsub.f32 %v6690_v42, %v6808_v19  ;;  %4397 = vmatpush3.bf16.msra.mxu0 %v4649_v52  ;;  %v4650_v61 = vld [vmem:[%s7270_s11 + $0x8] sm:$0xff]  }
0x1a53   :  { %v3513_v41 = vsub.f32 %v6693_v17, %v6808_v19  ;;  %v3514_v22 = vsub.f32 %v6696_v27, %v6808_v19  ;;  %v3518_v54 = vsub.f32 %v6699_v55, %v6808_v19  ;;  %v3519_v8 = vsub.f32 %v6702_v39, %v6808_v19  ;;  %4398 = vmatprep.subr.bf16.mxu0 %v7652_v38  ;;  %v7674_v52 = vld [vmem:[#allocation3_spill] sm:$0xff] }
0x1a54   :  { %v3495_v42 = vsub.f32 %v6721_v58, %v6808_v19  ;;  %v3496_v17 = vsub.f32 %v6731_v48, %v6808_v19  ;;  %v3497_v27 = vsub.f32 %v6769_v44, %v6808_v19  ;;  %v3523_v51 = vsub.f32 %v6705_v28, %v6808_v19 }
0x1a55   :  { %v3500_v55 = vsub.f32 %v6719_v6, %v6808_v19  ;;  %v3501_v39 = vsub.f32 %v6727_v53, %v6808_v19  ;;  %v3502_v15 = vsub.f32 %v6767_v20, %v6808_v19  ;;  %v3505_v58 = vsub.f32 %v6723_v1, %v6808_v19  ;;  %v4651_v53 = vld [vmem:[%s7270_s11] sm:$0xff]  }
0x1a56   :  { %v3506_v48 = vsub.f32 %v6734_v62, %v6808_v19  ;;  %v3507_v44 = vsub.f32 %v6771_v34, %v6808_v19  ;;  %v3510_v28 = vsub.f32 %v6729_v2, %v6808_v19  ;;  %v3511_v6 = vsub.f32 %v6741_v7, %v6808_v19  ;;  %4399 = vmatpush3.bf16.msra.mxu0 %v4650_v61  ;;  %v7660_v34 = vld [vmem:[#allocation55_spill] sm:$0xff] }
0x1a57   :  { %v3512_v1 = vsub.f32 %v6775_v24, %v6808_v19  ;;  %v3515_v62 = vsub.f32 %v6736_v25, %v6808_v19  ;;  %v3516_v20 = vsub.f32 %v6747_v3, %v6808_v19  ;;  %v3517_v2 = vsub.f32 %v6778_v13, %v6808_v19  ;;  %4400 = vmatprep.subr.bf16.mxu0 %v7652_v38 }
0x1a58   :  { %v3520_v7 = vsub.f32 %v6743_v12, %v6808_v19  ;;  %v3521_v45 = vsub.f32 %v7660_v34, %v6808_v19  ;;  %v3522_v24 = vsub.f32 %v6781_v30, %v6808_v19  ;;  %v3524_v25 = vsub.f32 %v7661_v18, %v6808_v19  ;;  %v7663_v12 = vld [vmem:[#allocation70_spill] sm:$0xff]  ;;  %v7665_v30 = vld [vmem:[#allocation56_spill] sm:$0xff] }
0x1a59   :  { %v3525_v3 = vsub.f32 %v7662_v56, %v6808_v19  ;;  %v3526_v13 = vsub.f32 %v6759_v49, %v6808_v19  ;;  %v3527_v38 = vsub.f32 %v6784_v35, %v6808_v19  ;;  %v3528_v59 = vsub.f32 %v7663_v12, %v6808_v19  ;;  %v7666_v49 = vld [vmem:[#allocation2_spill] sm:$0xff] }
0x1a5a   :  { %v3529_v40 = vsub.f32 %v7664_v0, %v6808_v19  ;;  %v3530_v47 = vsub.f32 %v7665_v30, %v6808_v19  ;;  %v3531_v36 = vsub.f32 %v6763_v43, %v6808_v19  ;;  %v3532_v9 = vsub.f32 %v6788_v5, %v6808_v19  ;;  %4401 = vmatpush3.bf16.msra.mxu0 %v4651_v53  ;;  %v7667_v43 = vld [vmem:[#allocation4_spill] sm:$0xff]  ;;  %v7668_v19 = vld [vmem:[#allocation5_spill] sm:$0xff] }
0x1a5b   :  { %v6907_v60 = vmul.f32 %v3493_v31, %v7666_v49  ;;  %v6910_v35 = vmul.f32 %v3494_v16, %v7666_v49  ;;  %v6913_v23 = vmul.f32 %v3495_v42, %v7666_v49  ;;  %v6916_v32 = vmul.f32 %v3496_v17, %v7666_v49 }
0x1a5c   :  { %v6919_v50 = vmul.f32 %v3497_v27, %v7666_v49  ;;  %v6922_v33 = vmul.f32 %v3498_v63, %v7667_v43  ;;  %v6925_v5 = vmul.f32 %v3499_v21, %v7667_v43  ;;  %v6928_v11 = vmul.f32 %v3500_v55, %v7667_v43  ;;  %v7680_v27 = vld [vmem:[#allocation7_spill] sm:$0xff] }
0x1a5d   :  { %v6931_v4 = vmul.f32 %v3501_v39, %v7667_v43  ;;  %v6934_v46 = vmul.f32 %v3502_v15, %v7667_v43  ;;  %v6937_v26 = vmul.f32 %v3503_v10, %v7668_v19  ;;  %v6940_v31 = vmul.f32 %v3504_v37, %v7668_v19 }
0x1a5e   :  { %v6943_v16 = vmul.f32 %v3505_v58, %v7668_v19  ;;  %v6946_v63 = vmul.f32 %v3506_v48, %v7668_v19  ;;  %v6949_v21 = vmul.f32 %v3507_v44, %v7668_v19  ;;  %v6952_v61 = vmul.f32 %v3508_v57, %v7674_v52  ;;  %v7684_v58 = vld [vmem:[#allocation6_spill] sm:$0xff] }
0x1a5f   :  { %7669 = vst [vmem:[#allocation57_spill] sm:$0xff] %v6937_v26  ;;  %7670 = vst [vmem:[#allocation58_spill] sm:$0xff] %v6940_v31  ;;  %v6955_v42 = vmul.f32 %v3509_v14, %v7674_v52  ;;  %v6958_v10 = vmul.f32 %v3510_v28, %v7674_v52  ;;  %v6961_v37 = vmul.f32 %v3511_v6, %v7674_v52  ;;  %v7685_v6 = vld [vmem:[#allocation8_spill] sm:$0xff] }
0x1a60   :  { %7671 = vst [vmem:[#allocation59_spill] sm:$0xff] %v6943_v16  ;;  %7672 = vst [vmem:[#allocation60_spill] sm:$0xff] %v6946_v63  ;;  %v6964_v17 = vmul.f32 %v3512_v1, %v7674_v52  ;;  %v6967_v55 = vmul.f32 %v3513_v41, %v7680_v27  ;;  %v6970_v39 = vmul.f32 %v3514_v22, %v7680_v27 }
0x1a61   :  { %7673 = vst [vmem:[#allocation61_spill] sm:$0xff] %v6949_v21  ;;  %7675 = vst [vmem:[#allocation62_spill] sm:$0xff] %v6952_v61  ;;  %v6973_v57 = vmul.f32 %v3515_v62, %v7680_v27  ;;  %v6976_v14 = vmul.f32 %v3516_v20, %v7680_v27  ;;  %v6979_v15 = vmul.f32 %v3517_v2, %v7680_v27  ;;  %v7686_v20 = vld [vmem:[#allocation9_spill] sm:$0xff] }
0x1a62   :  { %7676 = vst [vmem:[#allocation63_spill] sm:$0xff] %v6955_v42  ;;  %7677 = vst [vmem:[#allocation64_spill] sm:$0xff] %v6958_v10  ;;  %v6982_v48 = vmul.f32 %v3518_v54, %v7684_v58  ;;  %v6985_v44 = vmul.f32 %v3519_v8, %v7684_v58  ;;  %v6988_v41 = vmul.f32 %v3520_v7, %v7684_v58 }
0x1a63   :  { %7678 = vst [vmem:[#allocation65_spill] sm:$0xff] %v6961_v37  ;;  %7679 = vst [vmem:[#allocation66_spill] sm:$0xff] %v6964_v17  ;;  %v6991_v22 = vmul.f32 %v3521_v45, %v7684_v58  ;;  %v6994_v28 = vmul.f32 %v3522_v24, %v7684_v58  ;;  %v6997_v53 = vmul.f32 %v3523_v51, %v7685_v6 }
0x1a64   :  { %7681 = vst [vmem:[#allocation67_spill] sm:$0xff] %v6967_v55  ;;  %7682 = vst [vmem:[#allocation68_spill] sm:$0xff] %v6970_v39  ;;  %v7000_v1 = vmul.f32 %v3524_v25, %v7685_v6  ;;  %v7003_v54 = vmul.f32 %v3525_v3, %v7685_v6  ;;  %v7006_v8 = vmul.f32 %v3526_v13, %v7685_v6 }
0x1a65   :  { %7683 = vst [vmem:[#allocation69_spill] sm:$0xff] %v6973_v57  ;;  %v7009_v62 = vmul.f32 %v3527_v38, %v7685_v6  ;;  %v7012_v2 = vmul.f32 %v3528_v59, %v7686_v20  ;;  %v7015_v7 = vmul.f32 %v3529_v40, %v7686_v20  ;;  %v7018_v51 = vmul.f32 %v3530_v47, %v7686_v20 }
0x1a66   :  { %v7021_v34 = vmul.f32 %v3531_v36, %v7686_v20  ;;  %v7024_v45 = vmul.f32 %v3532_v9, %v7686_v20  ;;  %v3573_v24 = vmul.f32 %v6907_v60, %v6907_v60  ;;  %v3574_v18 = vmul.f32 %v6910_v35, %v6910_v35 }
0x1a67   :  { %v3575_v25 = vmul.f32 %v6913_v23, %v6913_v23  ;;  %v3576_v56 = vmul.f32 %v6916_v32, %v6916_v32  ;;  %v3577_v3 = vmul.f32 %v6919_v50, %v6919_v50  ;;  %v3578_v13 = vmul.f32 %v6922_v33, %v6922_v33 }
0x1a68   :  { %v3579_v38 = vmul.f32 %v6925_v5, %v6925_v5  ;;  %v3580_v12 = vmul.f32 %v6928_v11, %v6928_v11  ;;  %v3581_v59 = vmul.f32 %v6931_v4, %v6931_v4  ;;  %v3582_v0 = vmul.f32 %v6934_v46, %v6934_v46 }
0x1a69   :  { %v3583_v40 = vmul.f32 %v6937_v26, %v6937_v26  ;;  %v3584_v30 = vmul.f32 %v6940_v31, %v6940_v31  ;;  %v3585_v47 = vmul.f32 %v6943_v16, %v6943_v16  ;;  %v3586_v36 = vmul.f32 %v6946_v63, %v6946_v63 }
0x1a6a   :  { %v3587_v9 = vmul.f32 %v6949_v21, %v6949_v21  ;;  %v3588_v49 = vmul.f32 %v6952_v61, %v6952_v61  ;;  %v3589_v43 = vmul.f32 %v6955_v42, %v6955_v42  ;;  %v3590_v19 = vmul.f32 %v6958_v10, %v6958_v10 }
0x1a6b   :  { %v3591_v52 = vmul.f32 %v6961_v37, %v6961_v37  ;;  %v3592_v27 = vmul.f32 %v6964_v17, %v6964_v17  ;;  %v3593_v58 = vmul.f32 %v6967_v55, %v6967_v55  ;;  %v3594_v6 = vmul.f32 %v6970_v39, %v6970_v39 }
0x1a6c   :  { %v3595_v20 = vmul.f32 %v6973_v57, %v6973_v57  ;;  %v3596_v42 = vmul.f32 %v6976_v14, %v6976_v14  ;;  %v3613_v61 = vadd.f32 %v3578_v13, %v3573_v24  ;;  %v3626_v10 = vadd.f32 %v3579_v38, %v3574_v18 }
0x1a6d   :  { %v3639_v21 = vadd.f32 %v3580_v12, %v3575_v25  ;;  %v3652_v63 = vadd.f32 %v3581_v59, %v3576_v56  ;;  %v3597_v37 = vmul.f32 %v6979_v15, %v6979_v15  ;;  %v3598_v17 = vmul.f32 %v6982_v48, %v6982_v48 }
0x1a6e   :  { %v3599_v55 = vmul.f32 %v6985_v44, %v6985_v44  ;;  %v3665_v39 = vadd.f32 %v3582_v0, %v3577_v3  ;;  %v3614_v16 = vadd.f32 %v3613_v61, %v3583_v40  ;;  %v3627_v31 = vadd.f32 %v3626_v10, %v3584_v30 }
0x1a6f   :  { %v3640_v57 = vadd.f32 %v3639_v21, %v3585_v47  ;;  %v3653_v26 = vadd.f32 %v3652_v63, %v3586_v36  ;;  %v3600_v24 = vmul.f32 %v6988_v41, %v6988_v41  ;;  %v3601_v18 = vmul.f32 %v6991_v22, %v6991_v22 }
0x1a70   :  { %v3602_v25 = vmul.f32 %v6994_v28, %v6994_v28  ;;  %v3666_v56 = vadd.f32 %v3665_v39, %v3587_v9  ;;  %v3615_v13 = vadd.f32 %v3614_v16, %v3588_v49  ;;  %v3628_v38 = vadd.f32 %v3627_v31, %v3589_v43 }
0x1a71   :  { %v3641_v12 = vadd.f32 %v3640_v57, %v3590_v19  ;;  %v3654_v59 = vadd.f32 %v3653_v26, %v3591_v52  ;;  %v3603_v61 = vmul.f32 %v6997_v53, %v6997_v53  ;;  %v3604_v63 = vmul.f32 %v7000_v1, %v7000_v1 }
0x1a72   :  { %v3605_v21 = vmul.f32 %v7003_v54, %v7003_v54  ;;  %v3667_v10 = vadd.f32 %v3666_v56, %v3592_v27  ;;  %v3616_v3 = vadd.f32 %v3615_v13, %v3593_v58  ;;  %v3629_v0 = vadd.f32 %v3628_v38, %v3594_v6 }
0x1a73   :  { %v3642_v40 = vadd.f32 %v3641_v12, %v3595_v20  ;;  %v3655_v30 = vadd.f32 %v3654_v59, %v3596_v42  ;;  %v3606_v16 = vmul.f32 %v7006_v8, %v7006_v8  ;;  %v3607_v26 = vmul.f32 %v7009_v62, %v7009_v62 }
0x1a74   :  { %v3608_v31 = vmul.f32 %v7012_v2, %v7012_v2  ;;  %v3668_v39 = vadd.f32 %v3667_v10, %v3597_v37  ;;  %v3617_v57 = vadd.f32 %v3616_v3, %v3598_v17  ;;  %v3630_v47 = vadd.f32 %v3629_v0, %v3599_v55 }
0x1a75   :  { %v3643_v36 = vadd.f32 %v3642_v40, %v3600_v24  ;;  %v3656_v9 = vadd.f32 %v3655_v30, %v3601_v18  ;;  %v3609_v49 = vmul.f32 %v7015_v7, %v7015_v7  ;;  %v3610_v42 = vmul.f32 %v7018_v51, %v7018_v51 }
0x1a76   :  { %v3611_v43 = vmul.f32 %v7021_v34, %v7021_v34  ;;  %v3669_v19 = vadd.f32 %v3668_v39, %v3602_v25  ;;  %v3618_v52 = vadd.f32 %v3617_v57, %v3603_v61  ;;  %v3631_v27 = vadd.f32 %v3630_v47, %v3604_v63 }
0x1a77   :  { %v3644_v58 = vadd.f32 %v3643_v36, %v3605_v21  ;;  %v3657_v6 = vadd.f32 %v3656_v9, %v3606_v16  ;;  %v3612_v37 = vmul.f32 %v7024_v45, %v7024_v45 }
0x1a78   :  { %v3670_v17 = vadd.f32 %v3669_v19, %v3607_v26  ;;  %v3619_v55 = vadd.f32 %v3618_v52, %v3608_v31  ;;  %v3632_v20 = vadd.f32 %v3631_v27, %v3609_v49 }
0x1a79   :  { %v3645_v24 = vadd.f32 %v3644_v58, %v3610_v42  ;;  %v3658_v18 = vadd.f32 %v3657_v6, %v3611_v43 }
0x1a7a   :  { %v3671_v56 = vadd.f32 %v3670_v17, %v3612_v37  ;;  %v3620_v13 = vrot.slane %v3619_v55, 4  ;;  %v3633_v38 = vrot.slane %v3632_v20, 4 }
0x1a7b   :  { %v3646_v12 = vrot.slane %v3645_v24, 4  ;;  %v3659_v59 = vrot.slane %v3658_v18, 4 }
0x1a7c   :  { %v3672_v10 = vrot.slane %v3671_v56, 4  ;;  %v3621_v3 = vadd.f32 %v3620_v13, %v3619_v55  ;;  %v3634_v25 = vadd.f32 %v3633_v38, %v3632_v20  ;;  %v3683_v13 = vld [vmem:[%s7271_s9] sm:$0x1] }
0x1a7d   :  { %v3647_v61 = vadd.f32 %v3646_v12, %v3645_v24  ;;  %v3660_v63 = vadd.f32 %v3659_v59, %v3658_v18 }
0x1a7e   :  { %v3673_v21 = vadd.f32 %v3672_v10, %v3671_v56  ;;  %v3622_v0 = vrot.slane %v3621_v3, 2  ;;  %v3635_v40 = vrot.slane %v3634_v25, 2  ;;  %v7113_v10 = vld [vmem:[%s7272_s10] ss:$0 sm:$0xff] }
0x1a7f   :  { %v3648_v30 = vrot.slane %v3647_v61, 2  ;;  %v3661_v16 = vrot.slane %v3660_v63, 2 }
0x1a80   :  { %v3674_v26 = vrot.slane %v3673_v21, 2  ;;  %v3623_v31 = vadd.f32 %v3622_v0, %v3621_v3  ;;  %v3636_v39 = vadd.f32 %v3635_v40, %v3634_v25 }
0x1a81   :  { %v3649_v57 = vadd.f32 %v3648_v30, %v3647_v61  ;;  %v3662_v47 = vadd.f32 %v3661_v16, %v3660_v63 }
0x1a82   :  { %v3624_v36 = vrot.slane %v3623_v31, 1  ;;  %v3637_v9 = vrot.slane %v3636_v39, 1  ;;  %v3675_v42 = vadd.f32 %v3674_v26, %v3673_v21 }
0x1a83   :  { %v3650_v49 = vrot.slane %v3649_v57, 1  ;;  %v3663_v52 = vrot.slane %v3662_v47, 1 }
0x1a84   :  { %v3625_v43 = vadd.f32 %v3624_v36, %v3623_v31  ;;  %v3638_v19 = vadd.f32 %v3637_v9, %v3636_v39  ;;  %v3676_v58 = vrot.slane %v3675_v42, 1 }
0x1a85   :  { %v3651_v27 = vadd.f32 %v3650_v49, %v3649_v57  ;;  %v3664_v37 = vadd.f32 %v3663_v52, %v3662_v47  ;;  %v7690_v52 = vld [vmem:[#allocation60_spill] sm:$0xff] }
0x1a86   :  { %v3678_v6 = vadd.f32 %v3638_v19, %v3625_v43  ;;  %v3677_v55 = vadd.f32 %v3676_v58, %v3675_v42  ;;  %v7687_v42 = vld [vmem:[#allocation57_spill] sm:$0xff]  ;;  %v7688_v43 = vld [vmem:[#allocation58_spill] sm:$0xff]  ;;  %v7689_v19 = vld [vmem:[#allocation59_spill] sm:$0xff] }
0x1a87   :  { %v7691_v58 = vld [vmem:[#allocation61_spill] sm:$0xff] }
0x1a88   :  { %v3679_v17 = vadd.f32 %v3678_v6, %v3651_v27 }
0x1a8a   :  { %v3680_v20 = vadd.f32 %v3679_v17, %v3664_v37  ;;  %v7692_v37 = vld [vmem:[#allocation62_spill] sm:$0xff] }
0x1a8c   :  { %v3681_v24 = vadd.f32 %v3680_v20, %v3677_v55  ;;  %v7693_v55 = vld [vmem:[#allocation63_spill] sm:$0xff]  ;;  %v7694_v20 = vld [vmem:[#allocation64_spill] sm:$0xff] }
0x1a8e   :  { %v3682_v18 = vmul.f32 0.00625, %v3681_v24  ;;  %v7695_v24 = vld [vmem:[#allocation65_spill] sm:$0xff] }
0x1a90   :  { %v3684_v56 = vadd.f32 1e-05, %v3682_v18 }
0x1a92   :  { %4718 = vrsqrt.f32 %v3684_v56 }
0x1a9f   :  { %v4719_v38 = vpop.eup %4718 }
0x1aa0   :  { %v3686_v12 = vmul.f32 %v4719_v38, %v3683_v13  ;;  %v7697_v13 = vld [vmem:[#allocation67_spill] sm:$0xff] }
0x1aa2   :  { %v3690_v59 = vrot.slane %v3686_v12, %v7659_v29  ;;  %v7698_v12 = vld [vmem:[#allocation68_spill] sm:$0xff] }
0x1aa4   :  { %v3726_v3 = vmul.f32 %v3690_v59, %v7012_v2  ;;  %v3727_v25 = vmul.f32 %v3690_v59, %v7015_v7  ;;  %v3728_v61 = vmul.f32 %v3690_v59, %v7018_v51  ;;  %v3729_v63 = vmul.f32 %v3690_v59, %v7021_v34 }
0x1aa5   :  { %v3730_v21 = vmul.f32 %v3690_v59, %v7024_v45  ;;  %v3691_v0 = vmul.f32 %v3690_v59, %v6907_v60  ;;  %v3692_v40 = vmul.f32 %v3690_v59, %v6910_v35  ;;  %v3693_v29 = vmul.f32 %v3690_v59, %v6913_v23 }
0x1aa6   :  { %v3771_v30 = vadd.f32 %v7113_v10, %v3726_v3  ;;  %v3772_v16 = vadd.f32 %v7113_v10, %v3727_v25  ;;  %v3773_v2 = vadd.f32 %v7113_v10, %v3728_v61  ;;  %v3774_v7 = vadd.f32 %v7113_v10, %v3729_v63  ;;  %v7699_v25 = vld [vmem:[#allocation69_spill] sm:$0xff] }
0x1aa7   :  { %v3775_v51 = vadd.f32 %v7113_v10, %v3730_v21  ;;  %v3694_v34 = vmul.f32 %v3690_v59, %v6916_v32  ;;  %v3695_v45 = vmul.f32 %v3690_v59, %v6919_v50  ;;  %v3696_v60 = vmul.f32 %v3690_v59, %v6922_v33 }
0x1aa8   :  { %v3811_v26 = vmax.f32 %v3771_v30, 0.0  ;;  %v3812_v35 = vmax.f32 %v3772_v16, 0.0  ;;  %v3813_v31 = vmax.f32 %v3773_v2, 0.0  ;;  %v3814_v23 = vmax.f32 %v3774_v7, 0.0 }
0x1aa9   :  { %v3815_v39 = vmax.f32 %v3775_v51, 0.0  ;;  %v3697_v57 = vmul.f32 %v3690_v59, %v6925_v5  ;;  %v3698_v47 = vmul.f32 %v3690_v59, %v6928_v11  ;;  %v3699_v36 = vmul.f32 %v3690_v59, %v6931_v4 }
0x1aaa   :  { %v3823_v9 = vadd.f32 %v3812_v35, %v3811_v26  ;;  %v3700_v49 = vmul.f32 %v3690_v59, %v6934_v46  ;;  %v3701_v32 = vmul.f32 %v3690_v59, %v7687_v42  ;;  %v3702_v50 = vmul.f32 %v3690_v59, %v7688_v43  ;;  %v7696_v46 = vld [vmem:[#allocation66_spill] sm:$0xff] }
0x1aab   :  { %v3703_v33 = vmul.f32 %v3690_v59, %v7689_v19  ;;  %v3704_v27 = vmul.f32 %v3690_v59, %v7690_v52  ;;  %v3705_v6 = vmul.f32 %v3690_v59, %v7691_v58  ;;  %v3706_v17 = vmul.f32 %v3690_v59, %v7692_v37 }
0x1aac   :  { %v3831_v5 = vadd.f32 %v3823_v9, %v3813_v31  ;;  %v3707_v11 = vmul.f32 %v3690_v59, %v7693_v55  ;;  %v3708_v4 = vmul.f32 %v3690_v59, %v7694_v20  ;;  %v3709_v18 = vmul.f32 %v3690_v59, %v7695_v24 }
0x1aad   :  { %v3710_v56 = vmul.f32 %v3690_v59, %v7696_v46  ;;  %v3711_v38 = vmul.f32 %v3690_v59, %v7697_v13  ;;  %v3712_v3 = vmul.f32 %v3690_v59, %v7698_v12  ;;  %v3713_v61 = vmul.f32 %v3690_v59, %v7699_v25 }
0x1aae   :  { %v3839_v63 = vadd.f32 %v3831_v5, %v3814_v23  ;;  %v3714_v21 = vmul.f32 %v3690_v59, %v6976_v14  ;;  %v3715_v30 = vmul.f32 %v3690_v59, %v6979_v15  ;;  %v3716_v16 = vmul.f32 %v3690_v59, %v6982_v48 }
0x1aaf   :  { %v3717_v2 = vmul.f32 %v3690_v59, %v6985_v44  ;;  %v3718_v7 = vmul.f32 %v3690_v59, %v6988_v41  ;;  %v3719_v51 = vmul.f32 %v3690_v59, %v6991_v22  ;;  %v3720_v26 = vmul.f32 %v3690_v59, %v6994_v28 }
0x1ab0   :  { %v7155_v35 = vadd.f32 %v3839_v63, %v3815_v39  ;;  %v3721_v31 = vmul.f32 %v3690_v59, %v6997_v53  ;;  %v3722_v23 = vmul.f32 %v3690_v59, %v7000_v1  ;;  %v3723_v14 = vmul.f32 %v3690_v59, %v7003_v54 }
0x1ab1   :  { %v3724_v15 = vmul.f32 %v3690_v59, %v7006_v8  ;;  %v3725_v48 = vmul.f32 %v3690_v59, %v7009_v62  ;;  %v7163_v44 = vadd.f32 %v7113_v10, %v3691_v0  ;;  %v7166_v41 = vadd.f32 %v7113_v10, %v3692_v40 }
0x1ab2   :  { %v7169_v22 = vadd.f32 %v7113_v10, %v3693_v29  ;;  %v7172_v28 = vadd.f32 %v7113_v10, %v3694_v34  ;;  %v7175_v53 = vadd.f32 %v7113_v10, %v3695_v45  ;;  %v7178_v1 = vadd.f32 %v7113_v10, %v3696_v60 }
0x1ab3   :  { %v7181_v54 = vadd.f32 %v7113_v10, %v3697_v57  ;;  %v7184_v8 = vadd.f32 %v7113_v10, %v3698_v47  ;;  %v7187_v62 = vadd.f32 %v7113_v10, %v3699_v36  ;;  %v7190_v59 = vadd.f32 %v7113_v10, %v3700_v49 }
0x1ab4   :  { %v3746_v0 = vadd.f32 %v7113_v10, %v3701_v32  ;;  %v3747_v40 = vadd.f32 %v7113_v10, %v3702_v50  ;;  %v7195_v29 = vadd.f32 %v7113_v10, %v3703_v33  ;;  %v7198_v34 = vadd.f32 %v7113_v10, %v3704_v27 }
0x1ab5   :  { %v7201_v45 = vadd.f32 %v7113_v10, %v3705_v6  ;;  %v3751_v60 = vadd.f32 %v7113_v10, %v3706_v17  ;;  %v3752_v39 = vadd.f32 %v7113_v10, %v3707_v11  ;;  %v3753_v57 = vadd.f32 %v7113_v10, %v3708_v4 }
0x1ab6   :  { %v7207_v47 = vadd.f32 %v7113_v10, %v3709_v18  ;;  %v7210_v36 = vadd.f32 %v7113_v10, %v3710_v56  ;;  %v3756_v9 = vadd.f32 %v7113_v10, %v3711_v38  ;;  %v3757_v49 = vadd.f32 %v7113_v10, %v3712_v3 }
0x1ab7   :  { %v3758_v42 = vadd.f32 %v7113_v10, %v3713_v61  ;;  %v7216_v32 = vadd.f32 %v7113_v10, %v3714_v21  ;;  %v7219_v43 = vadd.f32 %v7113_v10, %v3715_v30  ;;  %v3761_v50 = vadd.f32 %v7113_v10, %v3716_v16 }
0x1ab8   :  { %v3762_v19 = vadd.f32 %v7113_v10, %v3717_v2  ;;  %v3763_v33 = vadd.f32 %v7113_v10, %v3718_v7  ;;  %v3764_v52 = vadd.f32 %v7113_v10, %v3719_v51  ;;  %v7226_v27 = vadd.f32 %v7113_v10, %v3720_v26 }
0x1ab9   :  { %v3766_v58 = vadd.f32 %v7113_v10, %v3721_v31  ;;  %v3767_v6 = vadd.f32 %v7113_v10, %v3722_v23  ;;  %v3768_v37 = vadd.f32 %v7113_v10, %v3723_v14  ;;  %v3769_v17 = vadd.f32 %v7113_v10, %v3724_v15 }
0x1aba   :  { %v7233_v5 = vadd.f32 %v7113_v10, %v3725_v48  ;;  %v3776_v55 = vmax.f32 %v7163_v44, 0.0  ;;  %v3777_v11 = vmax.f32 %v7166_v41, 0.0  ;;  %v3778_v20 = vmax.f32 %v7169_v22, 0.0 }
0x1abb   :  { %v3779_v4 = vmax.f32 %v7172_v28, 0.0  ;;  %v3780_v24 = vmax.f32 %v7175_v53, 0.0  ;;  %v3781_v18 = vmax.f32 %v7178_v1, 0.0  ;;  %v3782_v46 = vmax.f32 %v7181_v54, 0.0 }
0x1abc   :  { %v3783_v56 = vmax.f32 %v7184_v8, 0.0  ;;  %v3784_v13 = vmax.f32 %v7187_v62, 0.0  ;;  %v3785_v10 = vmax.f32 %v7190_v59, 0.0  ;;  %v3786_v38 = vmax.f32 %v3746_v0, 0.0 }
0x1abd   :  { %v3787_v12 = vmax.f32 %v3747_v40, 0.0  ;;  %v3788_v3 = vmax.f32 %v7195_v29, 0.0  ;;  %v3789_v25 = vmax.f32 %v7198_v34, 0.0  ;;  %v3790_v61 = vmax.f32 %v7201_v45, 0.0 }
0x1abe   :  { %v3791_v63 = vmax.f32 %v3751_v60, 0.0  ;;  %v3792_v21 = vmax.f32 %v3752_v39, 0.0  ;;  %v3793_v30 = vmax.f32 %v3753_v57, 0.0  ;;  %v3794_v16 = vmax.f32 %v7207_v47, 0.0 }
0x1abf   :  { %v3795_v2 = vmax.f32 %v7210_v36, 0.0  ;;  %v3796_v7 = vmax.f32 %v3756_v9, 0.0  ;;  %v3797_v51 = vmax.f32 %v3757_v49, 0.0  ;;  %v3801_v26 = vmax.f32 %v3761_v50, 0.0 }
0x1ac0   :  { %v3802_v31 = vmax.f32 %v3762_v19, 0.0  ;;  %v3798_v23 = vmax.f32 %v3758_v42, 0.0  ;;  %v3799_v14 = vmax.f32 %v7216_v32, 0.0  ;;  %v3800_v15 = vmax.f32 %v7219_v43, 0.0 }
0x1ac1   :  { %v3806_v48 = vmax.f32 %v3766_v58, 0.0  ;;  %v3803_v44 = vmax.f32 %v3763_v33, 0.0  ;;  %v3804_v41 = vmax.f32 %v3764_v52, 0.0  ;;  %v3805_v22 = vmax.f32 %v7226_v27, 0.0 }
0x1ac2   :  { %v3807_v28 = vmax.f32 %v3767_v6, 0.0  ;;  %v3816_v53 = vadd.f32 %v3777_v11, %v3776_v55  ;;  %v3817_v1 = vadd.f32 %v3782_v46, %v3781_v18  ;;  %v3818_v54 = vadd.f32 %v3787_v12, %v3786_v38 }
0x1ac3   :  { %v3819_v8 = vadd.f32 %v3792_v21, %v3791_v63  ;;  %v3808_v62 = vmax.f32 %v3768_v37, 0.0  ;;  %v3820_v59 = vadd.f32 %v3797_v51, %v3796_v7  ;;  %v3821_v0 = vadd.f32 %v3802_v31, %v3801_v26 }
0x1ac4   :  { %v3822_v40 = vadd.f32 %v3807_v28, %v3806_v48  ;;  %v3824_v29 = vadd.f32 %v3816_v53, %v3778_v20  ;;  %v3825_v34 = vadd.f32 %v3817_v1, %v3783_v56  ;;  %v3826_v45 = vadd.f32 %v3818_v54, %v3788_v3 }
0x1ac5   :  { %v3827_v60 = vadd.f32 %v3819_v8, %v3793_v30  ;;  %v3809_v39 = vmax.f32 %v3769_v17, 0.0  ;;  %v3828_v57 = vadd.f32 %v3820_v59, %v3798_v23  ;;  %v3829_v47 = vadd.f32 %v3821_v0, %v3803_v44 }
0x1ac6   :  { %v3830_v36 = vadd.f32 %v3822_v40, %v3808_v62  ;;  %v3832_v9 = vadd.f32 %v3824_v29, %v3779_v4  ;;  %v3833_v49 = vadd.f32 %v3825_v34, %v3784_v13  ;;  %v3834_v42 = vadd.f32 %v3826_v45, %v3789_v25 }
0x1ac7   :  { %v3835_v32 = vadd.f32 %v3827_v60, %v3794_v16  ;;  %v3810_v43 = vmax.f32 %v7233_v5, 0.0  ;;  %v3836_v50 = vadd.f32 %v3828_v57, %v3799_v14  ;;  %v3837_v19 = vadd.f32 %v3829_v47, %v3804_v41 }
0x1ac8   :  { %v3838_v33 = vadd.f32 %v3830_v36, %v3809_v39  ;;  %v3840_v52 = vadd.f32 %v3832_v9, %v3780_v24  ;;  %v3841_v27 = vadd.f32 %v3833_v49, %v3785_v10  ;;  %v3842_v58 = vadd.f32 %v3834_v42, %v3790_v61  ;;  %v4185_v24 = vld [vmem:[%s7273_s12] ss:$0 sm:$0xff] }
0x1ac9   :  { %v3843_v6 = vadd.f32 %v3835_v32, %v3795_v2  ;;  %v3844_v37 = vadd.f32 %v3836_v50, %v3800_v15  ;;  %v3845_v55 = vadd.f32 %v3837_v19, %v3805_v22 }
0x1aca   :  { %v3846_v11 = vadd.f32 %v3838_v33, %v3810_v43  ;;  %v3848_v17 = vadd.f32 %v3841_v27, %v3840_v52 }
0x1acc   :  { %v3849_v20 = vadd.f32 %v3848_v17, %v3842_v58 }
0x1ace   :  { %v3850_v18 = vadd.f32 %v3849_v20, %v3843_v6 }
0x1ad0   :  { %v3851_v46 = vadd.f32 %v3850_v18, %v3844_v37 }
0x1ad2   :  { %v3852_v4 = vadd.f32 %v3851_v46, %v3845_v55 }
0x1ad4   :  { %v3853_v56 = vadd.f32 %v3852_v4, %v3846_v11 }
0x1ad6   :  { %v3854_v13 = vadd.f32 %v3853_v56, %v7155_v35 }
0x1ad8   :  { %v3855_v38 = vmul.f32 0.025, %v3854_v13 }
0x1ada   :  { %v3856_v5 = vpack.c.bf16 %v3855_v38, %v3855_v38 }
0x1adc   :  { %4403 = vmatmul.mubr.bf16.vlgmr.msra.gmra.mxu0 %v3856_v5 }
0x1b9c   :  { %v3962_v10 = vpop.f32.mrf.mxu0 }
0x1b9d   :  { %v3963_v12 = vadd.f32 %v4185_v24, %v3962_v10 }
0x1b9e   :  { %v4404_v3 = vpop.f32.mrf.mxu0 }
0x1b9f   :  { %3968 = vst [vmem:[%s7274_s13] sm:$0xff] %v3963_v12 }
0x1ba0   :  { %v3965_v25 = vpop.f32.mrf.mxu0 }
0x1ba2   :  { %v4405_v61 = vpop.f32.mrf.mxu0 }

</bundles_post_ra>
